<compile_context>
chip_gen: v5e
topology: v5e:2x2
jax: 0.10.0
libtpu: 0.0.40
codegen_flags: <defaults>
</compile_context>

<pallas_src>
import functools
import math

import jax
import jax.numpy as jnp
from jax.experimental import pallas as pl
from jax.experimental.pallas import tpu as pltpu


# ----------------------------------------------------------------------------
# Tiled fused matmul kernel:  o = act((x @ w) * scale + bias [+ residual])
# ----------------------------------------------------------------------------
# Conservative tile caps that fit comfortably in scoped VMEM on v5e/v6e/v7x
# (v7x has only 64 MiB physical VMEM; bf16 operand tiles + f32 accumulator at
# these caps stay well under a few MiB with double buffering).
_TM_CAP = 512   # rows of the im2col matrix per tile
_TN_CAP = 256   # output channels per tile (multiple of 128 -> lane-dense vst)
_TK_CAP = 512   # contraction per tile (multiple of 128 -> aligned loads)


def _round_up(x, m):
    return (x + m - 1) // m * m


def _pick_tile(size, cap, align):
    """Tile size <= cap (multiple of `align`) minimizing padding.

    Returns (tile, padded_size) with padded_size % tile == 0.
    """
    padded = _round_up(size, align)
    if padded <= cap:
        return padded, padded
    nt = math.ceil(padded / cap)
    tile = _round_up(math.ceil(padded / nt), align)
    return tile, tile * nt


def _mm_kernel(*refs, relu, has_res):
    if has_res:
        x_ref, w_ref, s_ref, b_ref, r_ref, o_ref, acc_ref = refs
    else:
        x_ref, w_ref, s_ref, b_ref, o_ref, acc_ref = refs

    @pl.when(pl.program_id(2) == 0)
    def _init():
        acc_ref[...] = jnp.zeros_like(acc_ref)

    acc_ref[...] += jnp.dot(x_ref[...], w_ref[...],
                            preferred_element_type=jnp.float32)

    @pl.when(pl.program_id(2) == pl.num_programs(2) - 1)
    def _finalize():
        y = acc_ref[...] * s_ref[...] + b_ref[...]
        if has_res:
            y = y + r_ref[...].astype(jnp.float32)
        if relu:
            y = jnp.maximum(y, 0.0)
        o_ref[...] = y.astype(o_ref.dtype)


def fused_matmul(x, w, scale, bias, residual=None, relu=False,
                 out_dtype=jnp.float32):
    """x:(M,K) w:(K,N) scale/bias:(N,) [residual:(M,N)] -> (M,N) out_dtype."""
    m, k = x.shape
    k2, n = w.shape
    assert k == k2

    tm, mp = _pick_tile(m, _TM_CAP, 8)
    tn, np_ = _pick_tile(n, _TN_CAP, 128)
    tk, kp = _pick_tile(k, _TK_CAP, 128)

    # bf16 MXU operands, zero-padded to lane/sublane-aligned tile multiples.
    xb = jnp.pad(x.astype(jnp.bfloat16), ((0, mp - m), (0, kp - k)))
    wb = jnp.pad(w.astype(jnp.bfloat16), ((0, kp - k), (0, np_ - n)))
    sb = jnp.pad(scale.astype(jnp.float32), (0, np_ - n)).reshape(1, np_)
    bb = jnp.pad(bias.astype(jnp.float32), (0, np_ - n)).reshape(1, np_)

    inputs = [xb, wb, sb, bb]
    in_specs = [
        pl.BlockSpec((tm, tk), lambda i, j, kk: (i, kk)),
        pl.BlockSpec((tk, tn), lambda i, j, kk: (kk, j)),
        pl.BlockSpec((1, tn), lambda i, j, kk: (0, j)),
        pl.BlockSpec((1, tn), lambda i, j, kk: (0, j)),
    ]
    has_res = residual is not None
    if has_res:
        rb = jnp.pad(residual.astype(jnp.bfloat16), ((0, mp - m), (0, np_ - n)))
        inputs.append(rb)
        in_specs.append(pl.BlockSpec((tm, tn), lambda i, j, kk: (i, j)))

    grid = (mp // tm, np_ // tn, kp // tk)

    out_itemsize = 2 if out_dtype == jnp.bfloat16 else 4
    bytes_accessed = (xb.size * 2 + wb.size * 2 + mp * np_ * out_itemsize
                      + (mp * np_ * 2 if has_res else 0)
                      + 2 * np_ * 4)
    cost = pl.CostEstimate(flops=2 * mp * np_ * kp + 3 * mp * np_,
                           transcendentals=0,
                           bytes_accessed=bytes_accessed)

    kernel = functools.partial(_mm_kernel, relu=relu, has_res=has_res)
    out = pl.pallas_call(
        kernel,
        out_shape=jax.ShapeDtypeStruct((mp, np_), out_dtype),
        grid=grid,
        in_specs=in_specs,
        out_specs=pl.BlockSpec((tm, tn), lambda i, j, kk: (i, j)),
        scratch_shapes=[pltpu.VMEM((tm, tn), jnp.float32)],
        compiler_params=pltpu.CompilerParams(
            dimension_semantics=("parallel", "parallel", "arbitrary"),
            vmem_limit_bytes=48 * 1024 * 1024,
        ),
        cost_estimate=cost,
    )(*inputs)
    return out[:m, :n]


# ----------------------------------------------------------------------------
# Fused tail: global-avg-pool + projector MLP (3 linears, BN1d fold) + head
# ----------------------------------------------------------------------------
def _tail_kernel(x_ref, w1, b1, w2, b2, w3, s3, b3, wh, bh, o_ref):
    x = x_ref[...].astype(jnp.float32)                      # (N, HW, C)
    feat = jnp.mean(x, axis=1)                              # GAP -> (N, C)
    h = jnp.dot(feat, w1[...], preferred_element_type=jnp.float32) + b1[...]
    h = jnp.maximum(h, 0.0)
    h = jnp.dot(h, w2[...], preferred_element_type=jnp.float32) + b2[...]
    h = jnp.maximum(h, 0.0)
    # last projector linear with eval-mode BatchNorm1d folded: (hW)*s + b'
    h = jnp.dot(h, w3[...], preferred_element_type=jnp.float32) * s3[...] + b3[...]
    y = jnp.dot(h, wh[...], preferred_element_type=jnp.float32) + bh[...]
    o_ref[...] = y.astype(o_ref.dtype)


def fused_tail(feat_map, proj_params, bn_params, head_params):
    """feat_map: (N, H*W, C) -> logits (N, HEAD_DIM).  Single pallas_call."""
    n, hw, c = feat_map.shape
    p0, p1, p2 = proj_params
    s3 = bn_params["scale"].astype(jnp.float32)
    # fold BN1d into the last linear's bias: (xW + b)*s + t = xW*s + (b*s + t)
    b3 = p2["b"].astype(jnp.float32) * s3 + bn_params["shift"].astype(jnp.float32)

    args = [
        feat_map,
        p0["w"].astype(jnp.float32), p0["b"].astype(jnp.float32).reshape(1, -1),
        p1["w"].astype(jnp.float32), p1["b"].astype(jnp.float32).reshape(1, -1),
        p2["w"].astype(jnp.float32), s3.reshape(1, -1), b3.reshape(1, -1),
        head_params["w"].astype(jnp.float32),
        head_params["b"].astype(jnp.float32).reshape(1, -1),
    ]
    out_dim = head_params["w"].shape[1]
    in_specs = [
        pl.BlockSpec(a.shape, lambda i, _n=a.ndim: (0,) * _n) for a in args
    ]
    return pl.pallas_call(
        _tail_kernel,
        out_shape=jax.ShapeDtypeStruct((n, out_dim), jnp.float32),
        grid=(1,),
        in_specs=in_specs,
        out_specs=pl.BlockSpec((n, out_dim), lambda i: (0, 0)),
        compiler_params=pltpu.CompilerParams(
            dimension_semantics=("arbitrary",)),
    )(*args)


# ----------------------------------------------------------------------------
# Conv lowering (im2col glue in plain JAX, tiled matmul in Pallas)
# ----------------------------------------------------------------------------
def im2col(x, kh, kw, stride, pad):
    """x: (N,H,W,C) NHWC -> (N*Ho*Wo, KH*KW*C) patches + output geometry."""
    n, h, w, c = x.shape
    xp = jnp.pad(x, ((0, 0), (pad, pad), (pad, pad), (0, 0)))
    ho = (h + 2 * pad - kh) // stride + 1
    wo = (w + 2 * pad - kw) // stride + 1
    cols = []
    for i in range(kh):
        for j in range(kw):
            cols.append(xp[:, i:i + stride * ho:stride, j:j + stride * wo:stride, :])
    patches = jnp.concatenate(cols, axis=-1)  # (N, Ho, Wo, KH*KW*C)
    return patches.reshape(n * ho * wo, kh * kw * c), (n, ho, wo)


def conv_bn(x, p, stride, pad, relu, residual=None, out_dtype=jnp.bfloat16):
    """Conv(no bias) + folded eval-mode BatchNorm (+residual, +ReLU)."""
    w = p["w"]  # (KH, KW, Cin, Cout)
    kh, kw, cin, cout = w.shape
    cols, (n, ho, wo) = im2col(x, kh, kw, stride, pad)
    wm = w.reshape(kh * kw * cin, cout)
    res2d = None
    if residual is not None:
        res2d = residual.reshape(n * ho * wo, cout)
    out = fused_matmul(cols, wm, p["scale"], p["shift"], residual=res2d,
                       relu=relu, out_dtype=out_dtype)
    return out.reshape(n, ho, wo, cout)


# ----------------------------------------------------------------------------
# Model definition (synthetic, deterministic init)
# ----------------------------------------------------------------------------
FEAT_DIM = 64            # self.feat_dim = enc.num_features
PROJECTION_DIM = 32      # model_cfg.PROJECTION_DIM
PROJECTION_LAYERS = 2    # cfg.MODEL.PROJECTION_LAYERS
NUM_CLASSES = 10         # model_cfg.DATA.NUMBER_CLASSES
TRAIN_RATIO = 0.5        # model_cfg.DATA.TRAIN_RATIO
HEAD_DIM = int(NUM_CLASSES * TRAIN_RATIO)
BN_EPS = 1e-5


class ParamGen:
    def __init__(self, key):
        self.key = key

    def _next(self):
        self.key, k = jax.random.split(self.key)
        return k

    def conv_bn(self, kh, kw, cin, cout):
        w = jax.random.normal(self._next(), (kh, kw, cin, cout), jnp.float32)
        w = w * (1.0 / (kh * kw * cin) ** 0.5)
        gamma = 1.0 + 0.1 * jax.random.normal(self._next(), (cout,), jnp.float32)
        beta = 0.1 * jax.random.normal(self._next(), (cout,), jnp.float32)
        mean = 0.1 * jax.random.normal(self._next(), (cout,), jnp.float32)
        var = 1.0 + 0.1 * jnp.abs(jax.random.normal(self._next(), (cout,), jnp.float32))
        scale = gamma / jnp.sqrt(var + BN_EPS)
        shift = beta - mean * scale
        return {"w": w, "scale": scale, "shift": shift}

    def linear(self, din, dout):
        w = jax.random.normal(self._next(), (din, dout), jnp.float32) * (1.0 / din ** 0.5)
        b = 0.1 * jax.random.normal(self._next(), (dout,), jnp.float32)
        return {"w": w, "b": b}

    def bn1d(self, d):
        gamma = 1.0 + 0.1 * jax.random.normal(self._next(), (d,), jnp.float32)
        beta = 0.1 * jax.random.normal(self._next(), (d,), jnp.float32)
        mean = 0.1 * jax.random.normal(self._next(), (d,), jnp.float32)
        var = 1.0 + 0.1 * jnp.abs(jax.random.normal(self._next(), (d,), jnp.float32))
        scale = gamma / jnp.sqrt(var + BN_EPS)
        shift = beta - mean * scale
        return {"scale": scale, "shift": shift}

    def basic_block(self, cin, cout, downsample):
        p = {
            "conv1": self.conv_bn(3, 3, cin, cout),
            "conv2": self.conv_bn(3, 3, cout, cout),
        }
        if downsample:
            p["down"] = self.conv_bn(1, 1, cin, cout)
        return p


def make_params(key):
    g = ParamGen(key)
    params = {
        "stem": g.conv_bn(3, 3, 3, 16),
        "layer1": [g.basic_block(16, 16, False), g.basic_block(16, 16, False)],
        "layer2": [g.basic_block(16, 32, True)],
        "layer3": [g.basic_block(32, 64, True)],
        # projector MLP: mlp_dims = [PROJECTION_DIM]*PROJECTION_LAYERS + [PROJECTION_DIM]
        "proj": [
            g.linear(FEAT_DIM, PROJECTION_DIM),
            g.linear(PROJECTION_DIM, PROJECTION_DIM),
            g.linear(PROJECTION_DIM, PROJECTION_DIM),
        ],
        "proj_final_norm": g.bn1d(PROJECTION_DIM),
        # projection_cls head: single Linear(PROJECTION_DIM -> NUM_CLASSES*TRAIN_RATIO)
        "head": g.linear(PROJECTION_DIM, HEAD_DIM),
    }
    return params


def basic_block(x, p, stride):
    if "down" in p:
        shortcut = conv_bn(x, p["down"], stride=stride, pad=0, relu=False)
    else:
        shortcut = x
    h = conv_bn(x, p["conv1"], stride=stride, pad=1, relu=True)
    # relu(bn2(conv2(h)) + shortcut) — residual add + ReLU fused in the kernel
    return conv_bn(h, p["conv2"], stride=1, pad=1, relu=True, residual=shortcut)


def resnet_forward(params, x_nchw):
    """Eval-mode forward: y = projection_cls(projector(enc(x).view(-1, feat_dim)))."""
    x = jnp.transpose(x_nchw, (0, 2, 3, 1))  # NCHW -> NHWC
    x = conv_bn(x, params["stem"], stride=1, pad=1, relu=True)
    for bp in params["layer1"]:
        x = basic_block(x, bp, stride=1)
    x = basic_block(x, params["layer2"][0], stride=2)
    x = basic_block(x, params["layer3"][0], stride=2)
    n, h, w, c = x.shape

    # enc(x) global-avg-pool + .view(-1, feat_dim) + projector (final_norm=True)
    # + projection_cls head, all fused into one tiny Pallas kernel.
    y = fused_tail(x.reshape(n, h * w, c),
                   params["proj"], params["proj_final_norm"], params["head"])
    return y


if __name__ == "__main__":
    root = jax.random.PRNGKey(0)
    k_in, k_par = jax.random.split(root)

    # PyTorch-style NCHW image batch (small synthetic size)
    x_in = jax.random.normal(k_in, (2, 3, 16, 16), jnp.float32)
    params = make_params(k_par)

    y = jax.jit(resnet_forward)(params, x_in)
    y = jax.block_until_ready(y)
    assert y.shape == (2, HEAD_DIM), y.shape
    assert jnp.all(jnp.isfinite(y))
    print("KERNEL_OK")
</pallas_src>

<mosaic_0001>
module attributes {stable_mosaic.version = 11 : i64} {
  func.func @_mm_kernel(%arg0: i32, %arg1: i32, %arg2: i32, %arg3: memref<512x128xbf16, #tpu.memory_space<vmem>>, %arg4: memref<128x128xbf16, #tpu.memory_space<vmem>>, %arg5: memref<1x128xf32, #tpu.memory_space<vmem>>, %arg6: memref<1x128xf32, #tpu.memory_space<vmem>>, %arg7: memref<512x128xbf16, #tpu.memory_space<vmem>>, %arg8: memref<512x128xf32, #tpu.memory_space<vmem>>) attributes {dimension_semantics = [#tpu.dimension_semantics<parallel>, #tpu.dimension_semantics<parallel>, #tpu.dimension_semantics<arbitrary>], iteration_bounds = array<i64: 1, 1, 1>, scalar_prefetch = 0 : i64, scratch_operands = 1 : i64, tpu.core_type = #tpu.core_type<tc>, window_params = [{transform_indices = @transform_0, window_bounds = array<i64: 512, 128>}, {transform_indices = @transform_1, window_bounds = array<i64: 128, 128>}, {transform_indices = @transform_2, window_bounds = array<i64: 1, 128>}, {transform_indices = @transform_3, window_bounds = array<i64: 1, 128>}, {transform_indices = @transform_4, window_bounds = array<i64: 512, 128>}]} {
    %c0_i32 = arith.constant 0 : i32
    %0 = arith.cmpi eq, %arg2, %c0_i32 : i32
    %1 = arith.extui %0 : i1 to i32
    %c0_i32_0 = arith.constant 0 : i32
    %2 = arith.cmpi ne, %1, %c0_i32_0 : i32
    scf.if %2 {
      %cst_10 = arith.constant 0.000000e+00 : f32
      %12 = vector.broadcast %cst_10 : f32 to vector<512x128xf32>
      %c0_11 = arith.constant 0 : index
      %c0_12 = arith.constant 0 : index
      %13 = vector.load %arg8[%c0_11, %c0_12] : memref<512x128xf32, #tpu.memory_space<vmem>>, vector<512x128xf32>
      tpu.vector_store %arg8[%c0_11, %c0_12], %12 {strides = array<i32>} : memref<512x128xf32, #tpu.memory_space<vmem>>, vector<512x128xf32>,
    } else {
    }
    %c0 = arith.constant 0 : index
    %c0_1 = arith.constant 0 : index
    %3 = vector.load %arg8[%c0, %c0_1] : memref<512x128xf32, #tpu.memory_space<vmem>>, vector<512x128xf32>
    %c0_2 = arith.constant 0 : index
    %c0_3 = arith.constant 0 : index
    %4 = vector.load %arg3[%c0_2, %c0_3] : memref<512x128xbf16, #tpu.memory_space<vmem>>, vector<512x128xbf16>
    %c0_4 = arith.constant 0 : index
    %c0_5 = arith.constant 0 : index
    %5 = vector.load %arg4[%c0_4, %c0_5] : memref<128x128xbf16, #tpu.memory_space<vmem>>, vector<128x128xbf16>
    %cst = arith.constant dense<0.000000e+00> : vector<512x128xf32>
    %6 = tpu.matmul %4, %5, %cst {dimension_numbers = #tpu.dot_dimension_numbers<[1], [0], [0], [1], [0, 0, 1, 1], [], []>} : vector<512x128xbf16>, vector<128x128xbf16>, vector<512x128xf32> -> vector<512x128xf32>
    %7 = arith.addf %3, %6 : vector<512x128xf32>
    %c0_6 = arith.constant 0 : index
    %c0_7 = arith.constant 0 : index
    %8 = vector.load %arg8[%c0_6, %c0_7] : memref<512x128xf32, #tpu.memory_space<vmem>>, vector<512x128xf32>
    tpu.vector_store %arg8[%c0_6, %c0_7], %7 {strides = array<i32>} : memref<512x128xf32, #tpu.memory_space<vmem>>, vector<512x128xf32>,
    %c0_i32_8 = arith.constant 0 : i32
    %9 = arith.cmpi eq, %arg2, %c0_i32_8 : i32
    %10 = arith.extui %9 : i1 to i32
    %c0_i32_9 = arith.constant 0 : i32
    %11 = arith.cmpi ne, %10, %c0_i32_9 : i32
    scf.if %11 {
      %c0_10 = arith.constant 0 : index
      %c0_11 = arith.constant 0 : index
      %12 = vector.load %arg8[%c0_10, %c0_11] : memref<512x128xf32, #tpu.memory_space<vmem>>, vector<512x128xf32>
      %c0_12 = arith.constant 0 : index
      %c0_13 = arith.constant 0 : index
      %13 = vector.load %arg5[%c0_12, %c0_13] : memref<1x128xf32, #tpu.memory_space<vmem>>, vector<1x128xf32>
      %14 = vector.broadcast %13 : vector<1x128xf32> to vector<512x128xf32>
      %15 = arith.mulf %12, %14 : vector<512x128xf32>
      %c0_14 = arith.constant 0 : index
      %c0_15 = arith.constant 0 : index
      %16 = vector.load %arg6[%c0_14, %c0_15] : memref<1x128xf32, #tpu.memory_space<vmem>>, vector<1x128xf32>
      %17 = vector.broadcast %16 : vector<1x128xf32> to vector<512x128xf32>
      %18 = arith.addf %15, %17 : vector<512x128xf32>
      %cst_16 = arith.constant 0.000000e+00 : f32
      %19 = vector.broadcast %cst_16 : f32 to vector<512x128xf32>
      %20 = arith.maximumf %18, %19 : vector<512x128xf32>
      %21 = arith.truncf %20 : vector<512x128xf32> to vector<512x128xbf16>
      %c0_17 = arith.constant 0 : index
      %c0_18 = arith.constant 0 : index
      %22 = vector.load %arg7[%c0_17, %c0_18] : memref<512x128xbf16, #tpu.memory_space<vmem>>, vector<512x128xbf16>
      tpu.vector_store %arg7[%c0_17, %c0_18], %21 {strides = array<i32>} : memref<512x128xbf16, #tpu.memory_space<vmem>>, vector<512x128xbf16>,
    } else {
    }
    return
  }
  func.func @transform_0(%arg0: i32, %arg1: i32, %arg2: i32) -> (i32, i32) {
    %c0_i32 = arith.constant 0 : i32
    return %arg0, %arg2 : i32, i32
  }
  func.func @transform_1(%arg0: i32, %arg1: i32, %arg2: i32) -> (i32, i32) {
    %c0_i32 = arith.constant 0 : i32
    return %arg2, %arg1 : i32, i32
  }
  func.func @transform_2(%arg0: i32, %arg1: i32, %arg2: i32) -> (i32, i32) {
    %c0_i32 = arith.constant 0 : i32
    %c0_i32_0 = arith.constant 0 : i32
    return %c0_i32, %arg1 : i32, i32
  }
  func.func @transform_3(%arg0: i32, %arg1: i32, %arg2: i32) -> (i32, i32) {
    %c0_i32 = arith.constant 0 : i32
    %c0_i32_0 = arith.constant 0 : i32
    return %c0_i32, %arg1 : i32, i32
  }
  func.func @transform_4(%arg0: i32, %arg1: i32, %arg2: i32) -> (i32, i32) {
    %c0_i32 = arith.constant 0 : i32
    return %arg0, %arg1 : i32, i32
  }
}

module attributes {stable_mosaic.version = 11 : i64} {
  func.func @_mm_kernel(%arg0: i32, %arg1: i32, %arg2: i32, %arg3: memref<512x256xbf16, #tpu.memory_space<vmem>>, %arg4: memref<256x128xbf16, #tpu.memory_space<vmem>>, %arg5: memref<1x128xf32, #tpu.memory_space<vmem>>, %arg6: memref<1x128xf32, #tpu.memory_space<vmem>>, %arg7: memref<512x128xbf16, #tpu.memory_space<vmem>>, %arg8: memref<512x128xbf16, #tpu.memory_space<vmem>>, %arg9: memref<512x128xf32, #tpu.memory_space<vmem>>) attributes {dimension_semantics = [#tpu.dimension_semantics<parallel>, #tpu.dimension_semantics<parallel>, #tpu.dimension_semantics<arbitrary>], iteration_bounds = array<i64: 1, 1, 1>, scalar_prefetch = 0 : i64, scratch_operands = 1 : i64, tpu.core_type = #tpu.core_type<tc>, window_params = [{transform_indices = @transform_0, window_bounds = array<i64: 512, 256>}, {transform_indices = @transform_1, window_bounds = array<i64: 256, 128>}, {transform_indices = @transform_2, window_bounds = array<i64: 1, 128>}, {transform_indices = @transform_3, window_bounds = array<i64: 1, 128>}, {transform_indices = @transform_4, window_bounds = array<i64: 512, 128>}, {transform_indices = @transform_5, window_bounds = array<i64: 512, 128>}]} {
    %c0_i32 = arith.constant 0 : i32
    %0 = arith.cmpi eq, %arg2, %c0_i32 : i32
    %1 = arith.extui %0 : i1 to i32
    %c0_i32_0 = arith.constant 0 : i32
    %2 = arith.cmpi ne, %1, %c0_i32_0 : i32
    scf.if %2 {
      %cst_10 = arith.constant 0.000000e+00 : f32
      %12 = vector.broadcast %cst_10 : f32 to vector<512x128xf32>
      %c0_11 = arith.constant 0 : index
      %c0_12 = arith.constant 0 : index
      %13 = vector.load %arg9[%c0_11, %c0_12] : memref<512x128xf32, #tpu.memory_space<vmem>>, vector<512x128xf32>
      tpu.vector_store %arg9[%c0_11, %c0_12], %12 {strides = array<i32>} : memref<512x128xf32, #tpu.memory_space<vmem>>, vector<512x128xf32>,
    } else {
    }
    %c0 = arith.constant 0 : index
    %c0_1 = arith.constant 0 : index
    %3 = vector.load %arg9[%c0, %c0_1] : memref<512x128xf32, #tpu.memory_space<vmem>>, vector<512x128xf32>
    %c0_2 = arith.constant 0 : index
    %c0_3 = arith.constant 0 : index
    %4 = vector.load %arg3[%c0_2, %c0_3] : memref<512x256xbf16, #tpu.memory_space<vmem>>, vector<512x256xbf16>
    %c0_4 = arith.constant 0 : index
    %c0_5 = arith.constant 0 : index
    %5 = vector.load %arg4[%c0_4, %c0_5] : memref<256x128xbf16, #tpu.memory_space<vmem>>, vector<256x128xbf16>
    %cst = arith.constant dense<0.000000e+00> : vector<512x128xf32>
    %6 = tpu.matmul %4, %5, %cst {dimension_numbers = #tpu.dot_dimension_numbers<[1], [0], [0], [1], [0, 0, 1, 1], [], []>} : vector<512x256xbf16>, vector<256x128xbf16>, vector<512x128xf32> -> vector<512x128xf32>
    %7 = arith.addf %3, %6 : vector<512x128xf32>
    %c0_6 = arith.constant 0 : index
    %c0_7 = arith.constant 0 : index
    %8 = vector.load %arg9[%c0_6, %c0_7] : memref<512x128xf32, #tpu.memory_space<vmem>>, vector<512x128xf32>
    tpu.vector_store %arg9[%c0_6, %c0_7], %7 {strides = array<i32>} : memref<512x128xf32, #tpu.memory_space<vmem>>, vector<512x128xf32>,
    %c0_i32_8 = arith.constant 0 : i32
    %9 = arith.cmpi eq, %arg2, %c0_i32_8 : i32
    %10 = arith.extui %9 : i1 to i32
    %c0_i32_9 = arith.constant 0 : i32
    %11 = arith.cmpi ne, %10, %c0_i32_9 : i32
    scf.if %11 {
      %c0_10 = arith.constant 0 : index
      %c0_11 = arith.constant 0 : index
      %12 = vector.load %arg9[%c0_10, %c0_11] : memref<512x128xf32, #tpu.memory_space<vmem>>, vector<512x128xf32>
      %c0_12 = arith.constant 0 : index
      %c0_13 = arith.constant 0 : index
      %13 = vector.load %arg5[%c0_12, %c0_13] : memref<1x128xf32, #tpu.memory_space<vmem>>, vector<1x128xf32>
      %14 = vector.broadcast %13 : vector<1x128xf32> to vector<512x128xf32>
      %15 = arith.mulf %12, %14 : vector<512x128xf32>
      %c0_14 = arith.constant 0 : index
      %c0_15 = arith.constant 0 : index
      %16 = vector.load %arg6[%c0_14, %c0_15] : memref<1x128xf32, #tpu.memory_space<vmem>>, vector<1x128xf32>
      %17 = vector.broadcast %16 : vector<1x128xf32> to vector<512x128xf32>
      %18 = arith.addf %15, %17 : vector<512x128xf32>
      %c0_16 = arith.constant 0 : index
      %c0_17 = arith.constant 0 : index
      %19 = vector.load %arg7[%c0_16, %c0_17] : memref<512x128xbf16, #tpu.memory_space<vmem>>, vector<512x128xbf16>
      %20 = arith.extf %19 : vector<512x128xbf16> to vector<512x128xf32>
      %21 = arith.addf %18, %20 : vector<512x128xf32>
      %cst_18 = arith.constant 0.000000e+00 : f32
      %22 = vector.broadcast %cst_18 : f32 to vector<512x128xf32>
      %23 = arith.maximumf %21, %22 : vector<512x128xf32>
      %24 = arith.truncf %23 : vector<512x128xf32> to vector<512x128xbf16>
      %c0_19 = arith.constant 0 : index
      %c0_20 = arith.constant 0 : index
      %25 = vector.load %arg8[%c0_19, %c0_20] : memref<512x128xbf16, #tpu.memory_space<vmem>>, vector<512x128xbf16>
      tpu.vector_store %arg8[%c0_19, %c0_20], %24 {strides = array<i32>} : memref<512x128xbf16, #tpu.memory_space<vmem>>, vector<512x128xbf16>,
    } else {
    }
    return
  }
  func.func @transform_0(%arg0: i32, %arg1: i32, %arg2: i32) -> (i32, i32) {
    %c0_i32 = arith.constant 0 : i32
    return %arg0, %arg2 : i32, i32
  }
  func.func @transform_1(%arg0: i32, %arg1: i32, %arg2: i32) -> (i32, i32) {
    %c0_i32 = arith.constant 0 : i32
    return %arg2, %arg1 : i32, i32
  }
  func.func @transform_2(%arg0: i32, %arg1: i32, %arg2: i32) -> (i32, i32) {
    %c0_i32 = arith.constant 0 : i32
    %c0_i32_0 = arith.constant 0 : i32
    return %c0_i32, %arg1 : i32, i32
  }
  func.func @transform_3(%arg0: i32, %arg1: i32, %arg2: i32) -> (i32, i32) {
    %c0_i32 = arith.constant 0 : i32
    %c0_i32_0 = arith.constant 0 : i32
    return %c0_i32, %arg1 : i32, i32
  }
  func.func @transform_4(%arg0: i32, %arg1: i32, %arg2: i32) -> (i32, i32) {
    %c0_i32 = arith.constant 0 : i32
    return %arg0, %arg1 : i32, i32
  }
  func.func @transform_5(%arg0: i32, %arg1: i32, %arg2: i32) -> (i32, i32) {
    %c0_i32 = arith.constant 0 : i32
    return %arg0, %arg1 : i32, i32
  }
}

module attributes {stable_mosaic.version = 11 : i64} {
  func.func @_mm_kernel(%arg0: i32, %arg1: i32, %arg2: i32, %arg3: memref<512x256xbf16, #tpu.memory_space<vmem>>, %arg4: memref<256x128xbf16, #tpu.memory_space<vmem>>, %arg5: memref<1x128xf32, #tpu.memory_space<vmem>>, %arg6: memref<1x128xf32, #tpu.memory_space<vmem>>, %arg7: memref<512x128xbf16, #tpu.memory_space<vmem>>, %arg8: memref<512x128xf32, #tpu.memory_space<vmem>>) attributes {dimension_semantics = [#tpu.dimension_semantics<parallel>, #tpu.dimension_semantics<parallel>, #tpu.dimension_semantics<arbitrary>], iteration_bounds = array<i64: 1, 1, 1>, scalar_prefetch = 0 : i64, scratch_operands = 1 : i64, tpu.core_type = #tpu.core_type<tc>, window_params = [{transform_indices = @transform_0, window_bounds = array<i64: 512, 256>}, {transform_indices = @transform_1, window_bounds = array<i64: 256, 128>}, {transform_indices = @transform_2, window_bounds = array<i64: 1, 128>}, {transform_indices = @transform_3, window_bounds = array<i64: 1, 128>}, {transform_indices = @transform_4, window_bounds = array<i64: 512, 128>}]} {
    %c0_i32 = arith.constant 0 : i32
    %0 = arith.cmpi eq, %arg2, %c0_i32 : i32
    %1 = arith.extui %0 : i1 to i32
    %c0_i32_0 = arith.constant 0 : i32
    %2 = arith.cmpi ne, %1, %c0_i32_0 : i32
    scf.if %2 {
      %cst_10 = arith.constant 0.000000e+00 : f32
      %12 = vector.broadcast %cst_10 : f32 to vector<512x128xf32>
      %c0_11 = arith.constant 0 : index
      %c0_12 = arith.constant 0 : index
      %13 = vector.load %arg8[%c0_11, %c0_12] : memref<512x128xf32, #tpu.memory_space<vmem>>, vector<512x128xf32>
      tpu.vector_store %arg8[%c0_11, %c0_12], %12 {strides = array<i32>} : memref<512x128xf32, #tpu.memory_space<vmem>>, vector<512x128xf32>,
    } else {
    }
    %c0 = arith.constant 0 : index
    %c0_1 = arith.constant 0 : index
    %3 = vector.load %arg8[%c0, %c0_1] : memref<512x128xf32, #tpu.memory_space<vmem>>, vector<512x128xf32>
    %c0_2 = arith.constant 0 : index
    %c0_3 = arith.constant 0 : index
    %4 = vector.load %arg3[%c0_2, %c0_3] : memref<512x256xbf16, #tpu.memory_space<vmem>>, vector<512x256xbf16>
    %c0_4 = arith.constant 0 : index
    %c0_5 = arith.constant 0 : index
    %5 = vector.load %arg4[%c0_4, %c0_5] : memref<256x128xbf16, #tpu.memory_space<vmem>>, vector<256x128xbf16>
    %cst = arith.constant dense<0.000000e+00> : vector<512x128xf32>
    %6 = tpu.matmul %4, %5, %cst {dimension_numbers = #tpu.dot_dimension_numbers<[1], [0], [0], [1], [0, 0, 1, 1], [], []>} : vector<512x256xbf16>, vector<256x128xbf16>, vector<512x128xf32> -> vector<512x128xf32>
    %7 = arith.addf %3, %6 : vector<512x128xf32>
    %c0_6 = arith.constant 0 : index
    %c0_7 = arith.constant 0 : index
    %8 = vector.load %arg8[%c0_6, %c0_7] : memref<512x128xf32, #tpu.memory_space<vmem>>, vector<512x128xf32>
    tpu.vector_store %arg8[%c0_6, %c0_7], %7 {strides = array<i32>} : memref<512x128xf32, #tpu.memory_space<vmem>>, vector<512x128xf32>,
    %c0_i32_8 = arith.constant 0 : i32
    %9 = arith.cmpi eq, %arg2, %c0_i32_8 : i32
    %10 = arith.extui %9 : i1 to i32
    %c0_i32_9 = arith.constant 0 : i32
    %11 = arith.cmpi ne, %10, %c0_i32_9 : i32
    scf.if %11 {
      %c0_10 = arith.constant 0 : index
      %c0_11 = arith.constant 0 : index
      %12 = vector.load %arg8[%c0_10, %c0_11] : memref<512x128xf32, #tpu.memory_space<vmem>>, vector<512x128xf32>
      %c0_12 = arith.constant 0 : index
      %c0_13 = arith.constant 0 : index
      %13 = vector.load %arg5[%c0_12, %c0_13] : memref<1x128xf32, #tpu.memory_space<vmem>>, vector<1x128xf32>
      %14 = vector.broadcast %13 : vector<1x128xf32> to vector<512x128xf32>
      %15 = arith.mulf %12, %14 : vector<512x128xf32>
      %c0_14 = arith.constant 0 : index
      %c0_15 = arith.constant 0 : index
      %16 = vector.load %arg6[%c0_14, %c0_15] : memref<1x128xf32, #tpu.memory_space<vmem>>, vector<1x128xf32>
      %17 = vector.broadcast %16 : vector<1x128xf32> to vector<512x128xf32>
      %18 = arith.addf %15, %17 : vector<512x128xf32>
      %cst_16 = arith.constant 0.000000e+00 : f32
      %19 = vector.broadcast %cst_16 : f32 to vector<512x128xf32>
      %20 = arith.maximumf %18, %19 : vector<512x128xf32>
      %21 = arith.truncf %20 : vector<512x128xf32> to vector<512x128xbf16>
      %c0_17 = arith.constant 0 : index
      %c0_18 = arith.constant 0 : index
      %22 = vector.load %arg7[%c0_17, %c0_18] : memref<512x128xbf16, #tpu.memory_space<vmem>>, vector<512x128xbf16>
      tpu.vector_store %arg7[%c0_17, %c0_18], %21 {strides = array<i32>} : memref<512x128xbf16, #tpu.memory_space<vmem>>, vector<512x128xbf16>,
    } else {
    }
    return
  }
  func.func @transform_0(%arg0: i32, %arg1: i32, %arg2: i32) -> (i32, i32) {
    %c0_i32 = arith.constant 0 : i32
    return %arg0, %arg2 : i32, i32
  }
  func.func @transform_1(%arg0: i32, %arg1: i32, %arg2: i32) -> (i32, i32) {
    %c0_i32 = arith.constant 0 : i32
    return %arg2, %arg1 : i32, i32
  }
  func.func @transform_2(%arg0: i32, %arg1: i32, %arg2: i32) -> (i32, i32) {
    %c0_i32 = arith.constant 0 : i32
    %c0_i32_0 = arith.constant 0 : i32
    return %c0_i32, %arg1 : i32, i32
  }
  func.func @transform_3(%arg0: i32, %arg1: i32, %arg2: i32) -> (i32, i32) {
    %c0_i32 = arith.constant 0 : i32
    %c0_i32_0 = arith.constant 0 : i32
    return %c0_i32, %arg1 : i32, i32
  }
  func.func @transform_4(%arg0: i32, %arg1: i32, %arg2: i32) -> (i32, i32) {
    %c0_i32 = arith.constant 0 : i32
    return %arg0, %arg1 : i32, i32
  }
}

module attributes {stable_mosaic.version = 11 : i64} {
  func.func @_mm_kernel(%arg0: i32, %arg1: i32, %arg2: i32, %arg3: memref<128x256xbf16, #tpu.memory_space<vmem>>, %arg4: memref<256x128xbf16, #tpu.memory_space<vmem>>, %arg5: memref<1x128xf32, #tpu.memory_space<vmem>>, %arg6: memref<1x128xf32, #tpu.memory_space<vmem>>, %arg7: memref<128x128xbf16, #tpu.memory_space<vmem>>, %arg8: memref<128x128xf32, #tpu.memory_space<vmem>>) attributes {dimension_semantics = [#tpu.dimension_semantics<parallel>, #tpu.dimension_semantics<parallel>, #tpu.dimension_semantics<arbitrary>], iteration_bounds = array<i64: 1, 1, 1>, scalar_prefetch = 0 : i64, scratch_operands = 1 : i64, tpu.core_type = #tpu.core_type<tc>, window_params = [{transform_indices = @transform_0, window_bounds = array<i64: 128, 256>}, {transform_indices = @transform_1, window_bounds = array<i64: 256, 128>}, {transform_indices = @transform_2, window_bounds = array<i64: 1, 128>}, {transform_indices = @transform_3, window_bounds = array<i64: 1, 128>}, {transform_indices = @transform_4, window_bounds = array<i64: 128, 128>}]} {
    %c0_i32 = arith.constant 0 : i32
    %0 = arith.cmpi eq, %arg2, %c0_i32 : i32
    %1 = arith.extui %0 : i1 to i32
    %c0_i32_0 = arith.constant 0 : i32
    %2 = arith.cmpi ne, %1, %c0_i32_0 : i32
    scf.if %2 {
      %cst_10 = arith.constant 0.000000e+00 : f32
      %12 = vector.broadcast %cst_10 : f32 to vector<128x128xf32>
      %c0_11 = arith.constant 0 : index
      %c0_12 = arith.constant 0 : index
      %13 = vector.load %arg8[%c0_11, %c0_12] : memref<128x128xf32, #tpu.memory_space<vmem>>, vector<128x128xf32>
      tpu.vector_store %arg8[%c0_11, %c0_12], %12 {strides = array<i32>} : memref<128x128xf32, #tpu.memory_space<vmem>>, vector<128x128xf32>,
    } else {
    }
    %c0 = arith.constant 0 : index
    %c0_1 = arith.constant 0 : index
    %3 = vector.load %arg8[%c0, %c0_1] : memref<128x128xf32, #tpu.memory_space<vmem>>, vector<128x128xf32>
    %c0_2 = arith.constant 0 : index
    %c0_3 = arith.constant 0 : index
    %4 = vector.load %arg3[%c0_2, %c0_3] : memref<128x256xbf16, #tpu.memory_space<vmem>>, vector<128x256xbf16>
    %c0_4 = arith.constant 0 : index
    %c0_5 = arith.constant 0 : index
    %5 = vector.load %arg4[%c0_4, %c0_5] : memref<256x128xbf16, #tpu.memory_space<vmem>>, vector<256x128xbf16>
    %cst = arith.constant dense<0.000000e+00> : vector<128x128xf32>
    %6 = tpu.matmul %4, %5, %cst {dimension_numbers = #tpu.dot_dimension_numbers<[1], [0], [0], [1], [0, 0, 1, 1], [], []>} : vector<128x256xbf16>, vector<256x128xbf16>, vector<128x128xf32> -> vector<128x128xf32>
    %7 = arith.addf %3, %6 : vector<128x128xf32>
    %c0_6 = arith.constant 0 : index
    %c0_7 = arith.constant 0 : index
    %8 = vector.load %arg8[%c0_6, %c0_7] : memref<128x128xf32, #tpu.memory_space<vmem>>, vector<128x128xf32>
    tpu.vector_store %arg8[%c0_6, %c0_7], %7 {strides = array<i32>} : memref<128x128xf32, #tpu.memory_space<vmem>>, vector<128x128xf32>,
    %c0_i32_8 = arith.constant 0 : i32
    %9 = arith.cmpi eq, %arg2, %c0_i32_8 : i32
    %10 = arith.extui %9 : i1 to i32
    %c0_i32_9 = arith.constant 0 : i32
    %11 = arith.cmpi ne, %10, %c0_i32_9 : i32
    scf.if %11 {
      %c0_10 = arith.constant 0 : index
      %c0_11 = arith.constant 0 : index
      %12 = vector.load %arg8[%c0_10, %c0_11] : memref<128x128xf32, #tpu.memory_space<vmem>>, vector<128x128xf32>
      %c0_12 = arith.constant 0 : index
      %c0_13 = arith.constant 0 : index
      %13 = vector.load %arg5[%c0_12, %c0_13] : memref<1x128xf32, #tpu.memory_space<vmem>>, vector<1x128xf32>
      %14 = vector.broadcast %13 : vector<1x128xf32> to vector<128x128xf32>
      %15 = arith.mulf %12, %14 : vector<128x128xf32>
      %c0_14 = arith.constant 0 : index
      %c0_15 = arith.constant 0 : index
      %16 = vector.load %arg6[%c0_14, %c0_15] : memref<1x128xf32, #tpu.memory_space<vmem>>, vector<1x128xf32>
      %17 = vector.broadcast %16 : vector<1x128xf32> to vector<128x128xf32>
      %18 = arith.addf %15, %17 : vector<128x128xf32>
      %cst_16 = arith.constant 0.000000e+00 : f32
      %19 = vector.broadcast %cst_16 : f32 to vector<128x128xf32>
      %20 = arith.maximumf %18, %19 : vector<128x128xf32>
      %21 = arith.truncf %20 : vector<128x128xf32> to vector<128x128xbf16>
      %c0_17 = arith.constant 0 : index
      %c0_18 = arith.constant 0 : index
      %22 = vector.load %arg7[%c0_17, %c0_18] : memref<128x128xbf16, #tpu.memory_space<vmem>>, vector<128x128xbf16>
      tpu.vector_store %arg7[%c0_17, %c0_18], %21 {strides = array<i32>} : memref<128x128xbf16, #tpu.memory_space<vmem>>, vector<128x128xbf16>,
    } else {
    }
    return
  }
  func.func @transform_0(%arg0: i32, %arg1: i32, %arg2: i32) -> (i32, i32) {
    %c0_i32 = arith.constant 0 : i32
    return %arg0, %arg2 : i32, i32
  }
  func.func @transform_1(%arg0: i32, %arg1: i32, %arg2: i32) -> (i32, i32) {
    %c0_i32 = arith.constant 0 : i32
    return %arg2, %arg1 : i32, i32
  }
  func.func @transform_2(%arg0: i32, %arg1: i32, %arg2: i32) -> (i32, i32) {
    %c0_i32 = arith.constant 0 : i32
    %c0_i32_0 = arith.constant 0 : i32
    return %c0_i32, %arg1 : i32, i32
  }
  func.func @transform_3(%arg0: i32, %arg1: i32, %arg2: i32) -> (i32, i32) {
    %c0_i32 = arith.constant 0 : i32
    %c0_i32_0 = arith.constant 0 : i32
    return %c0_i32, %arg1 : i32, i32
  }
  func.func @transform_4(%arg0: i32, %arg1: i32, %arg2: i32) -> (i32, i32) {
    %c0_i32 = arith.constant 0 : i32
    return %arg0, %arg1 : i32, i32
  }
}

module attributes {stable_mosaic.version = 11 : i64} {
  func.func @_mm_kernel(%arg0: i32, %arg1: i32, %arg2: i32, %arg3: memref<128x128xbf16, #tpu.memory_space<vmem>>, %arg4: memref<128x128xbf16, #tpu.memory_space<vmem>>, %arg5: memref<1x128xf32, #tpu.memory_space<vmem>>, %arg6: memref<1x128xf32, #tpu.memory_space<vmem>>, %arg7: memref<128x128xbf16, #tpu.memory_space<vmem>>, %arg8: memref<128x128xf32, #tpu.memory_space<vmem>>) attributes {dimension_semantics = [#tpu.dimension_semantics<parallel>, #tpu.dimension_semantics<parallel>, #tpu.dimension_semantics<arbitrary>], iteration_bounds = array<i64: 1, 1, 1>, scalar_prefetch = 0 : i64, scratch_operands = 1 : i64, tpu.core_type = #tpu.core_type<tc>, window_params = [{transform_indices = @transform_0, window_bounds = array<i64: 128, 128>}, {transform_indices = @transform_1, window_bounds = array<i64: 128, 128>}, {transform_indices = @transform_2, window_bounds = array<i64: 1, 128>}, {transform_indices = @transform_3, window_bounds = array<i64: 1, 128>}, {transform_indices = @transform_4, window_bounds = array<i64: 128, 128>}]} {
    %c0_i32 = arith.constant 0 : i32
    %0 = arith.cmpi eq, %arg2, %c0_i32 : i32
    %1 = arith.extui %0 : i1 to i32
    %c0_i32_0 = arith.constant 0 : i32
    %2 = arith.cmpi ne, %1, %c0_i32_0 : i32
    scf.if %2 {
      %cst_10 = arith.constant 0.000000e+00 : f32
      %12 = vector.broadcast %cst_10 : f32 to vector<128x128xf32>
      %c0_11 = arith.constant 0 : index
      %c0_12 = arith.constant 0 : index
      %13 = vector.load %arg8[%c0_11, %c0_12] : memref<128x128xf32, #tpu.memory_space<vmem>>, vector<128x128xf32>
      tpu.vector_store %arg8[%c0_11, %c0_12], %12 {strides = array<i32>} : memref<128x128xf32, #tpu.memory_space<vmem>>, vector<128x128xf32>,
    } else {
    }
    %c0 = arith.constant 0 : index
    %c0_1 = arith.constant 0 : index
    %3 = vector.load %arg8[%c0, %c0_1] : memref<128x128xf32, #tpu.memory_space<vmem>>, vector<128x128xf32>
    %c0_2 = arith.constant 0 : index
    %c0_3 = arith.constant 0 : index
    %4 = vector.load %arg3[%c0_2, %c0_3] : memref<128x128xbf16, #tpu.memory_space<vmem>>, vector<128x128xbf16>
    %c0_4 = arith.constant 0 : index
    %c0_5 = arith.constant 0 : index
    %5 = vector.load %arg4[%c0_4, %c0_5] : memref<128x128xbf16, #tpu.memory_space<vmem>>, vector<128x128xbf16>
    %cst = arith.constant dense<0.000000e+00> : vector<128x128xf32>
    %6 = tpu.matmul %4, %5, %cst {dimension_numbers = #tpu.dot_dimension_numbers<[1], [0], [0], [1], [0, 0, 1, 1], [], []>} : vector<128x128xbf16>, vector<128x128xbf16>, vector<128x128xf32> -> vector<128x128xf32>
    %7 = arith.addf %3, %6 : vector<128x128xf32>
    %c0_6 = arith.constant 0 : index
    %c0_7 = arith.constant 0 : index
    %8 = vector.load %arg8[%c0_6, %c0_7] : memref<128x128xf32, #tpu.memory_space<vmem>>, vector<128x128xf32>
    tpu.vector_store %arg8[%c0_6, %c0_7], %7 {strides = array<i32>} : memref<128x128xf32, #tpu.memory_space<vmem>>, vector<128x128xf32>,
    %c0_i32_8 = arith.constant 0 : i32
    %9 = arith.cmpi eq, %arg2, %c0_i32_8 : i32
    %10 = arith.extui %9 : i1 to i32
    %c0_i32_9 = arith.constant 0 : i32
    %11 = arith.cmpi ne, %10, %c0_i32_9 : i32
    scf.if %11 {
      %c0_10 = arith.constant 0 : index
      %c0_11 = arith.constant 0 : index
      %12 = vector.load %arg8[%c0_10, %c0_11] : memref<128x128xf32, #tpu.memory_space<vmem>>, vector<128x128xf32>
      %c0_12 = arith.constant 0 : index
      %c0_13 = arith.constant 0 : index
      %13 = vector.load %arg5[%c0_12, %c0_13] : memref<1x128xf32, #tpu.memory_space<vmem>>, vector<1x128xf32>
      %14 = vector.broadcast %13 : vector<1x128xf32> to vector<128x128xf32>
      %15 = arith.mulf %12, %14 : vector<128x128xf32>
      %c0_14 = arith.constant 0 : index
      %c0_15 = arith.constant 0 : index
      %16 = vector.load %arg6[%c0_14, %c0_15] : memref<1x128xf32, #tpu.memory_space<vmem>>, vector<1x128xf32>
      %17 = vector.broadcast %16 : vector<1x128xf32> to vector<128x128xf32>
      %18 = arith.addf %15, %17 : vector<128x128xf32>
      %19 = arith.truncf %18 : vector<128x128xf32> to vector<128x128xbf16>
      %c0_16 = arith.constant 0 : index
      %c0_17 = arith.constant 0 : index
      %20 = vector.load %arg7[%c0_16, %c0_17] : memref<128x128xbf16, #tpu.memory_space<vmem>>, vector<128x128xbf16>
      tpu.vector_store %arg7[%c0_16, %c0_17], %19 {strides = array<i32>} : memref<128x128xbf16, #tpu.memory_space<vmem>>, vector<128x128xbf16>,
    } else {
    }
    return
  }
  func.func @transform_0(%arg0: i32, %arg1: i32, %arg2: i32) -> (i32, i32) {
    %c0_i32 = arith.constant 0 : i32
    return %arg0, %arg2 : i32, i32
  }
  func.func @transform_1(%arg0: i32, %arg1: i32, %arg2: i32) -> (i32, i32) {
    %c0_i32 = arith.constant 0 : i32
    return %arg2, %arg1 : i32, i32
  }
  func.func @transform_2(%arg0: i32, %arg1: i32, %arg2: i32) -> (i32, i32) {
    %c0_i32 = arith.constant 0 : i32
    %c0_i32_0 = arith.constant 0 : i32
    return %c0_i32, %arg1 : i32, i32
  }
  func.func @transform_3(%arg0: i32, %arg1: i32, %arg2: i32) -> (i32, i32) {
    %c0_i32 = arith.constant 0 : i32
    %c0_i32_0 = arith.constant 0 : i32
    return %c0_i32, %arg1 : i32, i32
  }
  func.func @transform_4(%arg0: i32, %arg1: i32, %arg2: i32) -> (i32, i32) {
    %c0_i32 = arith.constant 0 : i32
    return %arg0, %arg1 : i32, i32
  }
}

module attributes {stable_mosaic.version = 11 : i64} {
  func.func @_mm_kernel(%arg0: i32, %arg1: i32, %arg2: i32, %arg3: memref<128x384xbf16, #tpu.memory_space<vmem>>, %arg4: memref<384x128xbf16, #tpu.memory_space<vmem>>, %arg5: memref<1x128xf32, #tpu.memory_space<vmem>>, %arg6: memref<1x128xf32, #tpu.memory_space<vmem>>, %arg7: memref<128x128xbf16, #tpu.memory_space<vmem>>, %arg8: memref<128x128xbf16, #tpu.memory_space<vmem>>, %arg9: memref<128x128xf32, #tpu.memory_space<vmem>>) attributes {dimension_semantics = [#tpu.dimension_semantics<parallel>, #tpu.dimension_semantics<parallel>, #tpu.dimension_semantics<arbitrary>], iteration_bounds = array<i64: 1, 1, 1>, scalar_prefetch = 0 : i64, scratch_operands = 1 : i64, tpu.core_type = #tpu.core_type<tc>, window_params = [{transform_indices = @transform_0, window_bounds = array<i64: 128, 384>}, {transform_indices = @transform_1, window_bounds = array<i64: 384, 128>}, {transform_indices = @transform_2, window_bounds = array<i64: 1, 128>}, {transform_indices = @transform_3, window_bounds = array<i64: 1, 128>}, {transform_indices = @transform_4, window_bounds = array<i64: 128, 128>}, {transform_indices = @transform_5, window_bounds = array<i64: 128, 128>}]} {
    %c0_i32 = arith.constant 0 : i32
    %0 = arith.cmpi eq, %arg2, %c0_i32 : i32
    %1 = arith.extui %0 : i1 to i32
    %c0_i32_0 = arith.constant 0 : i32
    %2 = arith.cmpi ne, %1, %c0_i32_0 : i32
    scf.if %2 {
      %cst_10 = arith.constant 0.000000e+00 : f32
      %12 = vector.broadcast %cst_10 : f32 to vector<128x128xf32>
      %c0_11 = arith.constant 0 : index
      %c0_12 = arith.constant 0 : index
      %13 = vector.load %arg9[%c0_11, %c0_12] : memref<128x128xf32, #tpu.memory_space<vmem>>, vector<128x128xf32>
      tpu.vector_store %arg9[%c0_11, %c0_12], %12 {strides = array<i32>} : memref<128x128xf32, #tpu.memory_space<vmem>>, vector<128x128xf32>,
    } else {
    }
    %c0 = arith.constant 0 : index
    %c0_1 = arith.constant 0 : index
    %3 = vector.load %arg9[%c0, %c0_1] : memref<128x128xf32, #tpu.memory_space<vmem>>, vector<128x128xf32>
    %c0_2 = arith.constant 0 : index
    %c0_3 = arith.constant 0 : index
    %4 = vector.load %arg3[%c0_2, %c0_3] : memref<128x384xbf16, #tpu.memory_space<vmem>>, vector<128x384xbf16>
    %c0_4 = arith.constant 0 : index
    %c0_5 = arith.constant 0 : index
    %5 = vector.load %arg4[%c0_4, %c0_5] : memref<384x128xbf16, #tpu.memory_space<vmem>>, vector<384x128xbf16>
    %cst = arith.constant dense<0.000000e+00> : vector<128x128xf32>
    %6 = tpu.matmul %4, %5, %cst {dimension_numbers = #tpu.dot_dimension_numbers<[1], [0], [0], [1], [0, 0, 1, 1], [], []>} : vector<128x384xbf16>, vector<384x128xbf16>, vector<128x128xf32> -> vector<128x128xf32>
    %7 = arith.addf %3, %6 : vector<128x128xf32>
    %c0_6 = arith.constant 0 : index
    %c0_7 = arith.constant 0 : index
    %8 = vector.load %arg9[%c0_6, %c0_7] : memref<128x128xf32, #tpu.memory_space<vmem>>, vector<128x128xf32>
    tpu.vector_store %arg9[%c0_6, %c0_7], %7 {strides = array<i32>} : memref<128x128xf32, #tpu.memory_space<vmem>>, vector<128x128xf32>,
    %c0_i32_8 = arith.constant 0 : i32
    %9 = arith.cmpi eq, %arg2, %c0_i32_8 : i32
    %10 = arith.extui %9 : i1 to i32
    %c0_i32_9 = arith.constant 0 : i32
    %11 = arith.cmpi ne, %10, %c0_i32_9 : i32
    scf.if %11 {
      %c0_10 = arith.constant 0 : index
      %c0_11 = arith.constant 0 : index
      %12 = vector.load %arg9[%c0_10, %c0_11] : memref<128x128xf32, #tpu.memory_space<vmem>>, vector<128x128xf32>
      %c0_12 = arith.constant 0 : index
      %c0_13 = arith.constant 0 : index
      %13 = vector.load %arg5[%c0_12, %c0_13] : memref<1x128xf32, #tpu.memory_space<vmem>>, vector<1x128xf32>
      %14 = vector.broadcast %13 : vector<1x128xf32> to vector<128x128xf32>
      %15 = arith.mulf %12, %14 : vector<128x128xf32>
      %c0_14 = arith.constant 0 : index
      %c0_15 = arith.constant 0 : index
      %16 = vector.load %arg6[%c0_14, %c0_15] : memref<1x128xf32, #tpu.memory_space<vmem>>, vector<1x128xf32>
      %17 = vector.broadcast %16 : vector<1x128xf32> to vector<128x128xf32>
      %18 = arith.addf %15, %17 : vector<128x128xf32>
      %c0_16 = arith.constant 0 : index
      %c0_17 = arith.constant 0 : index
      %19 = vector.load %arg7[%c0_16, %c0_17] : memref<128x128xbf16, #tpu.memory_space<vmem>>, vector<128x128xbf16>
      %20 = arith.extf %19 : vector<128x128xbf16> to vector<128x128xf32>
      %21 = arith.addf %18, %20 : vector<128x128xf32>
      %cst_18 = arith.constant 0.000000e+00 : f32
      %22 = vector.broadcast %cst_18 : f32 to vector<128x128xf32>
      %23 = arith.maximumf %21, %22 : vector<128x128xf32>
      %24 = arith.truncf %23 : vector<128x128xf32> to vector<128x128xbf16>
      %c0_19 = arith.constant 0 : index
      %c0_20 = arith.constant 0 : index
      %25 = vector.load %arg8[%c0_19, %c0_20] : memref<128x128xbf16, #tpu.memory_space<vmem>>, vector<128x128xbf16>
      tpu.vector_store %arg8[%c0_19, %c0_20], %24 {strides = array<i32>} : memref<128x128xbf16, #tpu.memory_space<vmem>>, vector<128x128xbf16>,
    } else {
    }
    return
  }
  func.func @transform_0(%arg0: i32, %arg1: i32, %arg2: i32) -> (i32, i32) {
    %c0_i32 = arith.constant 0 : i32
    return %arg0, %arg2 : i32, i32
  }
  func.func @transform_1(%arg0: i32, %arg1: i32, %arg2: i32) -> (i32, i32) {
    %c0_i32 = arith.constant 0 : i32
    return %arg2, %arg1 : i32, i32
  }
  func.func @transform_2(%arg0: i32, %arg1: i32, %arg2: i32) -> (i32, i32) {
    %c0_i32 = arith.constant 0 : i32
    %c0_i32_0 = arith.constant 0 : i32
    return %c0_i32, %arg1 : i32, i32
  }
  func.func @transform_3(%arg0: i32, %arg1: i32, %arg2: i32) -> (i32, i32) {
    %c0_i32 = arith.constant 0 : i32
    %c0_i32_0 = arith.constant 0 : i32
    return %c0_i32, %arg1 : i32, i32
  }
  func.func @transform_4(%arg0: i32, %arg1: i32, %arg2: i32) -> (i32, i32) {
    %c0_i32 = arith.constant 0 : i32
    return %arg0, %arg1 : i32, i32
  }
  func.func @transform_5(%arg0: i32, %arg1: i32, %arg2: i32) -> (i32, i32) {
    %c0_i32 = arith.constant 0 : i32
    return %arg0, %arg1 : i32, i32
  }
}

module attributes {stable_mosaic.version = 11 : i64} {
  func.func @_mm_kernel(%arg0: i32, %arg1: i32, %arg2: i32, %arg3: memref<32x384xbf16, #tpu.memory_space<vmem>>, %arg4: memref<384x128xbf16, #tpu.memory_space<vmem>>, %arg5: memref<1x128xf32, #tpu.memory_space<vmem>>, %arg6: memref<1x128xf32, #tpu.memory_space<vmem>>, %arg7: memref<32x128xbf16, #tpu.memory_space<vmem>>, %arg8: memref<32x128xf32, #tpu.memory_space<vmem>>) attributes {dimension_semantics = [#tpu.dimension_semantics<parallel>, #tpu.dimension_semantics<parallel>, #tpu.dimension_semantics<arbitrary>], iteration_bounds = array<i64: 1, 1, 1>, scalar_prefetch = 0 : i64, scratch_operands = 1 : i64, tpu.core_type = #tpu.core_type<tc>, window_params = [{transform_indices = @transform_0, window_bounds = array<i64: 32, 384>}, {transform_indices = @transform_1, window_bounds = array<i64: 384, 128>}, {transform_indices = @transform_2, window_bounds = array<i64: 1, 128>}, {transform_indices = @transform_3, window_bounds = array<i64: 1, 128>}, {transform_indices = @transform_4, window_bounds = array<i64: 32, 128>}]} {
    %c0_i32 = arith.constant 0 : i32
    %0 = arith.cmpi eq, %arg2, %c0_i32 : i32
    %1 = arith.extui %0 : i1 to i32
    %c0_i32_0 = arith.constant 0 : i32
    %2 = arith.cmpi ne, %1, %c0_i32_0 : i32
    scf.if %2 {
      %cst_10 = arith.constant 0.000000e+00 : f32
      %12 = vector.broadcast %cst_10 : f32 to vector<32x128xf32>
      %c0_11 = arith.constant 0 : index
      %c0_12 = arith.constant 0 : index
      %13 = vector.load %arg8[%c0_11, %c0_12] : memref<32x128xf32, #tpu.memory_space<vmem>>, vector<32x128xf32>
      tpu.vector_store %arg8[%c0_11, %c0_12], %12 {strides = array<i32>} : memref<32x128xf32, #tpu.memory_space<vmem>>, vector<32x128xf32>,
    } else {
    }
    %c0 = arith.constant 0 : index
    %c0_1 = arith.constant 0 : index
    %3 = vector.load %arg8[%c0, %c0_1] : memref<32x128xf32, #tpu.memory_space<vmem>>, vector<32x128xf32>
    %c0_2 = arith.constant 0 : index
    %c0_3 = arith.constant 0 : index
    %4 = vector.load %arg3[%c0_2, %c0_3] : memref<32x384xbf16, #tpu.memory_space<vmem>>, vector<32x384xbf16>
    %c0_4 = arith.constant 0 : index
    %c0_5 = arith.constant 0 : index
    %5 = vector.load %arg4[%c0_4, %c0_5] : memref<384x128xbf16, #tpu.memory_space<vmem>>, vector<384x128xbf16>
    %cst = arith.constant dense<0.000000e+00> : vector<32x128xf32>
    %6 = tpu.matmul %4, %5, %cst {dimension_numbers = #tpu.dot_dimension_numbers<[1], [0], [0], [1], [0, 0, 1, 1], [], []>} : vector<32x384xbf16>, vector<384x128xbf16>, vector<32x128xf32> -> vector<32x128xf32>
    %7 = arith.addf %3, %6 : vector<32x128xf32>
    %c0_6 = arith.constant 0 : index
    %c0_7 = arith.constant 0 : index
    %8 = vector.load %arg8[%c0_6, %c0_7] : memref<32x128xf32, #tpu.memory_space<vmem>>, vector<32x128xf32>
    tpu.vector_store %arg8[%c0_6, %c0_7], %7 {strides = array<i32>} : memref<32x128xf32, #tpu.memory_space<vmem>>, vector<32x128xf32>,
    %c0_i32_8 = arith.constant 0 : i32
    %9 = arith.cmpi eq, %arg2, %c0_i32_8 : i32
    %10 = arith.extui %9 : i1 to i32
    %c0_i32_9 = arith.constant 0 : i32
    %11 = arith.cmpi ne, %10, %c0_i32_9 : i32
    scf.if %11 {
      %c0_10 = arith.constant 0 : index
      %c0_11 = arith.constant 0 : index
      %12 = vector.load %arg8[%c0_10, %c0_11] : memref<32x128xf32, #tpu.memory_space<vmem>>, vector<32x128xf32>
      %c0_12 = arith.constant 0 : index
      %c0_13 = arith.constant 0 : index
      %13 = vector.load %arg5[%c0_12, %c0_13] : memref<1x128xf32, #tpu.memory_space<vmem>>, vector<1x128xf32>
      %14 = vector.broadcast %13 : vector<1x128xf32> to vector<32x128xf32>
      %15 = arith.mulf %12, %14 : vector<32x128xf32>
      %c0_14 = arith.constant 0 : index
      %c0_15 = arith.constant 0 : index
      %16 = vector.load %arg6[%c0_14, %c0_15] : memref<1x128xf32, #tpu.memory_space<vmem>>, vector<1x128xf32>
      %17 = vector.broadcast %16 : vector<1x128xf32> to vector<32x128xf32>
      %18 = arith.addf %15, %17 : vector<32x128xf32>
      %cst_16 = arith.constant 0.000000e+00 : f32
      %19 = vector.broadcast %cst_16 : f32 to vector<32x128xf32>
      %20 = arith.maximumf %18, %19 : vector<32x128xf32>
      %21 = arith.truncf %20 : vector<32x128xf32> to vector<32x128xbf16>
      %c0_17 = arith.constant 0 : index
      %c0_18 = arith.constant 0 : index
      %22 = vector.load %arg7[%c0_17, %c0_18] : memref<32x128xbf16, #tpu.memory_space<vmem>>, vector<32x128xbf16>
      tpu.vector_store %arg7[%c0_17, %c0_18], %21 {strides = array<i32>} : memref<32x128xbf16, #tpu.memory_space<vmem>>, vector<32x128xbf16>,
    } else {
    }
    return
  }
  func.func @transform_0(%arg0: i32, %arg1: i32, %arg2: i32) -> (i32, i32) {
    %c0_i32 = arith.constant 0 : i32
    return %arg0, %arg2 : i32, i32
  }
  func.func @transform_1(%arg0: i32, %arg1: i32, %arg2: i32) -> (i32, i32) {
    %c0_i32 = arith.constant 0 : i32
    return %arg2, %arg1 : i32, i32
  }
  func.func @transform_2(%arg0: i32, %arg1: i32, %arg2: i32) -> (i32, i32) {
    %c0_i32 = arith.constant 0 : i32
    %c0_i32_0 = arith.constant 0 : i32
    return %c0_i32, %arg1 : i32, i32
  }
  func.func @transform_3(%arg0: i32, %arg1: i32, %arg2: i32) -> (i32, i32) {
    %c0_i32 = arith.constant 0 : i32
    %c0_i32_0 = arith.constant 0 : i32
    return %c0_i32, %arg1 : i32, i32
  }
  func.func @transform_4(%arg0: i32, %arg1: i32, %arg2: i32) -> (i32, i32) {
    %c0_i32 = arith.constant 0 : i32
    return %arg0, %arg1 : i32, i32
  }
}

module attributes {stable_mosaic.version = 11 : i64} {
  func.func @_mm_kernel(%arg0: i32, %arg1: i32, %arg2: i32, %arg3: memref<32x128xbf16, #tpu.memory_space<vmem>>, %arg4: memref<128x128xbf16, #tpu.memory_space<vmem>>, %arg5: memref<1x128xf32, #tpu.memory_space<vmem>>, %arg6: memref<1x128xf32, #tpu.memory_space<vmem>>, %arg7: memref<32x128xbf16, #tpu.memory_space<vmem>>, %arg8: memref<32x128xf32, #tpu.memory_space<vmem>>) attributes {dimension_semantics = [#tpu.dimension_semantics<parallel>, #tpu.dimension_semantics<parallel>, #tpu.dimension_semantics<arbitrary>], iteration_bounds = array<i64: 1, 1, 1>, scalar_prefetch = 0 : i64, scratch_operands = 1 : i64, tpu.core_type = #tpu.core_type<tc>, window_params = [{transform_indices = @transform_0, window_bounds = array<i64: 32, 128>}, {transform_indices = @transform_1, window_bounds = array<i64: 128, 128>}, {transform_indices = @transform_2, window_bounds = array<i64: 1, 128>}, {transform_indices = @transform_3, window_bounds = array<i64: 1, 128>}, {transform_indices = @transform_4, window_bounds = array<i64: 32, 128>}]} {
    %c0_i32 = arith.constant 0 : i32
    %0 = arith.cmpi eq, %arg2, %c0_i32 : i32
    %1 = arith.extui %0 : i1 to i32
    %c0_i32_0 = arith.constant 0 : i32
    %2 = arith.cmpi ne, %1, %c0_i32_0 : i32
    scf.if %2 {
      %cst_10 = arith.constant 0.000000e+00 : f32
      %12 = vector.broadcast %cst_10 : f32 to vector<32x128xf32>
      %c0_11 = arith.constant 0 : index
      %c0_12 = arith.constant 0 : index
      %13 = vector.load %arg8[%c0_11, %c0_12] : memref<32x128xf32, #tpu.memory_space<vmem>>, vector<32x128xf32>
      tpu.vector_store %arg8[%c0_11, %c0_12], %12 {strides = array<i32>} : memref<32x128xf32, #tpu.memory_space<vmem>>, vector<32x128xf32>,
    } else {
    }
    %c0 = arith.constant 0 : index
    %c0_1 = arith.constant 0 : index
    %3 = vector.load %arg8[%c0, %c0_1] : memref<32x128xf32, #tpu.memory_space<vmem>>, vector<32x128xf32>
    %c0_2 = arith.constant 0 : index
    %c0_3 = arith.constant 0 : index
    %4 = vector.load %arg3[%c0_2, %c0_3] : memref<32x128xbf16, #tpu.memory_space<vmem>>, vector<32x128xbf16>
    %c0_4 = arith.constant 0 : index
    %c0_5 = arith.constant 0 : index
    %5 = vector.load %arg4[%c0_4, %c0_5] : memref<128x128xbf16, #tpu.memory_space<vmem>>, vector<128x128xbf16>
    %cst = arith.constant dense<0.000000e+00> : vector<32x128xf32>
    %6 = tpu.matmul %4, %5, %cst {dimension_numbers = #tpu.dot_dimension_numbers<[1], [0], [0], [1], [0, 0, 1, 1], [], []>} : vector<32x128xbf16>, vector<128x128xbf16>, vector<32x128xf32> -> vector<32x128xf32>
    %7 = arith.addf %3, %6 : vector<32x128xf32>
    %c0_6 = arith.constant 0 : index
    %c0_7 = arith.constant 0 : index
    %8 = vector.load %arg8[%c0_6, %c0_7] : memref<32x128xf32, #tpu.memory_space<vmem>>, vector<32x128xf32>
    tpu.vector_store %arg8[%c0_6, %c0_7], %7 {strides = array<i32>} : memref<32x128xf32, #tpu.memory_space<vmem>>, vector<32x128xf32>,
    %c0_i32_8 = arith.constant 0 : i32
    %9 = arith.cmpi eq, %arg2, %c0_i32_8 : i32
    %10 = arith.extui %9 : i1 to i32
    %c0_i32_9 = arith.constant 0 : i32
    %11 = arith.cmpi ne, %10, %c0_i32_9 : i32
    scf.if %11 {
      %c0_10 = arith.constant 0 : index
      %c0_11 = arith.constant 0 : index
      %12 = vector.load %arg8[%c0_10, %c0_11] : memref<32x128xf32, #tpu.memory_space<vmem>>, vector<32x128xf32>
      %c0_12 = arith.constant 0 : index
      %c0_13 = arith.constant 0 : index
      %13 = vector.load %arg5[%c0_12, %c0_13] : memref<1x128xf32, #tpu.memory_space<vmem>>, vector<1x128xf32>
      %14 = vector.broadcast %13 : vector<1x128xf32> to vector<32x128xf32>
      %15 = arith.mulf %12, %14 : vector<32x128xf32>
      %c0_14 = arith.constant 0 : index
      %c0_15 = arith.constant 0 : index
      %16 = vector.load %arg6[%c0_14, %c0_15] : memref<1x128xf32, #tpu.memory_space<vmem>>, vector<1x128xf32>
      %17 = vector.broadcast %16 : vector<1x128xf32> to vector<32x128xf32>
      %18 = arith.addf %15, %17 : vector<32x128xf32>
      %19 = arith.truncf %18 : vector<32x128xf32> to vector<32x128xbf16>
      %c0_16 = arith.constant 0 : index
      %c0_17 = arith.constant 0 : index
      %20 = vector.load %arg7[%c0_16, %c0_17] : memref<32x128xbf16, #tpu.memory_space<vmem>>, vector<32x128xbf16>
      tpu.vector_store %arg7[%c0_16, %c0_17], %19 {strides = array<i32>} : memref<32x128xbf16, #tpu.memory_space<vmem>>, vector<32x128xbf16>,
    } else {
    }
    return
  }
  func.func @transform_0(%arg0: i32, %arg1: i32, %arg2: i32) -> (i32, i32) {
    %c0_i32 = arith.constant 0 : i32
    return %arg0, %arg2 : i32, i32
  }
  func.func @transform_1(%arg0: i32, %arg1: i32, %arg2: i32) -> (i32, i32) {
    %c0_i32 = arith.constant 0 : i32
    return %arg2, %arg1 : i32, i32
  }
  func.func @transform_2(%arg0: i32, %arg1: i32, %arg2: i32) -> (i32, i32) {
    %c0_i32 = arith.constant 0 : i32
    %c0_i32_0 = arith.constant 0 : i32
    return %c0_i32, %arg1 : i32, i32
  }
  func.func @transform_3(%arg0: i32, %arg1: i32, %arg2: i32) -> (i32, i32) {
    %c0_i32 = arith.constant 0 : i32
    %c0_i32_0 = arith.constant 0 : i32
    return %c0_i32, %arg1 : i32, i32
  }
  func.func @transform_4(%arg0: i32, %arg1: i32, %arg2: i32) -> (i32, i32) {
    %c0_i32 = arith.constant 0 : i32
    return %arg0, %arg1 : i32, i32
  }
}

module attributes {stable_mosaic.version = 11 : i64} {
  func.func @_mm_kernel(%arg0: i32, %arg1: i32, %arg2: i32, %arg3: memref<32x384xbf16, #tpu.memory_space<vmem>>, %arg4: memref<384x128xbf16, #tpu.memory_space<vmem>>, %arg5: memref<1x128xf32, #tpu.memory_space<vmem>>, %arg6: memref<1x128xf32, #tpu.memory_space<vmem>>, %arg7: memref<32x128xbf16, #tpu.memory_space<vmem>>, %arg8: memref<32x128xbf16, #tpu.memory_space<vmem>>, %arg9: memref<32x128xf32, #tpu.memory_space<vmem>>) attributes {dimension_semantics = [#tpu.dimension_semantics<parallel>, #tpu.dimension_semantics<parallel>, #tpu.dimension_semantics<arbitrary>], iteration_bounds = array<i64: 1, 1, 2>, scalar_prefetch = 0 : i64, scratch_operands = 1 : i64, tpu.core_type = #tpu.core_type<tc>, window_params = [{transform_indices = @transform_0, window_bounds = array<i64: 32, 384>}, {transform_indices = @transform_1, window_bounds = array<i64: 384, 128>}, {transform_indices = @transform_2, window_bounds = array<i64: 1, 128>}, {transform_indices = @transform_3, window_bounds = array<i64: 1, 128>}, {transform_indices = @transform_4, window_bounds = array<i64: 32, 128>}, {transform_indices = @transform_5, window_bounds = array<i64: 32, 128>}]} {
    %c0_i32 = arith.constant 0 : i32
    %0 = arith.cmpi eq, %arg2, %c0_i32 : i32
    %1 = arith.extui %0 : i1 to i32
    %c0_i32_0 = arith.constant 0 : i32
    %2 = arith.cmpi ne, %1, %c0_i32_0 : i32
    scf.if %2 {
      %cst_9 = arith.constant 0.000000e+00 : f32
      %12 = vector.broadcast %cst_9 : f32 to vector<32x128xf32>
      %c0_10 = arith.constant 0 : index
      %c0_11 = arith.constant 0 : index
      %13 = vector.load %arg9[%c0_10, %c0_11] : memref<32x128xf32, #tpu.memory_space<vmem>>, vector<32x128xf32>
      tpu.vector_store %arg9[%c0_10, %c0_11], %12 {strides = array<i32>} : memref<32x128xf32, #tpu.memory_space<vmem>>, vector<32x128xf32>,
    } else {
    }
    %c0 = arith.constant 0 : index
    %c0_1 = arith.constant 0 : index
    %3 = vector.load %arg9[%c0, %c0_1] : memref<32x128xf32, #tpu.memory_space<vmem>>, vector<32x128xf32>
    %c0_2 = arith.constant 0 : index
    %c0_3 = arith.constant 0 : index
    %4 = vector.load %arg3[%c0_2, %c0_3] : memref<32x384xbf16, #tpu.memory_space<vmem>>, vector<32x384xbf16>
    %c0_4 = arith.constant 0 : index
    %c0_5 = arith.constant 0 : index
    %5 = vector.load %arg4[%c0_4, %c0_5] : memref<384x128xbf16, #tpu.memory_space<vmem>>, vector<384x128xbf16>
    %cst = arith.constant dense<0.000000e+00> : vector<32x128xf32>
    %6 = tpu.matmul %4, %5, %cst {dimension_numbers = #tpu.dot_dimension_numbers<[1], [0], [0], [1], [0, 0, 1, 1], [], []>} : vector<32x384xbf16>, vector<384x128xbf16>, vector<32x128xf32> -> vector<32x128xf32>
    %7 = arith.addf %3, %6 : vector<32x128xf32>
    %c0_6 = arith.constant 0 : index
    %c0_7 = arith.constant 0 : index
    %8 = vector.load %arg9[%c0_6, %c0_7] : memref<32x128xf32, #tpu.memory_space<vmem>>, vector<32x128xf32>
    tpu.vector_store %arg9[%c0_6, %c0_7], %7 {strides = array<i32>} : memref<32x128xf32, #tpu.memory_space<vmem>>, vector<32x128xf32>,
    %c1_i32 = arith.constant 1 : i32
    %9 = arith.cmpi eq, %arg2, %c1_i32 : i32
    %10 = arith.extui %9 : i1 to i32
    %c0_i32_8 = arith.constant 0 : i32
    %11 = arith.cmpi ne, %10, %c0_i32_8 : i32
    scf.if %11 {
      %c0_9 = arith.constant 0 : index
      %c0_10 = arith.constant 0 : index
      %12 = vector.load %arg9[%c0_9, %c0_10] : memref<32x128xf32, #tpu.memory_space<vmem>>, vector<32x128xf32>
      %c0_11 = arith.constant 0 : index
      %c0_12 = arith.constant 0 : index
      %13 = vector.load %arg5[%c0_11, %c0_12] : memref<1x128xf32, #tpu.memory_space<vmem>>, vector<1x128xf32>
      %14 = vector.broadcast %13 : vector<1x128xf32> to vector<32x128xf32>
      %15 = arith.mulf %12, %14 : vector<32x128xf32>
      %c0_13 = arith.constant 0 : index
      %c0_14 = arith.constant 0 : index
      %16 = vector.load %arg6[%c0_13, %c0_14] : memref<1x128xf32, #tpu.memory_space<vmem>>, vector<1x128xf32>
      %17 = vector.broadcast %16 : vector<1x128xf32> to vector<32x128xf32>
      %18 = arith.addf %15, %17 : vector<32x128xf32>
      %c0_15 = arith.constant 0 : index
      %c0_16 = arith.constant 0 : index
      %19 = vector.load %arg7[%c0_15, %c0_16] : memref<32x128xbf16, #tpu.memory_space<vmem>>, vector<32x128xbf16>
      %20 = arith.extf %19 : vector<32x128xbf16> to vector<32x128xf32>
      %21 = arith.addf %18, %20 : vector<32x128xf32>
      %cst_17 = arith.constant 0.000000e+00 : f32
      %22 = vector.broadcast %cst_17 : f32 to vector<32x128xf32>
      %23 = arith.maximumf %21, %22 : vector<32x128xf32>
      %24 = arith.truncf %23 : vector<32x128xf32> to vector<32x128xbf16>
      %c0_18 = arith.constant 0 : index
      %c0_19 = arith.constant 0 : index
      %25 = vector.load %arg8[%c0_18, %c0_19] : memref<32x128xbf16, #tpu.memory_space<vmem>>, vector<32x128xbf16>
      tpu.vector_store %arg8[%c0_18, %c0_19], %24 {strides = array<i32>} : memref<32x128xbf16, #tpu.memory_space<vmem>>, vector<32x128xbf16>,
    } else {
    }
    return
  }
  func.func @transform_0(%arg0: i32, %arg1: i32, %arg2: i32) -> (i32, i32) {
    %c0_i32 = arith.constant 0 : i32
    return %arg0, %arg2 : i32, i32
  }
  func.func @transform_1(%arg0: i32, %arg1: i32, %arg2: i32) -> (i32, i32) {
    %c0_i32 = arith.constant 0 : i32
    return %arg2, %arg1 : i32, i32
  }
  func.func @transform_2(%arg0: i32, %arg1: i32, %arg2: i32) -> (i32, i32) {
    %c0_i32 = arith.constant 0 : i32
    %c0_i32_0 = arith.constant 0 : i32
    return %c0_i32, %arg1 : i32, i32
  }
  func.func @transform_3(%arg0: i32, %arg1: i32, %arg2: i32) -> (i32, i32) {
    %c0_i32 = arith.constant 0 : i32
    %c0_i32_0 = arith.constant 0 : i32
    return %c0_i32, %arg1 : i32, i32
  }
  func.func @transform_4(%arg0: i32, %arg1: i32, %arg2: i32) -> (i32, i32) {
    %c0_i32 = arith.constant 0 : i32
    return %arg0, %arg1 : i32, i32
  }
  func.func @transform_5(%arg0: i32, %arg1: i32, %arg2: i32) -> (i32, i32) {
    %c0_i32 = arith.constant 0 : i32
    return %arg0, %arg1 : i32, i32
  }
}

module attributes {stable_mosaic.version = 11 : i64} {
  func.func @_tail_kernel(%arg0: i32, %arg1: memref<2x16x64xbf16, #tpu.memory_space<vmem>>, %arg2: memref<64x32xf32, #tpu.memory_space<vmem>>, %arg3: memref<1x32xf32, #tpu.memory_space<vmem>>, %arg4: memref<32x32xf32, #tpu.memory_space<vmem>>, %arg5: memref<1x32xf32, #tpu.memory_space<vmem>>, %arg6: memref<32x32xf32, #tpu.memory_space<vmem>>, %arg7: memref<1x32xf32, #tpu.memory_space<vmem>>, %arg8: memref<1x32xf32, #tpu.memory_space<vmem>>, %arg9: memref<32x5xf32, #tpu.memory_space<vmem>>, %arg10: memref<1x5xf32, #tpu.memory_space<vmem>>, %arg11: memref<2x5xf32, #tpu.memory_space<vmem>>) attributes {dimension_semantics = [#tpu.dimension_semantics<arbitrary>], iteration_bounds = array<i64: 1>, scalar_prefetch = 0 : i64, scratch_operands = 0 : i64, tpu.core_type = #tpu.core_type<tc>, window_params = [{pipeline_mode = #tpu.pipeline_mode<synchronous>, transform_indices = @transform_0, window_bounds = array<i64: 2, 16, 64>}, {pipeline_mode = #tpu.pipeline_mode<synchronous>, transform_indices = @transform_1, window_bounds = array<i64: 64, 32>}, {pipeline_mode = #tpu.pipeline_mode<synchronous>, transform_indices = @transform_2, window_bounds = array<i64: 1, 32>}, {pipeline_mode = #tpu.pipeline_mode<synchronous>, transform_indices = @transform_3, window_bounds = array<i64: 32, 32>}, {pipeline_mode = #tpu.pipeline_mode<synchronous>, transform_indices = @transform_4, window_bounds = array<i64: 1, 32>}, {pipeline_mode = #tpu.pipeline_mode<synchronous>, transform_indices = @transform_5, window_bounds = array<i64: 32, 32>}, {pipeline_mode = #tpu.pipeline_mode<synchronous>, transform_indices = @transform_6, window_bounds = array<i64: 1, 32>}, {pipeline_mode = #tpu.pipeline_mode<synchronous>, transform_indices = @transform_7, window_bounds = array<i64: 1, 32>}, {pipeline_mode = #tpu.pipeline_mode<synchronous>, transform_indices = @transform_8, window_bounds = array<i64: 32, 5>}, {pipeline_mode = #tpu.pipeline_mode<synchronous>, transform_indices = @transform_9, window_bounds = array<i64: 1, 5>}, {pipeline_mode = #tpu.pipeline_mode<synchronous>, transform_indices = @transform_10, window_bounds = array<i64: 2, 5>}]} {
    %c0 = arith.constant 0 : index
    %c0_0 = arith.constant 0 : index
    %c0_1 = arith.constant 0 : index
    %0 = vector.load %arg1[%c0, %c0_0, %c0_1] : memref<2x16x64xbf16, #tpu.memory_space<vmem>>, vector<2x16x64xbf16>
    %1 = arith.extf %0 : vector<2x16x64xbf16> to vector<2x16x64xf32>
    %cst = arith.constant dense<0.000000e+00> : vector<2x64xf32>
    %2 = vector.multi_reduction <add>, %1, %cst [1] : vector<2x16x64xf32> to vector<2x64xf32>
    %cst_2 = arith.constant 1.600000e+01 : f32
    %3 = vector.broadcast %cst_2 : f32 to vector<2x64xf32>
    %4 = arith.divf %2, %3 : vector<2x64xf32>
    %c0_3 = arith.constant 0 : index
    %c0_4 = arith.constant 0 : index
    %5 = vector.load %arg2[%c0_3, %c0_4] : memref<64x32xf32, #tpu.memory_space<vmem>>, vector<64x32xf32>
    %cst_5 = arith.constant dense<0.000000e+00> : vector<2x32xf32>
    %6 = tpu.matmul %4, %5, %cst_5 {dimension_numbers = #tpu.dot_dimension_numbers<[1], [0], [0], [1], [0, 0, 1, 1], [], []>} : vector<2x64xf32>, vector<64x32xf32>, vector<2x32xf32> -> vector<2x32xf32>
    %c0_6 = arith.constant 0 : index
    %c0_7 = arith.constant 0 : index
    %7 = vector.load %arg3[%c0_6, %c0_7] : memref<1x32xf32, #tpu.memory_space<vmem>>, vector<1x32xf32>
    %8 = vector.broadcast %7 : vector<1x32xf32> to vector<2x32xf32>
    %9 = arith.addf %6, %8 : vector<2x32xf32>
    %cst_8 = arith.constant 0.000000e+00 : f32
    %10 = vector.broadcast %cst_8 : f32 to vector<2x32xf32>
    %11 = arith.maximumf %9, %10 : vector<2x32xf32>
    %c0_9 = arith.constant 0 : index
    %c0_10 = arith.constant 0 : index
    %12 = vector.load %arg4[%c0_9, %c0_10] : memref<32x32xf32, #tpu.memory_space<vmem>>, vector<32x32xf32>
    %cst_11 = arith.constant dense<0.000000e+00> : vector<2x32xf32>
    %13 = tpu.matmul %11, %12, %cst_11 {dimension_numbers = #tpu.dot_dimension_numbers<[1], [0], [0], [1], [0, 0, 1, 1], [], []>} : vector<2x32xf32>, vector<32x32xf32>, vector<2x32xf32> -> vector<2x32xf32>
    %c0_12 = arith.constant 0 : index
    %c0_13 = arith.constant 0 : index
    %14 = vector.load %arg5[%c0_12, %c0_13] : memref<1x32xf32, #tpu.memory_space<vmem>>, vector<1x32xf32>
    %15 = vector.broadcast %14 : vector<1x32xf32> to vector<2x32xf32>
    %16 = arith.addf %13, %15 : vector<2x32xf32>
    %cst_14 = arith.constant 0.000000e+00 : f32
    %17 = vector.broadcast %cst_14 : f32 to vector<2x32xf32>
    %18 = arith.maximumf %16, %17 : vector<2x32xf32>
    %c0_15 = arith.constant 0 : index
    %c0_16 = arith.constant 0 : index
    %19 = vector.load %arg6[%c0_15, %c0_16] : memref<32x32xf32, #tpu.memory_space<vmem>>, vector<32x32xf32>
    %cst_17 = arith.constant dense<0.000000e+00> : vector<2x32xf32>
    %20 = tpu.matmul %18, %19, %cst_17 {dimension_numbers = #tpu.dot_dimension_numbers<[1], [0], [0], [1], [0, 0, 1, 1], [], []>} : vector<2x32xf32>, vector<32x32xf32>, vector<2x32xf32> -> vector<2x32xf32>
    %c0_18 = arith.constant 0 : index
    %c0_19 = arith.constant 0 : index
    %21 = vector.load %arg7[%c0_18, %c0_19] : memref<1x32xf32, #tpu.memory_space<vmem>>, vector<1x32xf32>
    %22 = vector.broadcast %21 : vector<1x32xf32> to vector<2x32xf32>
    %23 = arith.mulf %20, %22 : vector<2x32xf32>
    %c0_20 = arith.constant 0 : index
    %c0_21 = arith.constant 0 : index
    %24 = vector.load %arg8[%c0_20, %c0_21] : memref<1x32xf32, #tpu.memory_space<vmem>>, vector<1x32xf32>
    %25 = vector.broadcast %24 : vector<1x32xf32> to vector<2x32xf32>
    %26 = arith.addf %23, %25 : vector<2x32xf32>
    %c0_22 = arith.constant 0 : index
    %c0_23 = arith.constant 0 : index
    %27 = vector.load %arg9[%c0_22, %c0_23] : memref<32x5xf32, #tpu.memory_space<vmem>>, vector<32x5xf32>
    %cst_24 = arith.constant dense<0.000000e+00> : vector<2x5xf32>
    %28 = tpu.matmul %26, %27, %cst_24 {dimension_numbers = #tpu.dot_dimension_numbers<[1], [0], [0], [1], [0, 0, 1, 1], [], []>} : vector<2x32xf32>, vector<32x5xf32>, vector<2x5xf32> -> vector<2x5xf32>
    %c0_25 = arith.constant 0 : index
    %c0_26 = arith.constant 0 : index
    %29 = vector.load %arg10[%c0_25, %c0_26] : memref<1x5xf32, #tpu.memory_space<vmem>>, vector<1x5xf32>
    %30 = vector.broadcast %29 : vector<1x5xf32> to vector<2x5xf32>
    %31 = arith.addf %28, %30 : vector<2x5xf32>
    %c0_27 = arith.constant 0 : index
    %c0_28 = arith.constant 0 : index
    %32 = vector.load %arg11[%c0_27, %c0_28] : memref<2x5xf32, #tpu.memory_space<vmem>>, vector<2x5xf32>
    tpu.vector_store %arg11[%c0_27, %c0_28], %31 {strides = array<i32>} : memref<2x5xf32, #tpu.memory_space<vmem>>, vector<2x5xf32>,
    return
  }
  func.func @transform_0(%arg0: i32) -> (i32, i32, i32) {
    %c0_i32 = arith.constant 0 : i32
    %c0_i32_0 = arith.constant 0 : i32
    %c0_i32_1 = arith.constant 0 : i32
    %c0_i32_2 = arith.constant 0 : i32
    return %c0_i32, %c0_i32_0, %c0_i32_1 : i32, i32, i32
  }
  func.func @transform_1(%arg0: i32) -> (i32, i32) {
    %c0_i32 = arith.constant 0 : i32
    %c0_i32_0 = arith.constant 0 : i32
    %c0_i32_1 = arith.constant 0 : i32
    return %c0_i32, %c0_i32_0 : i32, i32
  }
  func.func @transform_2(%arg0: i32) -> (i32, i32) {
    %c0_i32 = arith.constant 0 : i32
    %c0_i32_0 = arith.constant 0 : i32
    %c0_i32_1 = arith.constant 0 : i32
    return %c0_i32, %c0_i32_0 : i32, i32
  }
  func.func @transform_3(%arg0: i32) -> (i32, i32) {
    %c0_i32 = arith.constant 0 : i32
    %c0_i32_0 = arith.constant 0 : i32
    %c0_i32_1 = arith.constant 0 : i32
    return %c0_i32, %c0_i32_0 : i32, i32
  }
  func.func @transform_4(%arg0: i32) -> (i32, i32) {
    %c0_i32 = arith.constant 0 : i32
    %c0_i32_0 = arith.constant 0 : i32
    %c0_i32_1 = arith.constant 0 : i32
    return %c0_i32, %c0_i32_0 : i32, i32
  }
  func.func @transform_5(%arg0: i32) -> (i32, i32) {
    %c0_i32 = arith.constant 0 : i32
    %c0_i32_0 = arith.constant 0 : i32
    %c0_i32_1 = arith.constant 0 : i32
    return %c0_i32, %c0_i32_0 : i32, i32
  }
  func.func @transform_6(%arg0: i32) -> (i32, i32) {
    %c0_i32 = arith.constant 0 : i32
    %c0_i32_0 = arith.constant 0 : i32
    %c0_i32_1 = arith.constant 0 : i32
    return %c0_i32, %c0_i32_0 : i32, i32
  }
  func.func @transform_7(%arg0: i32) -> (i32, i32) {
    %c0_i32 = arith.constant 0 : i32
    %c0_i32_0 = arith.constant 0 : i32
    %c0_i32_1 = arith.constant 0 : i32
    return %c0_i32, %c0_i32_0 : i32, i32
  }
  func.func @transform_8(%arg0: i32) -> (i32, i32) {
    %c0_i32 = arith.constant 0 : i32
    %c0_i32_0 = arith.constant 0 : i32
    %c0_i32_1 = arith.constant 0 : i32
    return %c0_i32, %c0_i32_0 : i32, i32
  }
  func.func @transform_9(%arg0: i32) -> (i32, i32) {
    %c0_i32 = arith.constant 0 : i32
    %c0_i32_0 = arith.constant 0 : i32
    %c0_i32_1 = arith.constant 0 : i32
    return %c0_i32, %c0_i32_0 : i32, i32
  }
  func.func @transform_10(%arg0: i32) -> (i32, i32) {
    %c0_i32 = arith.constant 0 : i32
    %c0_i32_0 = arith.constant 0 : i32
    %c0_i32_1 = arith.constant 0 : i32
    return %c0_i32, %c0_i32_0 : i32, i32
  }
}

</mosaic_0001>

<bundles_post_ra>
// kernel: resnet_forward.12
= control target key start
LH: loop header
LB: loop body
LE: loop exit
PB: predicated region body
PF: predicated region fallthrough
CT: control target
= control target key end

     0   :  { %s1961_s1 = inlined_call_operand.vmem [shape: bf16[128,128], index: 1, kind: input, shape index: {}]   ;;  %s1962_s2 = inlined_call_operand.vmem [shape: f32[1,128], index: 2, kind: input, shape index: {}]   ;;  %s1963_s3 = inlined_call_operand.vmem [shape: f32[1,128], index: 3, kind: input, shape index: {}]   ;;  %s1964_s0 = inlined_call_operand.vmem [shape: bf16[512,128], index: 0, kind: input, shape index: {}]   ;;  %s1965_s4 = inlined_call_operand.vmem [shape: bf16[512,128], index: 4, kind: output, shape index: {}]  }
   0x1   :  { %v1364_v0 = vld [vmem:[%s1961_s1 + $0x38] sm:$0xff]  ;;  %v1363_v1 = vld [vmem:[%s1961_s1 + $0x30] sm:$0xff]  ;;  %v1362_v2 = vld [vmem:[%s1961_s1 + $0x28] sm:$0xff] }
   0x2   :  { %469 = vmatpush.bf16.msra.mxu0 %v1364_v0  ;;  %1556 = vmatpush.bf16.msra.mxu1 %v1364_v0  ;;  %v1361_v3 = vld [vmem:[%s1961_s1 + $0x20] sm:$0xff]  ;;  %v1360_v4 = vld [vmem:[%s1961_s1 + $0x18] sm:$0xff]  ;;  %v1359_v5 = vld [vmem:[%s1961_s1 + $0x10] sm:$0xff] }
   0x3   :  { %1557 = vmatpush.bf16.msra.mxu2 %v1364_v0  ;;  %1558 = vmatpush.bf16.msra.mxu3 %v1364_v0  ;;  %v1358_v6 = vld [vmem:[%s1961_s1 + $0x8] sm:$0xff]  ;;  %v1357_v7 = vld [vmem:[%s1961_s1] sm:$0xff]  ;;  %v1327_v16 = vld [vmem:[%s1964_s0 + $0x10] sm:$0xff] }
   0x4   :  { %v1325_v8 = vld [vmem:[%s1964_s0] sm:$0xff]  ;;  %v1326_v12 = vld [vmem:[%s1964_s0 + $0x8] sm:$0xff]  ;;  %v1335_v17 = vld [vmem:[%s1964_s0 + $0x50] sm:$0xff] }
   0x5   :  { %v1333_v9 = vld [vmem:[%s1964_s0 + $0x40] sm:$0xff]  ;;  %v1334_v13 = vld [vmem:[%s1964_s0 + $0x48] sm:$0xff]  ;;  %v1343_v18 = vld [vmem:[%s1964_s0 + $0x90] sm:$0xff] }
   0x6   :  { %470 = vmatpush.bf16.msra.mxu0 %v1363_v1  ;;  %1559 = vmatpush.bf16.msra.mxu1 %v1363_v1  ;;  %v1341_v10 = vld [vmem:[%s1964_s0 + $0x80] sm:$0xff]  ;;  %v1342_v14 = vld [vmem:[%s1964_s0 + $0x88] sm:$0xff]  ;;  %v1351_v19 = vld [vmem:[%s1964_s0 + $0xd0] sm:$0xff] }
   0x7   :  { %1560 = vmatpush.bf16.msra.mxu2 %v1363_v1  ;;  %1561 = vmatpush.bf16.msra.mxu3 %v1363_v1  ;;  %v1349_v11 = vld [vmem:[%s1964_s0 + $0xc0] sm:$0xff]  ;;  %v1350_v15 = vld [vmem:[%s1964_s0 + $0xc8] sm:$0xff]  ;;  %v1328_v20 = vld [vmem:[%s1964_s0 + $0x18] sm:$0xff] }
   0x8   :  { %v1336_v21 = vld [vmem:[%s1964_s0 + $0x58] sm:$0xff]  ;;  %v1329_v24 = vld [vmem:[%s1964_s0 + $0x20] sm:$0xff]  ;;  %v1330_v28 = vld [vmem:[%s1964_s0 + $0x28] sm:$0xff] }
   0x9   :  { %v1344_v22 = vld [vmem:[%s1964_s0 + $0x98] sm:$0xff]  ;;  %v1337_v25 = vld [vmem:[%s1964_s0 + $0x60] sm:$0xff]  ;;  %v1338_v29 = vld [vmem:[%s1964_s0 + $0x68] sm:$0xff] }
   0xa   :  { %471 = vmatpush.bf16.msra.mxu0 %v1362_v2  ;;  %1562 = vmatpush.bf16.msra.mxu1 %v1362_v2  ;;  %v1352_v23 = vld [vmem:[%s1964_s0 + $0xd8] sm:$0xff]  ;;  %v1345_v26 = vld [vmem:[%s1964_s0 + $0xa0] sm:$0xff]  ;;  %v1346_v30 = vld [vmem:[%s1964_s0 + $0xa8] sm:$0xff] }
   0xb   :  { %1563 = vmatpush.bf16.msra.mxu2 %v1362_v2  ;;  %1564 = vmatpush.bf16.msra.mxu3 %v1362_v2  ;;  %v1353_v27 = vld [vmem:[%s1964_s0 + $0xe0] sm:$0xff]  ;;  %v1354_v31 = vld [vmem:[%s1964_s0 + $0xe8] sm:$0xff]  ;;  %v1331_v32 = vld [vmem:[%s1964_s0 + $0x30] sm:$0xff] }
   0xc   :  { %v1339_v33 = vld [vmem:[%s1964_s0 + $0x70] sm:$0xff]  ;;  %v1332_v36 = vld [vmem:[%s1964_s0 + $0x38] sm:$0xff]  ;;  %v1730_v42 = vld [vmem:[%s1962_s2] ss:$0 sm:$0xff] }
   0xd   :  { %v1347_v34 = vld [vmem:[%s1964_s0 + $0xb0] sm:$0xff]  ;;  %v1340_v37 = vld [vmem:[%s1964_s0 + $0x78] sm:$0xff]  ;;  %v1736_v44 = vld [vmem:[%s1963_s3] ss:$0 sm:$0xff] }
   0xe   :  { %472 = vmatpush.bf16.msra.mxu0 %v1361_v3  ;;  %1565 = vmatpush.bf16.msra.mxu1 %v1361_v3  ;;  %v1355_v35 = vld [vmem:[%s1964_s0 + $0xf0] sm:$0xff]  ;;  %v1348_v38 = vld [vmem:[%s1964_s0 + $0xb8] sm:$0xff] }
   0xf   :  { %1566 = vmatpush.bf16.msra.mxu2 %v1361_v3  ;;  %1567 = vmatpush.bf16.msra.mxu3 %v1361_v3  ;;  %v1356_v39 = vld [vmem:[%s1964_s0 + $0xf8] sm:$0xff] }
  0x12   :  { %473 = vmatpush.bf16.msra.mxu0 %v1360_v4  ;;  %1568 = vmatpush.bf16.msra.mxu1 %v1360_v4 }
  0x13   :  { %1569 = vmatpush.bf16.msra.mxu2 %v1360_v4  ;;  %1570 = vmatpush.bf16.msra.mxu3 %v1360_v4 }
  0x16   :  { %474 = vmatpush.bf16.msra.mxu0 %v1359_v5  ;;  %1571 = vmatpush.bf16.msra.mxu1 %v1359_v5 }
  0x17   :  { %1572 = vmatpush.bf16.msra.mxu2 %v1359_v5  ;;  %1573 = vmatpush.bf16.msra.mxu3 %v1359_v5 }
  0x1a   :  { %475 = vmatpush.bf16.msra.mxu0 %v1358_v6  ;;  %1574 = vmatpush.bf16.msra.mxu1 %v1358_v6 }
  0x1b   :  { %1575 = vmatpush.bf16.msra.mxu2 %v1358_v6  ;;  %1576 = vmatpush.bf16.msra.mxu3 %v1358_v6 }
  0x1e   :  { %476 = vmatpush.bf16.msra.mxu0 %v1357_v7  ;;  %1577 = vmatpush.bf16.msra.mxu1 %v1357_v7 }
  0x1f   :  { %1578 = vmatpush.bf16.msra.mxu2 %v1357_v7  ;;  %1579 = vmatpush.bf16.msra.mxu3 %v1357_v7 }
  0x21   :  { %477 = vmatmul.bf16.vlgmr.msra.gmra.mxu0 %v1325_v8  ;;  %517 = vmatmul.bf16.vlgmr.msra.gmra.mxu1 %v1333_v9 }
  0x22   :  { %557 = vmatmul.bf16.vlgmr.msra.gmra.mxu2 %v1341_v10  ;;  %597 = vmatmul.bf16.vlgmr.msra.gmra.mxu3 %v1349_v11 }
  0x31   :  { %482 = vmatmul.bf16.gmra.mxu0 %v1326_v12  ;;  %522 = vmatmul.bf16.gmra.mxu1 %v1334_v13 }
  0x32   :  { %562 = vmatmul.bf16.gmra.mxu2 %v1342_v14  ;;  %602 = vmatmul.bf16.gmra.mxu3 %v1350_v15 }
  0x41   :  { %487 = vmatmul.bf16.gmra.mxu0 %v1327_v16  ;;  %527 = vmatmul.bf16.gmra.mxu1 %v1335_v17 }
  0x42   :  { %567 = vmatmul.bf16.gmra.mxu2 %v1343_v18  ;;  %607 = vmatmul.bf16.gmra.mxu3 %v1351_v19 }
  0x51   :  { %492 = vmatmul.bf16.gmra.mxu0 %v1328_v20  ;;  %532 = vmatmul.bf16.gmra.mxu1 %v1336_v21 }
  0x52   :  { %572 = vmatmul.bf16.gmra.mxu2 %v1344_v22  ;;  %612 = vmatmul.bf16.gmra.mxu3 %v1352_v23 }
  0x61   :  { %497 = vmatmul.bf16.gmra.mxu0 %v1329_v24  ;;  %537 = vmatmul.bf16.gmra.mxu1 %v1337_v25 }
  0x62   :  { %577 = vmatmul.bf16.gmra.mxu2 %v1345_v26  ;;  %617 = vmatmul.bf16.gmra.mxu3 %v1353_v27 }
  0x71   :  { %502 = vmatmul.bf16.gmra.mxu0 %v1330_v28  ;;  %542 = vmatmul.bf16.gmra.mxu1 %v1338_v29 }
  0x72   :  { %582 = vmatmul.bf16.gmra.mxu2 %v1346_v30  ;;  %622 = vmatmul.bf16.gmra.mxu3 %v1354_v31 }
  0x81   :  { %507 = vmatmul.bf16.gmra.mxu0 %v1331_v32  ;;  %547 = vmatmul.bf16.gmra.mxu1 %v1339_v33 }
  0x82   :  { %587 = vmatmul.bf16.gmra.mxu2 %v1347_v34  ;;  %627 = vmatmul.bf16.gmra.mxu3 %v1355_v35 }
  0x91   :  { %512 = vmatmul.bf16.gmra.mxu0 %v1332_v36  ;;  %552 = vmatmul.bf16.gmra.mxu1 %v1340_v37 }
  0x92   :  { %592 = vmatmul.bf16.gmra.mxu2 %v1348_v38  ;;  %632 = vmatmul.bf16.gmra.mxu3 %v1356_v39 }
  0x9e   :  { %v478_v40 = vpop.f32.mrf.mxu0  ;;  %v518_v41 = vpop.f32.mrf.mxu1 }
  0x9f   :  { %v837_v43 = vmul.f32 %v1730_v42, %v478_v40  ;;  %v853_v45 = vmul.f32 %v1730_v42, %v518_v41 }
  0xa1   :  { %v905_v50 = vadd.f32 %v1736_v44, %v837_v43  ;;  %v921_v51 = vadd.f32 %v1736_v44, %v853_v45 }
  0xa3   :  { %v969_v58 = vmax.f32 %v905_v50, 0.0  ;;  %v985_v59 = vmax.f32 %v921_v51, 0.0 }
  0xa5   :  { %v558_v46 = vpop.f32.mrf.mxu2  ;;  %v598_v47 = vpop.f32.mrf.mxu3 }
  0xa6   :  { %v480_v48 = vpop.f32.mrf.mxu0  ;;  %v520_v49 = vpop.f32.mrf.mxu1  ;;  %v869_v56 = vmul.f32 %v1730_v42, %v558_v46  ;;  %v885_v57 = vmul.f32 %v1730_v42, %v598_v47 }
  0xa7   :  { %v838_v52 = vmul.f32 %v1730_v42, %v480_v48  ;;  %v854_v53 = vmul.f32 %v1730_v42, %v520_v49 }
  0xa8   :  { %v937_v2 = vadd.f32 %v1736_v44, %v869_v56  ;;  %v953_v3 = vadd.f32 %v1736_v44, %v885_v57 }
  0xa9   :  { %v906_v54 = vadd.f32 %v1736_v44, %v838_v52  ;;  %v922_v55 = vadd.f32 %v1736_v44, %v854_v53 }
  0xaa   :  { %v1001_v10 = vmax.f32 %v937_v2, 0.0  ;;  %v1017_v11 = vmax.f32 %v953_v3, 0.0 }
  0xab   :  { %v970_v60 = vmax.f32 %v906_v54, 0.0  ;;  %v986_v61 = vmax.f32 %v922_v55, 0.0 }
  0xad   :  { %v1368_v62 = vpack.c.bf16 %v970_v60, %v969_v58  ;;  %v1408_v63 = vpack.c.bf16 %v986_v61, %v985_v59  ;;  %v560_v0 = vpop.f32.mrf.mxu2  ;;  %v600_v1 = vpop.f32.mrf.mxu3 }
  0xae   :  { %v870_v4 = vmul.f32 %v1730_v42, %v560_v0  ;;  %v886_v5 = vmul.f32 %v1730_v42, %v600_v1  ;;  %v483_v6 = vpop.f32.mrf.mxu0  ;;  %v523_v7 = vpop.f32.mrf.mxu1 }
  0xaf   :  { %1369 = vst [vmem:[%s1965_s4] sm:$0xff] %v1368_v62   ;;  %v839_v14 = vmul.f32 %v1730_v42, %v483_v6  ;;  %v855_v15 = vmul.f32 %v1730_v42, %v523_v7 }
  0xb0   :  { %1532 = vst [vmem:[%s1965_s4 + $0x40] sm:$0xff] %v1408_v63   ;;  %v938_v8 = vadd.f32 %v1736_v44, %v870_v4  ;;  %v954_v9 = vadd.f32 %v1736_v44, %v886_v5 }
  0xb1   :  { %v907_v22 = vadd.f32 %v1736_v44, %v839_v14  ;;  %v923_v23 = vadd.f32 %v1736_v44, %v855_v15 }
  0xb2   :  { %v1002_v12 = vmax.f32 %v938_v8, 0.0  ;;  %v1018_v13 = vmax.f32 %v954_v9, 0.0 }
  0xb3   :  { %v971_v30 = vmax.f32 %v907_v22, 0.0  ;;  %v987_v31 = vmax.f32 %v923_v23, 0.0 }
  0xb4   :  { %v1448_v16 = vpack.c.bf16 %v1002_v12, %v1001_v10  ;;  %v1488_v17 = vpack.c.bf16 %v1018_v13, %v1017_v11 }
  0xb5   :  { %v563_v18 = vpop.f32.mrf.mxu2  ;;  %v603_v19 = vpop.f32.mrf.mxu3 }
  0xb6   :  { %1540 = vst [vmem:[%s1965_s4 + $0x80] sm:$0xff] %v1448_v16   ;;  %v485_v20 = vpop.f32.mrf.mxu0  ;;  %v525_v21 = vpop.f32.mrf.mxu1  ;;  %v871_v28 = vmul.f32 %v1730_v42, %v563_v18  ;;  %v887_v29 = vmul.f32 %v1730_v42, %v603_v19 }
  0xb7   :  { %1548 = vst [vmem:[%s1965_s4 + $0xc0] sm:$0xff] %v1488_v17   ;;  %v840_v24 = vmul.f32 %v1730_v42, %v485_v20  ;;  %v856_v25 = vmul.f32 %v1730_v42, %v525_v21 }
  0xb8   :  { %v939_v38 = vadd.f32 %v1736_v44, %v871_v28  ;;  %v955_v39 = vadd.f32 %v1736_v44, %v887_v29 }
  0xb9   :  { %v908_v26 = vadd.f32 %v1736_v44, %v840_v24  ;;  %v924_v27 = vadd.f32 %v1736_v44, %v856_v25 }
  0xba   :  { %v1003_v48 = vmax.f32 %v939_v38, 0.0  ;;  %v1019_v49 = vmax.f32 %v955_v39, 0.0 }
  0xbb   :  { %v972_v32 = vmax.f32 %v908_v26, 0.0  ;;  %v988_v33 = vmax.f32 %v924_v27, 0.0 }
  0xbd   :  { %v1373_v34 = vpack.c.bf16 %v972_v32, %v971_v30  ;;  %v1413_v35 = vpack.c.bf16 %v988_v33, %v987_v31  ;;  %v565_v36 = vpop.f32.mrf.mxu2  ;;  %v605_v37 = vpop.f32.mrf.mxu3 }
  0xbe   :  { %v872_v40 = vmul.f32 %v1730_v42, %v565_v36  ;;  %v888_v41 = vmul.f32 %v1730_v42, %v605_v37  ;;  %v488_v43 = vpop.f32.mrf.mxu0  ;;  %v528_v45 = vpop.f32.mrf.mxu1 }
  0xbf   :  { %1525 = vst [vmem:[%s1965_s4 + $0x8] sm:$0xff] %v1373_v34   ;;  %v841_v52 = vmul.f32 %v1730_v42, %v488_v43  ;;  %v857_v53 = vmul.f32 %v1730_v42, %v528_v45 }
  0xc0   :  { %1533 = vst [vmem:[%s1965_s4 + $0x48] sm:$0xff] %v1413_v35   ;;  %v940_v46 = vadd.f32 %v1736_v44, %v872_v40  ;;  %v956_v47 = vadd.f32 %v1736_v44, %v888_v41 }
  0xc1   :  { %v909_v60 = vadd.f32 %v1736_v44, %v841_v52  ;;  %v925_v61 = vadd.f32 %v1736_v44, %v857_v53 }
  0xc2   :  { %v1004_v50 = vmax.f32 %v940_v46, 0.0  ;;  %v1020_v51 = vmax.f32 %v956_v47, 0.0 }
  0xc3   :  { %v973_v4 = vmax.f32 %v909_v60, 0.0  ;;  %v989_v5 = vmax.f32 %v925_v61, 0.0 }
  0xc4   :  { %v1453_v54 = vpack.c.bf16 %v1004_v50, %v1003_v48  ;;  %v1493_v55 = vpack.c.bf16 %v1020_v51, %v1019_v49 }
  0xc5   :  { %v568_v56 = vpop.f32.mrf.mxu2  ;;  %v608_v57 = vpop.f32.mrf.mxu3 }
  0xc6   :  { %1541 = vst [vmem:[%s1965_s4 + $0x88] sm:$0xff] %v1453_v54   ;;  %v490_v58 = vpop.f32.mrf.mxu0  ;;  %v530_v59 = vpop.f32.mrf.mxu1  ;;  %v873_v2 = vmul.f32 %v1730_v42, %v568_v56  ;;  %v889_v3 = vmul.f32 %v1730_v42, %v608_v57 }
  0xc7   :  { %1549 = vst [vmem:[%s1965_s4 + $0xc8] sm:$0xff] %v1493_v55   ;;  %v842_v62 = vmul.f32 %v1730_v42, %v490_v58  ;;  %v858_v63 = vmul.f32 %v1730_v42, %v530_v59 }
  0xc8   :  { %v941_v12 = vadd.f32 %v1736_v44, %v873_v2  ;;  %v957_v13 = vadd.f32 %v1736_v44, %v889_v3 }
  0xc9   :  { %v910_v0 = vadd.f32 %v1736_v44, %v842_v62  ;;  %v926_v1 = vadd.f32 %v1736_v44, %v858_v63 }
  0xca   :  { %v1005_v20 = vmax.f32 %v941_v12, 0.0  ;;  %v1021_v21 = vmax.f32 %v957_v13, 0.0 }
  0xcb   :  { %v974_v6 = vmax.f32 %v910_v0, 0.0  ;;  %v990_v7 = vmax.f32 %v926_v1, 0.0 }
  0xcd   :  { %v1378_v8 = vpack.c.bf16 %v974_v6, %v973_v4  ;;  %v1418_v9 = vpack.c.bf16 %v990_v7, %v989_v5  ;;  %v570_v10 = vpop.f32.mrf.mxu2  ;;  %v610_v11 = vpop.f32.mrf.mxu3 }
  0xce   :  { %v874_v14 = vmul.f32 %v1730_v42, %v570_v10  ;;  %v890_v15 = vmul.f32 %v1730_v42, %v610_v11  ;;  %v493_v16 = vpop.f32.mrf.mxu0  ;;  %v533_v17 = vpop.f32.mrf.mxu1 }
  0xcf   :  { %1526 = vst [vmem:[%s1965_s4 + $0x10] sm:$0xff] %v1378_v8   ;;  %v843_v24 = vmul.f32 %v1730_v42, %v493_v16  ;;  %v859_v25 = vmul.f32 %v1730_v42, %v533_v17 }
  0xd0   :  { %1534 = vst [vmem:[%s1965_s4 + $0x50] sm:$0xff] %v1418_v9   ;;  %v942_v18 = vadd.f32 %v1736_v44, %v874_v14  ;;  %v958_v19 = vadd.f32 %v1736_v44, %v890_v15 }
  0xd1   :  { %v911_v32 = vadd.f32 %v1736_v44, %v843_v24  ;;  %v927_v33 = vadd.f32 %v1736_v44, %v859_v25 }
  0xd2   :  { %v1006_v22 = vmax.f32 %v942_v18, 0.0  ;;  %v1022_v23 = vmax.f32 %v958_v19, 0.0 }
  0xd3   :  { %v975_v40 = vmax.f32 %v911_v32, 0.0  ;;  %v991_v41 = vmax.f32 %v927_v33, 0.0 }
  0xd4   :  { %v1458_v26 = vpack.c.bf16 %v1006_v22, %v1005_v20  ;;  %v1498_v27 = vpack.c.bf16 %v1022_v23, %v1021_v21 }
  0xd5   :  { %v573_v28 = vpop.f32.mrf.mxu2  ;;  %v613_v29 = vpop.f32.mrf.mxu3 }
  0xd6   :  { %1542 = vst [vmem:[%s1965_s4 + $0x90] sm:$0xff] %v1458_v26   ;;  %v495_v30 = vpop.f32.mrf.mxu0  ;;  %v535_v31 = vpop.f32.mrf.mxu1  ;;  %v875_v38 = vmul.f32 %v1730_v42, %v573_v28  ;;  %v891_v39 = vmul.f32 %v1730_v42, %v613_v29 }
  0xd7   :  { %1550 = vst [vmem:[%s1965_s4 + $0xd0] sm:$0xff] %v1498_v27   ;;  %v844_v34 = vmul.f32 %v1730_v42, %v495_v30  ;;  %v860_v35 = vmul.f32 %v1730_v42, %v535_v31 }
  0xd8   :  { %v943_v50 = vadd.f32 %v1736_v44, %v875_v38  ;;  %v959_v51 = vadd.f32 %v1736_v44, %v891_v39 }
  0xd9   :  { %v912_v36 = vadd.f32 %v1736_v44, %v844_v34  ;;  %v928_v37 = vadd.f32 %v1736_v44, %v860_v35 }
  0xda   :  { %v1007_v58 = vmax.f32 %v943_v50, 0.0  ;;  %v1023_v59 = vmax.f32 %v959_v51, 0.0 }
  0xdb   :  { %v976_v43 = vmax.f32 %v912_v36, 0.0  ;;  %v992_v45 = vmax.f32 %v928_v37, 0.0 }
  0xdd   :  { %v1383_v46 = vpack.c.bf16 %v976_v43, %v975_v40  ;;  %v1423_v47 = vpack.c.bf16 %v992_v45, %v991_v41  ;;  %v575_v48 = vpop.f32.mrf.mxu2  ;;  %v615_v49 = vpop.f32.mrf.mxu3 }
  0xde   :  { %v876_v52 = vmul.f32 %v1730_v42, %v575_v48  ;;  %v892_v53 = vmul.f32 %v1730_v42, %v615_v49  ;;  %v498_v54 = vpop.f32.mrf.mxu0  ;;  %v538_v55 = vpop.f32.mrf.mxu1 }
  0xdf   :  { %1527 = vst [vmem:[%s1965_s4 + $0x18] sm:$0xff] %v1383_v46   ;;  %v845_v62 = vmul.f32 %v1730_v42, %v498_v54  ;;  %v861_v63 = vmul.f32 %v1730_v42, %v538_v55 }
  0xe0   :  { %1535 = vst [vmem:[%s1965_s4 + $0x58] sm:$0xff] %v1423_v47   ;;  %v944_v56 = vadd.f32 %v1736_v44, %v876_v52  ;;  %v960_v57 = vadd.f32 %v1736_v44, %v892_v53 }
  0xe1   :  { %v913_v6 = vadd.f32 %v1736_v44, %v845_v62  ;;  %v929_v7 = vadd.f32 %v1736_v44, %v861_v63 }
  0xe2   :  { %v1008_v60 = vmax.f32 %v944_v56, 0.0  ;;  %v1024_v61 = vmax.f32 %v960_v57, 0.0 }
  0xe3   :  { %v977_v14 = vmax.f32 %v913_v6, 0.0  ;;  %v993_v15 = vmax.f32 %v929_v7, 0.0 }
  0xe4   :  { %v1463_v0 = vpack.c.bf16 %v1008_v60, %v1007_v58  ;;  %v1503_v1 = vpack.c.bf16 %v1024_v61, %v1023_v59 }
  0xe5   :  { %v578_v2 = vpop.f32.mrf.mxu2  ;;  %v618_v3 = vpop.f32.mrf.mxu3 }
  0xe6   :  { %1543 = vst [vmem:[%s1965_s4 + $0x98] sm:$0xff] %v1463_v0   ;;  %v500_v4 = vpop.f32.mrf.mxu0  ;;  %v540_v5 = vpop.f32.mrf.mxu1  ;;  %v877_v12 = vmul.f32 %v1730_v42, %v578_v2  ;;  %v893_v13 = vmul.f32 %v1730_v42, %v618_v3 }
  0xe7   :  { %1551 = vst [vmem:[%s1965_s4 + $0xd8] sm:$0xff] %v1503_v1   ;;  %v846_v8 = vmul.f32 %v1730_v42, %v500_v4  ;;  %v862_v9 = vmul.f32 %v1730_v42, %v540_v5 }
  0xe8   :  { %v945_v22 = vadd.f32 %v1736_v44, %v877_v12  ;;  %v961_v23 = vadd.f32 %v1736_v44, %v893_v13 }
  0xe9   :  { %v914_v10 = vadd.f32 %v1736_v44, %v846_v8  ;;  %v930_v11 = vadd.f32 %v1736_v44, %v862_v9 }
  0xea   :  { %v1009_v30 = vmax.f32 %v945_v22, 0.0  ;;  %v1025_v31 = vmax.f32 %v961_v23, 0.0 }
  0xeb   :  { %v978_v16 = vmax.f32 %v914_v10, 0.0  ;;  %v994_v17 = vmax.f32 %v930_v11, 0.0 }
  0xed   :  { %v1388_v18 = vpack.c.bf16 %v978_v16, %v977_v14  ;;  %v1428_v19 = vpack.c.bf16 %v994_v17, %v993_v15  ;;  %v580_v20 = vpop.f32.mrf.mxu2  ;;  %v620_v21 = vpop.f32.mrf.mxu3 }
  0xee   :  { %v878_v24 = vmul.f32 %v1730_v42, %v580_v20  ;;  %v894_v25 = vmul.f32 %v1730_v42, %v620_v21  ;;  %v503_v26 = vpop.f32.mrf.mxu0  ;;  %v543_v27 = vpop.f32.mrf.mxu1 }
  0xef   :  { %1528 = vst [vmem:[%s1965_s4 + $0x20] sm:$0xff] %v1388_v18   ;;  %v847_v34 = vmul.f32 %v1730_v42, %v503_v26  ;;  %v863_v35 = vmul.f32 %v1730_v42, %v543_v27 }
  0xf0   :  { %1536 = vst [vmem:[%s1965_s4 + $0x60] sm:$0xff] %v1428_v19   ;;  %v946_v28 = vadd.f32 %v1736_v44, %v878_v24  ;;  %v962_v29 = vadd.f32 %v1736_v44, %v894_v25 }
  0xf1   :  { %v915_v43 = vadd.f32 %v1736_v44, %v847_v34  ;;  %v931_v45 = vadd.f32 %v1736_v44, %v863_v35 }
  0xf2   :  { %v1010_v32 = vmax.f32 %v946_v28, 0.0  ;;  %v1026_v33 = vmax.f32 %v962_v29, 0.0 }
  0xf3   :  { %v979_v52 = vmax.f32 %v915_v43, 0.0  ;;  %v995_v53 = vmax.f32 %v931_v45, 0.0 }
  0xf4   :  { %v1468_v36 = vpack.c.bf16 %v1010_v32, %v1009_v30  ;;  %v1508_v37 = vpack.c.bf16 %v1026_v33, %v1025_v31 }
  0xf5   :  { %v583_v38 = vpop.f32.mrf.mxu2  ;;  %v623_v39 = vpop.f32.mrf.mxu3 }
  0xf6   :  { %1544 = vst [vmem:[%s1965_s4 + $0xa0] sm:$0xff] %v1468_v36   ;;  %v505_v40 = vpop.f32.mrf.mxu0  ;;  %v545_v41 = vpop.f32.mrf.mxu1  ;;  %v879_v50 = vmul.f32 %v1730_v42, %v583_v38  ;;  %v895_v51 = vmul.f32 %v1730_v42, %v623_v39 }
  0xf7   :  { %1552 = vst [vmem:[%s1965_s4 + $0xe0] sm:$0xff] %v1508_v37   ;;  %v848_v46 = vmul.f32 %v1730_v42, %v505_v40  ;;  %v864_v47 = vmul.f32 %v1730_v42, %v545_v41 }
  0xf8   :  { %v947_v60 = vadd.f32 %v1736_v44, %v879_v50  ;;  %v963_v61 = vadd.f32 %v1736_v44, %v895_v51 }
  0xf9   :  { %v916_v48 = vadd.f32 %v1736_v44, %v848_v46  ;;  %v932_v49 = vadd.f32 %v1736_v44, %v864_v47 }
  0xfa   :  { %v1011_v4 = vmax.f32 %v947_v60, 0.0  ;;  %v1027_v5 = vmax.f32 %v963_v61, 0.0 }
  0xfb   :  { %v980_v54 = vmax.f32 %v916_v48, 0.0  ;;  %v996_v55 = vmax.f32 %v932_v49, 0.0 }
  0xfd   :  { %v1393_v56 = vpack.c.bf16 %v980_v54, %v979_v52  ;;  %v1433_v57 = vpack.c.bf16 %v996_v55, %v995_v53  ;;  %v585_v58 = vpop.f32.mrf.mxu2  ;;  %v625_v59 = vpop.f32.mrf.mxu3 }
  0xfe   :  { %v880_v62 = vmul.f32 %v1730_v42, %v585_v58  ;;  %v896_v63 = vmul.f32 %v1730_v42, %v625_v59  ;;  %v508_v0 = vpop.f32.mrf.mxu0  ;;  %v548_v1 = vpop.f32.mrf.mxu1 }
  0xff   :  { %1529 = vst [vmem:[%s1965_s4 + $0x28] sm:$0xff] %v1393_v56   ;;  %v849_v8 = vmul.f32 %v1730_v42, %v508_v0  ;;  %v865_v9 = vmul.f32 %v1730_v42, %v548_v1 }
 0x100   :  { %1537 = vst [vmem:[%s1965_s4 + $0x68] sm:$0xff] %v1433_v57   ;;  %v948_v2 = vadd.f32 %v1736_v44, %v880_v62  ;;  %v964_v3 = vadd.f32 %v1736_v44, %v896_v63 }
 0x101   :  { %v917_v16 = vadd.f32 %v1736_v44, %v849_v8  ;;  %v933_v17 = vadd.f32 %v1736_v44, %v865_v9 }
 0x102   :  { %v1012_v6 = vmax.f32 %v948_v2, 0.0  ;;  %v1028_v7 = vmax.f32 %v964_v3, 0.0 }
 0x103   :  { %v981_v24 = vmax.f32 %v917_v16, 0.0  ;;  %v997_v25 = vmax.f32 %v933_v17, 0.0 }
 0x104   :  { %v1473_v10 = vpack.c.bf16 %v1012_v6, %v1011_v4  ;;  %v1513_v11 = vpack.c.bf16 %v1028_v7, %v1027_v5 }
 0x105   :  { %v588_v12 = vpop.f32.mrf.mxu2  ;;  %v628_v13 = vpop.f32.mrf.mxu3 }
 0x106   :  { %1545 = vst [vmem:[%s1965_s4 + $0xa8] sm:$0xff] %v1473_v10   ;;  %v510_v14 = vpop.f32.mrf.mxu0  ;;  %v550_v15 = vpop.f32.mrf.mxu1  ;;  %v881_v22 = vmul.f32 %v1730_v42, %v588_v12  ;;  %v897_v23 = vmul.f32 %v1730_v42, %v628_v13 }
 0x107   :  { %1553 = vst [vmem:[%s1965_s4 + $0xe8] sm:$0xff] %v1513_v11   ;;  %v850_v18 = vmul.f32 %v1730_v42, %v510_v14  ;;  %v866_v19 = vmul.f32 %v1730_v42, %v550_v15 }
 0x108   :  { %v949_v32 = vadd.f32 %v1736_v44, %v881_v22  ;;  %v965_v33 = vadd.f32 %v1736_v44, %v897_v23 }
 0x109   :  { %v918_v20 = vadd.f32 %v1736_v44, %v850_v18  ;;  %v934_v21 = vadd.f32 %v1736_v44, %v866_v19 }
 0x10a   :  { %v1013_v40 = vmax.f32 %v949_v32, 0.0  ;;  %v1029_v41 = vmax.f32 %v965_v33, 0.0 }
 0x10b   :  { %v982_v26 = vmax.f32 %v918_v20, 0.0  ;;  %v998_v27 = vmax.f32 %v934_v21, 0.0 }
 0x10d   :  { %v1398_v28 = vpack.c.bf16 %v982_v26, %v981_v24  ;;  %v1438_v29 = vpack.c.bf16 %v998_v27, %v997_v25  ;;  %v590_v30 = vpop.f32.mrf.mxu2  ;;  %v630_v31 = vpop.f32.mrf.mxu3 }
 0x10e   :  { %v882_v34 = vmul.f32 %v1730_v42, %v590_v30  ;;  %v898_v35 = vmul.f32 %v1730_v42, %v630_v31  ;;  %v513_v36 = vpop.f32.mrf.mxu0  ;;  %v553_v37 = vpop.f32.mrf.mxu1 }
 0x10f   :  { %1530 = vst [vmem:[%s1965_s4 + $0x30] sm:$0xff] %v1398_v28   ;;  %v851_v46 = vmul.f32 %v1730_v42, %v513_v36  ;;  %v867_v47 = vmul.f32 %v1730_v42, %v553_v37 }
 0x110   :  { %1538 = vst [vmem:[%s1965_s4 + $0x70] sm:$0xff] %v1438_v29   ;;  %v950_v38 = vadd.f32 %v1736_v44, %v882_v34  ;;  %v966_v39 = vadd.f32 %v1736_v44, %v898_v35 }
 0x111   :  { %v919_v54 = vadd.f32 %v1736_v44, %v851_v46  ;;  %v935_v55 = vadd.f32 %v1736_v44, %v867_v47 }
 0x112   :  { %v1014_v43 = vmax.f32 %v950_v38, 0.0  ;;  %v1030_v45 = vmax.f32 %v966_v39, 0.0 }
 0x113   :  { %v983_v62 = vmax.f32 %v919_v54, 0.0  ;;  %v999_v63 = vmax.f32 %v935_v55, 0.0 }
 0x114   :  { %v1478_v48 = vpack.c.bf16 %v1014_v43, %v1013_v40  ;;  %v1518_v49 = vpack.c.bf16 %v1030_v45, %v1029_v41 }
 0x115   :  { %v593_v50 = vpop.f32.mrf.mxu2  ;;  %v633_v51 = vpop.f32.mrf.mxu3 }
 0x116   :  { %1546 = vst [vmem:[%s1965_s4 + $0xb0] sm:$0xff] %v1478_v48   ;;  %v515_v52 = vpop.f32.mrf.mxu0  ;;  %v555_v53 = vpop.f32.mrf.mxu1  ;;  %v883_v60 = vmul.f32 %v1730_v42, %v593_v50  ;;  %v899_v61 = vmul.f32 %v1730_v42, %v633_v51 }
 0x117   :  { %1554 = vst [vmem:[%s1965_s4 + $0xf0] sm:$0xff] %v1518_v49   ;;  %v852_v56 = vmul.f32 %v1730_v42, %v515_v52  ;;  %v868_v57 = vmul.f32 %v1730_v42, %v555_v53 }
 0x118   :  { %v951_v6 = vadd.f32 %v1736_v44, %v883_v60  ;;  %v967_v7 = vadd.f32 %v1736_v44, %v899_v61 }
 0x119   :  { %v920_v58 = vadd.f32 %v1736_v44, %v852_v56  ;;  %v936_v59 = vadd.f32 %v1736_v44, %v868_v57 }
 0x11a   :  { %v1015_v12 = vmax.f32 %v951_v6, 0.0  ;;  %v1031_v13 = vmax.f32 %v967_v7, 0.0 }
 0x11b   :  { %v984_v0 = vmax.f32 %v920_v58, 0.0  ;;  %v1000_v1 = vmax.f32 %v936_v59, 0.0 }
 0x11d   :  { %v1403_v2 = vpack.c.bf16 %v984_v0, %v983_v62  ;;  %v1443_v3 = vpack.c.bf16 %v1000_v1, %v999_v63  ;;  %v595_v4 = vpop.f32.mrf.mxu2  ;;  %v635_v5 = vpop.f32.mrf.mxu3 }
 0x11e   :  { %v884_v8 = vmul.f32 %v1730_v42, %v595_v4  ;;  %v900_v9 = vmul.f32 %v1730_v42, %v635_v5 }
 0x11f   :  { %1531 = vst [vmem:[%s1965_s4 + $0x38] sm:$0xff] %v1403_v2  }
 0x120   :  { %1539 = vst [vmem:[%s1965_s4 + $0x78] sm:$0xff] %v1443_v3   ;;  %v952_v10 = vadd.f32 %v1736_v44, %v884_v8  ;;  %v968_v11 = vadd.f32 %v1736_v44, %v900_v9 }
 0x122   :  { %v1016_v14 = vmax.f32 %v952_v10, 0.0  ;;  %v1032_v15 = vmax.f32 %v968_v11, 0.0 }
 0x124   :  { %v1483_v16 = vpack.c.bf16 %v1016_v14, %v1015_v12  ;;  %v1523_v17 = vpack.c.bf16 %v1032_v15, %v1031_v13 }
 0x126   :  { %1547 = vst [vmem:[%s1965_s4 + $0xb8] sm:$0xff] %v1483_v16  }
 0x127   :  { %1555 = vst [vmem:[%s1965_s4 + $0xf8] sm:$0xff] %v1523_v17  }

// kernel: resnet_forward.13
= control target key start
LH: loop header
LB: loop body
LE: loop exit
PB: predicated region body
PF: predicated region fallthrough
CT: control target
= control target key end

     0   :  { %s2820_s1 = inlined_call_operand.vmem [shape: bf16[256,128], index: 1, kind: input, shape index: {}]   ;;  %s2821_s0 = inlined_call_operand.vmem [shape: bf16[512,256], index: 0, kind: input, shape index: {}]   ;;  %s2822_s2 = inlined_call_operand.vmem [shape: f32[1,128], index: 2, kind: input, shape index: {}]   ;;  %s2823_s3 = inlined_call_operand.vmem [shape: f32[1,128], index: 3, kind: input, shape index: {}]   ;;  %s2824_s4 = inlined_call_operand.vmem [shape: bf16[512,128], index: 4, kind: output, shape index: {}]  }
   0x1   :  { %v1917_v0 = vld [vmem:[%s2820_s1 + $0x38] sm:$0xff]  ;;  %v1916_v2 = vld [vmem:[%s2820_s1 + $0x30] sm:$0xff]  ;;  %v1915_v4 = vld [vmem:[%s2820_s1 + $0x28] sm:$0xff] }
   0x2   :  { %v1925_v1 = vld [vmem:[%s2820_s1 + $0x78] sm:$0xff]  ;;  %661 = vmatpush.bf16.msra.mxu0 %v1917_v0  ;;  %2117 = vmatpush.bf16.msra.mxu2 %v1917_v0  ;;  %v1924_v3 = vld [vmem:[%s2820_s1 + $0x70] sm:$0xff]  ;;  %v1923_v5 = vld [vmem:[%s2820_s1 + $0x68] sm:$0xff] }
   0x3   :  { %830 = vmatpush.bf16.msra.mxu1 %v1925_v1  ;;  %2125 = vmatpush.bf16.msra.mxu3 %v1925_v1  ;;  %v1914_v6 = vld [vmem:[%s2820_s1 + $0x20] sm:$0xff]  ;;  %v1913_v8 = vld [vmem:[%s2820_s1 + $0x18] sm:$0xff]  ;;  %v1912_v10 = vld [vmem:[%s2820_s1 + $0x10] sm:$0xff] }
   0x4   :  { %v1922_v7 = vld [vmem:[%s2820_s1 + $0x60] sm:$0xff]  ;;  %v1921_v9 = vld [vmem:[%s2820_s1 + $0x58] sm:$0xff]  ;;  %v1920_v11 = vld [vmem:[%s2820_s1 + $0x50] sm:$0xff] }
   0x5   :  { %v1911_v12 = vld [vmem:[%s2820_s1 + $0x8] sm:$0xff]  ;;  %v1910_v14 = vld [vmem:[%s2820_s1] sm:$0xff]  ;;  %v1536_v28 = vld [vmem:[%s2821_s0 + $0x10] sm:$0xf] }
   0x6   :  { %662 = vmatpush.bf16.msra.mxu0 %v1916_v2  ;;  %2118 = vmatpush.bf16.msra.mxu2 %v1916_v2  ;;  %v1919_v13 = vld [vmem:[%s2820_s1 + $0x48] sm:$0xff]  ;;  %v1918_v15 = vld [vmem:[%s2820_s1 + $0x40] sm:$0xff]  ;;  %v1849_v29 = vld [vmem:[%s2821_s0 + $0x14] sm:$0xf0] }
   0x7   :  { %831 = vmatpush.bf16.msra.mxu1 %v1924_v3  ;;  %2126 = vmatpush.bf16.msra.mxu3 %v1924_v3  ;;  %v1528_v16 = vld [vmem:[%s2821_s0] sm:$0xf]  ;;  %v1847_v17 = vld [vmem:[%s2821_s0 + $0x4] sm:$0xf0]  ;;  %v1846_v20 = vld [vmem:[%s2821_s0 + $0x4] sm:$0xf]  ;;  %v1537_v36 = vor.u32 %v1849_v29, %v1536_v28 }
   0x8   :  { %v1656_v18 = vld [vmem:[%s2821_s0 + $0x100] sm:$0xf]  ;;  %v1879_v19 = vld [vmem:[%s2821_s0 + $0x104] sm:$0xf0]  ;;  %v1530_v21 = vld [vmem:[%s2821_s0 + $0x8] sm:$0xf0]  ;;  %v1529_v24 = vor.u32 %v1847_v17, %v1528_v16 }
   0x9   :  { %v1878_v22 = vld [vmem:[%s2821_s0 + $0x104] sm:$0xf]  ;;  %v1658_v23 = vld [vmem:[%s2821_s0 + $0x108] sm:$0xf0]  ;;  %v1657_v25 = vor.u32 %v1879_v19, %v1656_v18  ;;  %v1533_v26 = vor.u32 %v1846_v20, %v1530_v21  ;;  %v1664_v30 = vld [vmem:[%s2821_s0 + $0x110] sm:$0xf] }
   0xa   :  { %663 = vmatpush.bf16.msra.mxu0 %v1915_v4  ;;  %2119 = vmatpush.bf16.msra.mxu2 %v1915_v4  ;;  %v1661_v27 = vor.u32 %v1878_v22, %v1658_v23  ;;  %v1881_v31 = vld [vmem:[%s2821_s0 + $0x114] sm:$0xf0]  ;;  %v1848_v32 = vld [vmem:[%s2821_s0 + $0x14] sm:$0xf]  ;;  %v1538_v33 = vld [vmem:[%s2821_s0 + $0x18] sm:$0xf0] }
   0xb   :  { %832 = vmatpush.bf16.msra.mxu1 %v1923_v5  ;;  %2127 = vmatpush.bf16.msra.mxu3 %v1923_v5  ;;  %v1880_v34 = vld [vmem:[%s2821_s0 + $0x114] sm:$0xf]  ;;  %v1666_v35 = vld [vmem:[%s2821_s0 + $0x118] sm:$0xf0]  ;;  %v1665_v37 = vor.u32 %v1881_v31, %v1664_v30  ;;  %v1541_v38 = vor.u32 %v1848_v32, %v1538_v33  ;;  %v1544_v40 = vld [vmem:[%s2821_s0 + $0x20] sm:$0xf] }
   0xc   :  { %v1669_v39 = vor.u32 %v1880_v34, %v1666_v35  ;;  %v1851_v41 = vld [vmem:[%s2821_s0 + $0x24] sm:$0xf0]  ;;  %v1672_v42 = vld [vmem:[%s2821_s0 + $0x120] sm:$0xf]  ;;  %v1850_v44 = vld [vmem:[%s2821_s0 + $0x24] sm:$0xf] }
   0xd   :  { %v1883_v43 = vld [vmem:[%s2821_s0 + $0x124] sm:$0xf0]  ;;  %v1546_v45 = vld [vmem:[%s2821_s0 + $0x28] sm:$0xf0]  ;;  %v1882_v46 = vld [vmem:[%s2821_s0 + $0x124] sm:$0xf]  ;;  %v1545_v48 = vor.u32 %v1851_v41, %v1544_v40 }
   0xe   :  { %664 = vmatpush.bf16.msra.mxu0 %v1914_v6  ;;  %2120 = vmatpush.bf16.msra.mxu2 %v1914_v6  ;;  %v1674_v47 = vld [vmem:[%s2821_s0 + $0x128] sm:$0xf0]  ;;  %v1673_v49 = vor.u32 %v1883_v43, %v1672_v42  ;;  %v1549_v50 = vor.u32 %v1850_v44, %v1546_v45  ;;  %v1552_v52 = vld [vmem:[%s2821_s0 + $0x30] sm:$0xf]  ;;  %v1853_v53 = vld [vmem:[%s2821_s0 + $0x34] sm:$0xf0] }
   0xf   :  { %833 = vmatpush.bf16.msra.mxu1 %v1922_v7  ;;  %2128 = vmatpush.bf16.msra.mxu3 %v1922_v7  ;;  %v1677_v51 = vor.u32 %v1882_v46, %v1674_v47  ;;  %v1680_v54 = vld [vmem:[%s2821_s0 + $0x130] sm:$0xf]  ;;  %v1885_v55 = vld [vmem:[%s2821_s0 + $0x134] sm:$0xf0]  ;;  %v1852_v56 = vld [vmem:[%s2821_s0 + $0x34] sm:$0xf]  ;;  %v1553_v60 = vor.u32 %v1853_v53, %v1552_v52 }
  0x10   :  { %v1554_v57 = vld [vmem:[%s2821_s0 + $0x38] sm:$0xf0]  ;;  %v1884_v58 = vld [vmem:[%s2821_s0 + $0x134] sm:$0xf]  ;;  %v1681_v61 = vor.u32 %v1885_v55, %v1680_v54  ;;  %v1560_v0 = vld [vmem:[%s2821_s0 + $0x40] sm:$0xf] }
  0x11   :  { %v1682_v59 = vld [vmem:[%s2821_s0 + $0x138] sm:$0xf0]  ;;  %v1557_v62 = vor.u32 %v1852_v56, %v1554_v57  ;;  %v1855_v1 = vld [vmem:[%s2821_s0 + $0x44] sm:$0xf0]  ;;  %v1688_v2 = vld [vmem:[%s2821_s0 + $0x140] sm:$0xf] }
  0x12   :  { %665 = vmatpush.bf16.msra.mxu0 %v1913_v8  ;;  %2121 = vmatpush.bf16.msra.mxu2 %v1913_v8  ;;  %v1685_v63 = vor.u32 %v1884_v58, %v1682_v59  ;;  %v1887_v3 = vld [vmem:[%s2821_s0 + $0x144] sm:$0xf0]  ;;  %v1854_v4 = vld [vmem:[%s2821_s0 + $0x44] sm:$0xf]  ;;  %v1562_v5 = vld [vmem:[%s2821_s0 + $0x48] sm:$0xf0]  ;;  %v1561_v8 = vor.u32 %v1855_v1, %v1560_v0 }
  0x13   :  { %834 = vmatpush.bf16.msra.mxu1 %v1921_v9  ;;  %2129 = vmatpush.bf16.msra.mxu3 %v1921_v9  ;;  %v1886_v6 = vld [vmem:[%s2821_s0 + $0x144] sm:$0xf]  ;;  %v1690_v7 = vld [vmem:[%s2821_s0 + $0x148] sm:$0xf0]  ;;  %v1689_v9 = vor.u32 %v1887_v3, %v1688_v2  ;;  %v1856_v16 = vld [vmem:[%s2821_s0 + $0x54] sm:$0xf] }
  0x14   :  { %v1570_v17 = vld [vmem:[%s2821_s0 + $0x58] sm:$0xf0]  ;;  %v1888_v18 = vld [vmem:[%s2821_s0 + $0x154] sm:$0xf]  ;;  %v1858_v28 = vld [vmem:[%s2821_s0 + $0x64] sm:$0xf] }
  0x15   :  { %v1698_v19 = vld [vmem:[%s2821_s0 + $0x158] sm:$0xf0]  ;;  %v1573_v22 = vor.u32 %v1856_v16, %v1570_v17  ;;  %v1578_v29 = vld [vmem:[%s2821_s0 + $0x68] sm:$0xf0]  ;;  %v1890_v30 = vld [vmem:[%s2821_s0 + $0x164] sm:$0xf] }
  0x16   :  { %666 = vmatpush.bf16.msra.mxu0 %v1912_v10  ;;  %2122 = vmatpush.bf16.msra.mxu2 %v1912_v10  ;;  %v1565_v10 = vor.u32 %v1854_v4, %v1562_v5  ;;  %v1701_v23 = vor.u32 %v1888_v18, %v1698_v19  ;;  %v1706_v31 = vld [vmem:[%s2821_s0 + $0x168] sm:$0xf0]  ;;  %v1581_v34 = vor.u32 %v1858_v28, %v1578_v29  ;;  %v1860_v40 = vld [vmem:[%s2821_s0 + $0x74] sm:$0xf]  ;;  %v1586_v41 = vld [vmem:[%s2821_s0 + $0x78] sm:$0xf0] }
  0x17   :  { %835 = vmatpush.bf16.msra.mxu1 %v1920_v11  ;;  %2130 = vmatpush.bf16.msra.mxu3 %v1920_v11  ;;  %v1693_v11 = vor.u32 %v1886_v6, %v1690_v7  ;;  %v1709_v35 = vor.u32 %v1890_v30, %v1706_v31  ;;  %v1892_v42 = vld [vmem:[%s2821_s0 + $0x174] sm:$0xf]  ;;  %v1714_v43 = vld [vmem:[%s2821_s0 + $0x178] sm:$0xf0]  ;;  %v1589_v46 = vor.u32 %v1860_v40, %v1586_v41  ;;  %v1862_v52 = vld [vmem:[%s2821_s0 + $0x84] sm:$0xf] }
  0x18   :  { %v1717_v47 = vor.u32 %v1892_v42, %v1714_v43  ;;  %v1594_v53 = vld [vmem:[%s2821_s0 + $0x88] sm:$0xf0]  ;;  %v1894_v54 = vld [vmem:[%s2821_s0 + $0x184] sm:$0xf]  ;;  %v2435_v3 = vld [vmem:[%s2823_s3] ss:$0 sm:$0xff] }
  0x19   :  { %v1722_v55 = vld [vmem:[%s2821_s0 + $0x188] sm:$0xf0]  ;;  %v1597_v59 = vor.u32 %v1862_v52, %v1594_v53  ;;  %v1896_v16 = vld [vmem:[%s2821_s0 + $0x194] sm:$0xf]  ;;  %v1730_v17 = vld [vmem:[%s2821_s0 + $0x198] sm:$0xf0] }
  0x1a   :  { %667 = vmatpush.bf16.msra.mxu0 %v1911_v12  ;;  %2123 = vmatpush.bf16.msra.mxu2 %v1911_v12  ;;  %v1568_v12 = vld [vmem:[%s2821_s0 + $0x50] sm:$0xf]  ;;  %v1733_v29 = vor.u32 %v1896_v16, %v1730_v17  ;;  %v1866_v52 = vld [vmem:[%s2821_s0 + $0xa4] sm:$0xf]  ;;  %v1610_v53 = vld [vmem:[%s2821_s0 + $0xa8] sm:$0xf0] }
  0x1b   :  { %836 = vmatpush.bf16.msra.mxu1 %v1919_v13  ;;  %2131 = vmatpush.bf16.msra.mxu3 %v1919_v13  ;;  %v1857_v13 = vld [vmem:[%s2821_s0 + $0x54] sm:$0xf0] }
  0x1c   :  { %v1569_v20 = vor.u32 %v1857_v13, %v1568_v12  ;;  %v1897_v13 = vld [vmem:[%s2821_s0 + $0x194] sm:$0xf0] }
  0x1e   :  { %668 = vmatpush.bf16.msra.mxu0 %v1910_v14  ;;  %2124 = vmatpush.bf16.msra.mxu2 %v1910_v14  ;;  %v1696_v14 = vld [vmem:[%s2821_s0 + $0x150] sm:$0xf] }
  0x1f   :  { %837 = vmatpush.bf16.msra.mxu1 %v1918_v15  ;;  %2132 = vmatpush.bf16.msra.mxu3 %v1918_v15  ;;  %v1889_v15 = vld [vmem:[%s2821_s0 + $0x154] sm:$0xf0] }
  0x20   :  { %v1697_v21 = vor.u32 %v1889_v15, %v1696_v14  ;;  %v1864_v14 = vld [vmem:[%s2821_s0 + $0x94] sm:$0xf]  ;;  %v1602_v15 = vld [vmem:[%s2821_s0 + $0x98] sm:$0xf0] }
  0x21   :  { %669 = vmatmul.bf16.vlgmr.msra.gmra.mxu0 %v1529_v24  ;;  %749 = vmatmul.bf16.vlgmr.msra.gmra.mxu2 %v1657_v25  ;;  %v1576_v24 = vld [vmem:[%s2821_s0 + $0x60] sm:$0xf]  ;;  %v1859_v25 = vld [vmem:[%s2821_s0 + $0x64] sm:$0xf0] }
  0x22   :  { %838 = vmatmul.bf16.vlgmr.msra.gmra.mxu1 %v1533_v26  ;;  %918 = vmatmul.bf16.vlgmr.msra.gmra.mxu3 %v1661_v27  ;;  %v1704_v26 = vld [vmem:[%s2821_s0 + $0x160] sm:$0xf]  ;;  %v1891_v27 = vld [vmem:[%s2821_s0 + $0x164] sm:$0xf0]  ;;  %v1577_v32 = vor.u32 %v1859_v25, %v1576_v24  ;;  %v1605_v24 = vor.u32 %v1864_v14, %v1602_v15 }
  0x23   :  { %v1705_v33 = vor.u32 %v1891_v27, %v1704_v26 }
  0x31   :  { %674 = vmatmul.bf16.gmra.mxu0 %v1537_v36  ;;  %754 = vmatmul.bf16.gmra.mxu2 %v1665_v37  ;;  %v1584_v36 = vld [vmem:[%s2821_s0 + $0x70] sm:$0xf]  ;;  %v1861_v37 = vld [vmem:[%s2821_s0 + $0x74] sm:$0xf0] }
  0x32   :  { %843 = vmatmul.bf16.gmra.mxu1 %v1541_v38  ;;  %923 = vmatmul.bf16.gmra.mxu3 %v1669_v39  ;;  %v1712_v38 = vld [vmem:[%s2821_s0 + $0x170] sm:$0xf]  ;;  %v1893_v39 = vld [vmem:[%s2821_s0 + $0x174] sm:$0xf0]  ;;  %v1585_v44 = vor.u32 %v1861_v37, %v1584_v36 }
  0x33   :  { %v1713_v45 = vor.u32 %v1893_v39, %v1712_v38 }
  0x41   :  { %679 = vmatmul.bf16.gmra.mxu0 %v1545_v48  ;;  %759 = vmatmul.bf16.gmra.mxu2 %v1673_v49  ;;  %v1592_v48 = vld [vmem:[%s2821_s0 + $0x80] sm:$0xf]  ;;  %v1863_v49 = vld [vmem:[%s2821_s0 + $0x84] sm:$0xf0] }
  0x42   :  { %848 = vmatmul.bf16.gmra.mxu1 %v1549_v50  ;;  %928 = vmatmul.bf16.gmra.mxu3 %v1677_v51  ;;  %v1720_v50 = vld [vmem:[%s2821_s0 + $0x180] sm:$0xf]  ;;  %v1895_v51 = vld [vmem:[%s2821_s0 + $0x184] sm:$0xf0]  ;;  %v1593_v56 = vor.u32 %v1863_v49, %v1592_v48 }
  0x43   :  { %v1721_v57 = vor.u32 %v1895_v51, %v1720_v50  ;;  %v1736_v48 = vld [vmem:[%s2821_s0 + $0x1a0] sm:$0xf]  ;;  %v1899_v51 = vld [vmem:[%s2821_s0 + $0x1a4] sm:$0xf0] }
  0x51   :  { %684 = vmatmul.bf16.gmra.mxu0 %v1553_v60  ;;  %764 = vmatmul.bf16.gmra.mxu2 %v1681_v61  ;;  %v1725_v60 = vor.u32 %v1894_v54, %v1722_v55  ;;  %v1898_v54 = vld [vmem:[%s2821_s0 + $0x1a4] sm:$0xf]  ;;  %v1738_v55 = vld [vmem:[%s2821_s0 + $0x1a8] sm:$0xf0] }
  0x52   :  { %853 = vmatmul.bf16.gmra.mxu1 %v1557_v62  ;;  %933 = vmatmul.bf16.gmra.mxu3 %v1685_v63  ;;  %v2429_v63 = vld [vmem:[%s2822_s2] ss:$0 sm:$0xff] }
  0x61   :  { %689 = vmatmul.bf16.gmra.mxu0 %v1561_v8  ;;  %769 = vmatmul.bf16.gmra.mxu2 %v1689_v9  ;;  %v1600_v8 = vld [vmem:[%s2821_s0 + $0x90] sm:$0xf]  ;;  %v1865_v9 = vld [vmem:[%s2821_s0 + $0x94] sm:$0xf0] }
  0x62   :  { %858 = vmatmul.bf16.gmra.mxu1 %v1565_v10  ;;  %938 = vmatmul.bf16.gmra.mxu3 %v1693_v11  ;;  %v1728_v10 = vld [vmem:[%s2821_s0 + $0x190] sm:$0xf] }
  0x71   :  { %694 = vmatmul.bf16.gmra.mxu0 %v1569_v20  ;;  %774 = vmatmul.bf16.gmra.mxu2 %v1697_v21 }
  0x72   :  { %863 = vmatmul.bf16.gmra.mxu1 %v1573_v22  ;;  %943 = vmatmul.bf16.gmra.mxu3 %v1701_v23  ;;  %v1601_v22 = vor.u32 %v1865_v9, %v1600_v8  ;;  %v1729_v23 = vor.u32 %v1897_v13, %v1728_v10 }
  0x81   :  { %699 = vmatmul.bf16.gmra.mxu0 %v1577_v32  ;;  %779 = vmatmul.bf16.gmra.mxu2 %v1705_v33 }
  0x82   :  { %868 = vmatmul.bf16.gmra.mxu1 %v1581_v34  ;;  %948 = vmatmul.bf16.gmra.mxu3 %v1709_v35 }
  0x91   :  { %704 = vmatmul.bf16.gmra.mxu0 %v1585_v44  ;;  %784 = vmatmul.bf16.gmra.mxu2 %v1713_v45 }
  0x92   :  { %873 = vmatmul.bf16.gmra.mxu1 %v1589_v46  ;;  %953 = vmatmul.bf16.gmra.mxu3 %v1717_v47  ;;  %v1608_v46 = vld [vmem:[%s2821_s0 + $0xa0] sm:$0xf]  ;;  %v1867_v47 = vld [vmem:[%s2821_s0 + $0xa4] sm:$0xf0] }
  0x9e   :  { %v670_v58 = vpop.f32.mrf.mxu0 }
  0x9f   :  { %v839_v61 = vpop.f32.mrf.mxu1 }
  0xa0   :  { %v840_v62 = vadd.f32 %v839_v61, %v670_v58  ;;  %v1737_v61 = vor.u32 %v1899_v51, %v1736_v48 }
  0xa1   :  { %709 = vmatmul.bf16.gmra.mxu0 %v1593_v56  ;;  %789 = vmatmul.bf16.gmra.mxu2 %v1721_v57 }
  0xa2   :  { %878 = vmatmul.bf16.gmra.mxu1 %v1597_v59  ;;  %958 = vmatmul.bf16.gmra.mxu3 %v1725_v60  ;;  %v1198_v2 = vmul.f32 %v2429_v63, %v840_v62  ;;  %v1609_v60 = vor.u32 %v1867_v47, %v1608_v46  ;;  %v1613_v62 = vor.u32 %v1866_v52, %v1610_v53 }
  0xa4   :  { %v750_v0 = vpop.f32.mrf.mxu2  ;;  %v1266_v11 = vadd.f32 %v2435_v3, %v1198_v2 }
  0xa5   :  { %v919_v1 = vpop.f32.mrf.mxu3 }
  0xa6   :  { %v672_v4 = vpop.f32.mrf.mxu0  ;;  %v920_v6 = vadd.f32 %v919_v1, %v750_v0  ;;  %v1330_v25 = vmax.f32 %v1266_v11, 0.0 }
  0xa7   :  { %v841_v5 = vpop.f32.mrf.mxu1 }
  0xa8   :  { %v842_v7 = vadd.f32 %v841_v5, %v672_v4  ;;  %v1230_v18 = vmul.f32 %v2429_v63, %v920_v6  ;;  %v1741_v5 = vor.u32 %v1898_v54, %v1738_v55 }
  0xaa   :  { %v1199_v12 = vmul.f32 %v2429_v63, %v842_v7  ;;  %v1298_v31 = vadd.f32 %v2435_v3, %v1230_v18 }
  0xac   :  { %v1267_v19 = vadd.f32 %v2435_v3, %v1199_v12  ;;  %v752_v20 = vpop.f32.mrf.mxu2  ;;  %v1362_v36 = vmax.f32 %v1298_v31, 0.0  ;;  %v1746_v31 = vld [vmem:[%s2821_s0 + $0x1b8] sm:$0xf0] }
  0xad   :  { %v921_v21 = vpop.f32.mrf.mxu3 }
  0xae   :  { %v1331_v26 = vmax.f32 %v1267_v19, 0.0  ;;  %v922_v27 = vadd.f32 %v921_v21, %v752_v20  ;;  %v675_v28 = vpop.f32.mrf.mxu0 }
  0xaf   :  { %v844_v30 = vpop.f32.mrf.mxu1 }
  0xb0   :  { %v1929_v32 = vpack.c.bf16 %v1331_v26, %v1330_v25  ;;  %v1231_v33 = vmul.f32 %v2429_v63, %v922_v27  ;;  %v845_v35 = vadd.f32 %v844_v30, %v675_v28  ;;  %v1901_v27 = vld [vmem:[%s2821_s0 + $0x1b4] sm:$0xf0]  ;;  %v1868_v28 = vld [vmem:[%s2821_s0 + $0xb4] sm:$0xf] }
  0xb1   :  { %714 = vmatmul.bf16.gmra.mxu0 %v1601_v22  ;;  %794 = vmatmul.bf16.gmra.mxu2 %v1729_v23  ;;  %v1616_v22 = vld [vmem:[%s2821_s0 + $0xb0] sm:$0xf]  ;;  %v1869_v23 = vld [vmem:[%s2821_s0 + $0xb4] sm:$0xf0]  ;;  %v1900_v30 = vld [vmem:[%s2821_s0 + $0x1b4] sm:$0xf] }
  0xb2   :  { %1930 = vst [vmem:[%s2824_s4] sm:$0xff] %v1929_v32   ;;  %v1299_v34 = vadd.f32 %v2435_v3, %v1231_v33  ;;  %883 = vmatmul.bf16.gmra.mxu1 %v1605_v24  ;;  %963 = vmatmul.bf16.gmra.mxu3 %v1733_v29  ;;  %v1200_v41 = vmul.f32 %v2429_v63, %v845_v35  ;;  %v1744_v24 = vld [vmem:[%s2821_s0 + $0x1b0] sm:$0xf]  ;;  %v1618_v29 = vld [vmem:[%s2821_s0 + $0xb8] sm:$0xf0] }
  0xb4   :  { %v1363_v37 = vmax.f32 %v1299_v34, 0.0  ;;  %v755_v38 = vpop.f32.mrf.mxu2  ;;  %v1268_v49 = vadd.f32 %v2435_v3, %v1200_v41 }
  0xb5   :  { %v924_v39 = vpop.f32.mrf.mxu3 }
  0xb6   :  { %v2009_v40 = vpack.c.bf16 %v1363_v37, %v1362_v36  ;;  %v677_v42 = vpop.f32.mrf.mxu0  ;;  %v925_v44 = vadd.f32 %v924_v39, %v755_v38  ;;  %v1332_v0 = vmax.f32 %v1268_v49, 0.0  ;;  %v1617_v36 = vor.u32 %v1869_v23, %v1616_v22 }
  0xb7   :  { %v846_v43 = vpop.f32.mrf.mxu1  ;;  %v1745_v37 = vor.u32 %v1901_v27, %v1744_v24  ;;  %v1621_v38 = vor.u32 %v1868_v28, %v1618_v29 }
  0xb8   :  { %2101 = vst [vmem:[%s2824_s4 + $0x80] sm:$0xff] %v2009_v40   ;;  %v847_v45 = vadd.f32 %v846_v43, %v677_v42  ;;  %v1232_v56 = vmul.f32 %v2429_v63, %v925_v44  ;;  %v1749_v43 = vor.u32 %v1900_v30, %v1746_v31 }
  0xba   :  { %v1201_v50 = vmul.f32 %v2429_v63, %v847_v45  ;;  %v1300_v7 = vadd.f32 %v2435_v3, %v1232_v56 }
  0xbc   :  { %v1269_v57 = vadd.f32 %v2435_v3, %v1201_v50  ;;  %v757_v58 = vpop.f32.mrf.mxu2  ;;  %v1364_v12 = vmax.f32 %v1300_v7, 0.0  ;;  %v1754_v7 = vld [vmem:[%s2821_s0 + $0x1c8] sm:$0xf0] }
  0xbd   :  { %v926_v59 = vpop.f32.mrf.mxu3 }
  0xbe   :  { %v1333_v1 = vmax.f32 %v1269_v57, 0.0  ;;  %v927_v2 = vadd.f32 %v926_v59, %v757_v58  ;;  %v680_v4 = vpop.f32.mrf.mxu0 }
  0xbf   :  { %v849_v6 = vpop.f32.mrf.mxu1 }
  0xc0   :  { %v1934_v8 = vpack.c.bf16 %v1333_v1, %v1332_v0  ;;  %v1233_v9 = vmul.f32 %v2429_v63, %v927_v2  ;;  %v850_v11 = vadd.f32 %v849_v6, %v680_v4  ;;  %v1903_v2 = vld [vmem:[%s2821_s0 + $0x1c4] sm:$0xf0]  ;;  %v1870_v4 = vld [vmem:[%s2821_s0 + $0xc4] sm:$0xf] }
  0xc1   :  { %719 = vmatmul.bf16.gmra.mxu0 %v1609_v60  ;;  %799 = vmatmul.bf16.gmra.mxu2 %v1737_v61  ;;  %v1624_v60 = vld [vmem:[%s2821_s0 + $0xc0] sm:$0xf]  ;;  %v1871_v61 = vld [vmem:[%s2821_s0 + $0xc4] sm:$0xf0]  ;;  %v1902_v6 = vld [vmem:[%s2821_s0 + $0x1c4] sm:$0xf] }
  0xc2   :  { %2086 = vst [vmem:[%s2824_s4 + $0x8] sm:$0xff] %v1934_v8   ;;  %v1301_v10 = vadd.f32 %v2435_v3, %v1233_v9  ;;  %888 = vmatmul.bf16.gmra.mxu1 %v1613_v62  ;;  %968 = vmatmul.bf16.gmra.mxu3 %v1741_v5  ;;  %v1202_v17 = vmul.f32 %v2429_v63, %v850_v11  ;;  %v1752_v62 = vld [vmem:[%s2821_s0 + $0x1c0] sm:$0xf]  ;;  %v1626_v5 = vld [vmem:[%s2821_s0 + $0xc8] sm:$0xf0] }
  0xc4   :  { %v1365_v13 = vmax.f32 %v1301_v10, 0.0  ;;  %v760_v14 = vpop.f32.mrf.mxu2  ;;  %v1270_v25 = vadd.f32 %v2435_v3, %v1202_v17 }
  0xc5   :  { %v929_v15 = vpop.f32.mrf.mxu3 }
  0xc6   :  { %v2014_v16 = vpack.c.bf16 %v1365_v13, %v1364_v12  ;;  %v682_v18 = vpop.f32.mrf.mxu0  ;;  %v930_v20 = vadd.f32 %v929_v15, %v760_v14  ;;  %v1334_v39 = vmax.f32 %v1270_v25, 0.0  ;;  %v1625_v12 = vor.u32 %v1871_v61, %v1624_v60 }
  0xc7   :  { %v851_v19 = vpop.f32.mrf.mxu1  ;;  %v1753_v13 = vor.u32 %v1903_v2, %v1752_v62  ;;  %v1629_v14 = vor.u32 %v1870_v4, %v1626_v5 }
  0xc8   :  { %2102 = vst [vmem:[%s2824_s4 + $0x88] sm:$0xff] %v2014_v16   ;;  %v852_v21 = vadd.f32 %v851_v19, %v682_v18  ;;  %v1234_v32 = vmul.f32 %v2429_v63, %v930_v20  ;;  %v1757_v19 = vor.u32 %v1902_v6, %v1754_v7 }
  0xca   :  { %v1203_v26 = vmul.f32 %v2429_v63, %v852_v21  ;;  %v1302_v45 = vadd.f32 %v2435_v3, %v1234_v32 }
  0xcc   :  { %v1271_v33 = vadd.f32 %v2435_v3, %v1203_v26  ;;  %v762_v34 = vpop.f32.mrf.mxu2  ;;  %v1366_v50 = vmax.f32 %v1302_v45, 0.0  ;;  %v1762_v45 = vld [vmem:[%s2821_s0 + $0x1d8] sm:$0xf0] }
  0xcd   :  { %v931_v35 = vpop.f32.mrf.mxu3 }
  0xce   :  { %v1335_v40 = vmax.f32 %v1271_v33, 0.0  ;;  %v932_v41 = vadd.f32 %v931_v35, %v762_v34  ;;  %v685_v42 = vpop.f32.mrf.mxu0 }
  0xcf   :  { %v854_v44 = vpop.f32.mrf.mxu1 }
  0xd0   :  { %v1939_v46 = vpack.c.bf16 %v1335_v40, %v1334_v39  ;;  %v1235_v47 = vmul.f32 %v2429_v63, %v932_v41  ;;  %v855_v49 = vadd.f32 %v854_v44, %v685_v42  ;;  %v1905_v41 = vld [vmem:[%s2821_s0 + $0x1d4] sm:$0xf0]  ;;  %v1872_v42 = vld [vmem:[%s2821_s0 + $0xd4] sm:$0xf] }
  0xd1   :  { %724 = vmatmul.bf16.gmra.mxu0 %v1617_v36  ;;  %804 = vmatmul.bf16.gmra.mxu2 %v1745_v37  ;;  %v1632_v36 = vld [vmem:[%s2821_s0 + $0xd0] sm:$0xf]  ;;  %v1873_v37 = vld [vmem:[%s2821_s0 + $0xd4] sm:$0xf0]  ;;  %v1904_v44 = vld [vmem:[%s2821_s0 + $0x1d4] sm:$0xf] }
  0xd2   :  { %2087 = vst [vmem:[%s2824_s4 + $0x10] sm:$0xff] %v1939_v46   ;;  %v1303_v48 = vadd.f32 %v2435_v3, %v1235_v47  ;;  %893 = vmatmul.bf16.gmra.mxu1 %v1621_v38  ;;  %973 = vmatmul.bf16.gmra.mxu3 %v1749_v43  ;;  %v1204_v55 = vmul.f32 %v2429_v63, %v855_v49  ;;  %v1760_v38 = vld [vmem:[%s2821_s0 + $0x1d0] sm:$0xf]  ;;  %v1634_v43 = vld [vmem:[%s2821_s0 + $0xd8] sm:$0xf0] }
  0xd4   :  { %v1367_v51 = vmax.f32 %v1303_v48, 0.0  ;;  %v765_v52 = vpop.f32.mrf.mxu2  ;;  %v1272_v0 = vadd.f32 %v2435_v3, %v1204_v55 }
  0xd5   :  { %v934_v53 = vpop.f32.mrf.mxu3 }
  0xd6   :  { %v2019_v54 = vpack.c.bf16 %v1367_v51, %v1366_v50  ;;  %v687_v56 = vpop.f32.mrf.mxu0  ;;  %v935_v58 = vadd.f32 %v934_v53, %v765_v52  ;;  %v1336_v15 = vmax.f32 %v1272_v0, 0.0  ;;  %v1633_v50 = vor.u32 %v1873_v37, %v1632_v36 }
  0xd7   :  { %v856_v57 = vpop.f32.mrf.mxu1  ;;  %v1761_v51 = vor.u32 %v1905_v41, %v1760_v38  ;;  %v1637_v52 = vor.u32 %v1872_v42, %v1634_v43 }
  0xd8   :  { %2103 = vst [vmem:[%s2824_s4 + $0x90] sm:$0xff] %v2019_v54   ;;  %v857_v59 = vadd.f32 %v856_v57, %v687_v56  ;;  %v1236_v8 = vmul.f32 %v2429_v63, %v935_v58  ;;  %v1765_v57 = vor.u32 %v1904_v44, %v1762_v45 }
  0xda   :  { %v1205_v1 = vmul.f32 %v2429_v63, %v857_v59  ;;  %v1304_v21 = vadd.f32 %v2435_v3, %v1236_v8 }
  0xdc   :  { %v1273_v9 = vadd.f32 %v2435_v3, %v1205_v1  ;;  %v767_v10 = vpop.f32.mrf.mxu2  ;;  %v1368_v26 = vmax.f32 %v1304_v21, 0.0  ;;  %v1770_v21 = vld [vmem:[%s2821_s0 + $0x1e8] sm:$0xf0] }
  0xdd   :  { %v936_v11 = vpop.f32.mrf.mxu3 }
  0xde   :  { %v1337_v16 = vmax.f32 %v1273_v9, 0.0  ;;  %v937_v17 = vadd.f32 %v936_v11, %v767_v10  ;;  %v690_v18 = vpop.f32.mrf.mxu0 }
  0xdf   :  { %v859_v20 = vpop.f32.mrf.mxu1 }
  0xe0   :  { %v1944_v22 = vpack.c.bf16 %v1337_v16, %v1336_v15  ;;  %v1237_v23 = vmul.f32 %v2429_v63, %v937_v17  ;;  %v860_v25 = vadd.f32 %v859_v20, %v690_v18  ;;  %v1907_v17 = vld [vmem:[%s2821_s0 + $0x1e4] sm:$0xf0]  ;;  %v1874_v18 = vld [vmem:[%s2821_s0 + $0xe4] sm:$0xf] }
  0xe1   :  { %729 = vmatmul.bf16.gmra.mxu0 %v1625_v12  ;;  %809 = vmatmul.bf16.gmra.mxu2 %v1753_v13  ;;  %v1640_v12 = vld [vmem:[%s2821_s0 + $0xe0] sm:$0xf]  ;;  %v1875_v13 = vld [vmem:[%s2821_s0 + $0xe4] sm:$0xf0]  ;;  %v1906_v20 = vld [vmem:[%s2821_s0 + $0x1e4] sm:$0xf] }
  0xe2   :  { %2088 = vst [vmem:[%s2824_s4 + $0x18] sm:$0xff] %v1944_v22   ;;  %v1305_v24 = vadd.f32 %v2435_v3, %v1237_v23  ;;  %898 = vmatmul.bf16.gmra.mxu1 %v1629_v14  ;;  %978 = vmatmul.bf16.gmra.mxu3 %v1757_v19  ;;  %v1206_v31 = vmul.f32 %v2429_v63, %v860_v25  ;;  %v1768_v14 = vld [vmem:[%s2821_s0 + $0x1e0] sm:$0xf]  ;;  %v1642_v19 = vld [vmem:[%s2821_s0 + $0xe8] sm:$0xf0] }
  0xe4   :  { %v1369_v27 = vmax.f32 %v1305_v24, 0.0  ;;  %v770_v28 = vpop.f32.mrf.mxu2  ;;  %v1274_v39 = vadd.f32 %v2435_v3, %v1206_v31 }
  0xe5   :  { %v939_v29 = vpop.f32.mrf.mxu3 }
  0xe6   :  { %v2024_v30 = vpack.c.bf16 %v1369_v27, %v1368_v26  ;;  %v692_v32 = vpop.f32.mrf.mxu0  ;;  %v940_v34 = vadd.f32 %v939_v29, %v770_v28  ;;  %v1338_v53 = vmax.f32 %v1274_v39, 0.0  ;;  %v1641_v26 = vor.u32 %v1875_v13, %v1640_v12 }
  0xe7   :  { %v861_v33 = vpop.f32.mrf.mxu1  ;;  %v1769_v27 = vor.u32 %v1907_v17, %v1768_v14  ;;  %v1645_v28 = vor.u32 %v1874_v18, %v1642_v19 }
  0xe8   :  { %2104 = vst [vmem:[%s2824_s4 + $0x98] sm:$0xff] %v2024_v30   ;;  %v862_v35 = vadd.f32 %v861_v33, %v692_v32  ;;  %v1238_v46 = vmul.f32 %v2429_v63, %v940_v34  ;;  %v1773_v33 = vor.u32 %v1906_v20, %v1770_v21 }
  0xea   :  { %v1207_v40 = vmul.f32 %v2429_v63, %v862_v35  ;;  %v1306_v59 = vadd.f32 %v2435_v3, %v1238_v46 }
  0xec   :  { %v1275_v47 = vadd.f32 %v2435_v3, %v1207_v40  ;;  %v772_v48 = vpop.f32.mrf.mxu2  ;;  %v1370_v1 = vmax.f32 %v1306_v59, 0.0  ;;  %v1778_v59 = vld [vmem:[%s2821_s0 + $0x1f8] sm:$0xf0] }
  0xed   :  { %v941_v49 = vpop.f32.mrf.mxu3 }
  0xee   :  { %v1339_v54 = vmax.f32 %v1275_v47, 0.0  ;;  %v942_v55 = vadd.f32 %v941_v49, %v772_v48  ;;  %v695_v56 = vpop.f32.mrf.mxu0 }
  0xef   :  { %v864_v58 = vpop.f32.mrf.mxu1 }
  0xf0   :  { %v1949_v60 = vpack.c.bf16 %v1339_v54, %v1338_v53  ;;  %v1239_v61 = vmul.f32 %v2429_v63, %v942_v55  ;;  %v865_v0 = vadd.f32 %v864_v58, %v695_v56  ;;  %v1909_v55 = vld [vmem:[%s2821_s0 + $0x1f4] sm:$0xf0]  ;;  %v1876_v56 = vld [vmem:[%s2821_s0 + $0xf4] sm:$0xf] }
  0xf1   :  { %734 = vmatmul.bf16.gmra.mxu0 %v1633_v50  ;;  %814 = vmatmul.bf16.gmra.mxu2 %v1761_v51  ;;  %v1648_v50 = vld [vmem:[%s2821_s0 + $0xf0] sm:$0xf]  ;;  %v1877_v51 = vld [vmem:[%s2821_s0 + $0xf4] sm:$0xf0]  ;;  %v1908_v58 = vld [vmem:[%s2821_s0 + $0x1f4] sm:$0xf] }
  0xf2   :  { %2089 = vst [vmem:[%s2824_s4 + $0x20] sm:$0xff] %v1949_v60   ;;  %v1307_v62 = vadd.f32 %v2435_v3, %v1239_v61  ;;  %903 = vmatmul.bf16.gmra.mxu1 %v1637_v52  ;;  %983 = vmatmul.bf16.gmra.mxu3 %v1765_v57  ;;  %v1208_v7 = vmul.f32 %v2429_v63, %v865_v0  ;;  %v1776_v52 = vld [vmem:[%s2821_s0 + $0x1f0] sm:$0xf]  ;;  %v1650_v57 = vld [vmem:[%s2821_s0 + $0xf8] sm:$0xf0] }
  0xf4   :  { %v1371_v2 = vmax.f32 %v1307_v62, 0.0  ;;  %v775_v4 = vpop.f32.mrf.mxu2  ;;  %v1276_v15 = vadd.f32 %v2435_v3, %v1208_v7 }
  0xf5   :  { %v944_v5 = vpop.f32.mrf.mxu3 }
  0xf6   :  { %v2029_v6 = vpack.c.bf16 %v1371_v2, %v1370_v1  ;;  %v697_v8 = vpop.f32.mrf.mxu0  ;;  %v945_v10 = vadd.f32 %v944_v5, %v775_v4  ;;  %v1340_v29 = vmax.f32 %v1276_v15, 0.0  ;;  %v1649_v1 = vor.u32 %v1877_v51, %v1648_v50 }
  0xf7   :  { %v866_v9 = vpop.f32.mrf.mxu1  ;;  %v1777_v2 = vor.u32 %v1909_v55, %v1776_v52  ;;  %v1653_v4 = vor.u32 %v1876_v56, %v1650_v57 }
  0xf8   :  { %2105 = vst [vmem:[%s2824_s4 + $0xa0] sm:$0xff] %v2029_v6   ;;  %v867_v11 = vadd.f32 %v866_v9, %v697_v8  ;;  %v1240_v22 = vmul.f32 %v2429_v63, %v945_v10  ;;  %v1781_v9 = vor.u32 %v1908_v58, %v1778_v59 }
  0xfa   :  { %v1209_v16 = vmul.f32 %v2429_v63, %v867_v11  ;;  %v1308_v35 = vadd.f32 %v2435_v3, %v1240_v22 }
  0xfc   :  { %v1277_v23 = vadd.f32 %v2435_v3, %v1209_v16  ;;  %v777_v24 = vpop.f32.mrf.mxu2  ;;  %v1372_v40 = vmax.f32 %v1308_v35, 0.0 }
  0xfd   :  { %v946_v25 = vpop.f32.mrf.mxu3 }
  0xfe   :  { %v1341_v30 = vmax.f32 %v1277_v23, 0.0  ;;  %v947_v31 = vadd.f32 %v946_v25, %v777_v24  ;;  %v700_v32 = vpop.f32.mrf.mxu0 }
  0xff   :  { %v869_v34 = vpop.f32.mrf.mxu1 }
 0x100   :  { %v1954_v36 = vpack.c.bf16 %v1341_v30, %v1340_v29  ;;  %v1241_v37 = vmul.f32 %v2429_v63, %v947_v31  ;;  %v870_v39 = vadd.f32 %v869_v34, %v700_v32 }
 0x101   :  { %739 = vmatmul.bf16.gmra.mxu0 %v1641_v26  ;;  %819 = vmatmul.bf16.gmra.mxu2 %v1769_v27 }
 0x102   :  { %2090 = vst [vmem:[%s2824_s4 + $0x28] sm:$0xff] %v1954_v36   ;;  %v1309_v38 = vadd.f32 %v2435_v3, %v1241_v37  ;;  %908 = vmatmul.bf16.gmra.mxu1 %v1645_v28  ;;  %988 = vmatmul.bf16.gmra.mxu3 %v1773_v33  ;;  %v1210_v45 = vmul.f32 %v2429_v63, %v870_v39 }
 0x104   :  { %v1373_v41 = vmax.f32 %v1309_v38, 0.0  ;;  %v780_v42 = vpop.f32.mrf.mxu2  ;;  %v1278_v53 = vadd.f32 %v2435_v3, %v1210_v45 }
 0x105   :  { %v949_v43 = vpop.f32.mrf.mxu3 }
 0x106   :  { %v2034_v44 = vpack.c.bf16 %v1373_v41, %v1372_v40  ;;  %v702_v46 = vpop.f32.mrf.mxu0  ;;  %v950_v48 = vadd.f32 %v949_v43, %v780_v42  ;;  %v1342_v5 = vmax.f32 %v1278_v53, 0.0 }
 0x107   :  { %v871_v47 = vpop.f32.mrf.mxu1 }
 0x108   :  { %2106 = vst [vmem:[%s2824_s4 + $0xa8] sm:$0xff] %v2034_v44   ;;  %v872_v49 = vadd.f32 %v871_v47, %v702_v46  ;;  %v1242_v60 = vmul.f32 %v2429_v63, %v950_v48 }
 0x10a   :  { %v1211_v54 = vmul.f32 %v2429_v63, %v872_v49  ;;  %v1310_v11 = vadd.f32 %v2435_v3, %v1242_v60 }
 0x10c   :  { %v1279_v61 = vadd.f32 %v2435_v3, %v1211_v54  ;;  %v782_v62 = vpop.f32.mrf.mxu2  ;;  %v1374_v16 = vmax.f32 %v1310_v11, 0.0 }
 0x10d   :  { %v951_v0 = vpop.f32.mrf.mxu3 }
 0x10e   :  { %v1343_v6 = vmax.f32 %v1279_v61, 0.0  ;;  %v952_v7 = vadd.f32 %v951_v0, %v782_v62  ;;  %v705_v8 = vpop.f32.mrf.mxu0 }
 0x10f   :  { %v874_v10 = vpop.f32.mrf.mxu1 }
 0x110   :  { %v1959_v12 = vpack.c.bf16 %v1343_v6, %v1342_v5  ;;  %v1243_v13 = vmul.f32 %v2429_v63, %v952_v7  ;;  %v875_v15 = vadd.f32 %v874_v10, %v705_v8 }
 0x111   :  { %744 = vmatmul.bf16.gmra.mxu0 %v1649_v1  ;;  %824 = vmatmul.bf16.gmra.mxu2 %v1777_v2 }
 0x112   :  { %2091 = vst [vmem:[%s2824_s4 + $0x30] sm:$0xff] %v1959_v12   ;;  %v1311_v14 = vadd.f32 %v2435_v3, %v1243_v13  ;;  %913 = vmatmul.bf16.gmra.mxu1 %v1653_v4  ;;  %993 = vmatmul.bf16.gmra.mxu3 %v1781_v9  ;;  %v1212_v21 = vmul.f32 %v2429_v63, %v875_v15 }
 0x114   :  { %v1375_v17 = vmax.f32 %v1311_v14, 0.0  ;;  %v785_v18 = vpop.f32.mrf.mxu2  ;;  %v1280_v26 = vadd.f32 %v2435_v3, %v1212_v21 }
 0x115   :  { %v954_v19 = vpop.f32.mrf.mxu3 }
 0x116   :  { %v2039_v20 = vpack.c.bf16 %v1375_v17, %v1374_v16  ;;  %v707_v22 = vpop.f32.mrf.mxu0  ;;  %v955_v24 = vadd.f32 %v954_v19, %v785_v18  ;;  %v1344_v32 = vmax.f32 %v1280_v26, 0.0 }
 0x117   :  { %v876_v23 = vpop.f32.mrf.mxu1 }
 0x118   :  { %2107 = vst [vmem:[%s2824_s4 + $0xb0] sm:$0xff] %v2039_v20   ;;  %v877_v25 = vadd.f32 %v876_v23, %v707_v22  ;;  %v1244_v28 = vmul.f32 %v2429_v63, %v955_v24 }
 0x11a   :  { %v1213_v27 = vmul.f32 %v2429_v63, %v877_v25  ;;  %v1312_v37 = vadd.f32 %v2435_v3, %v1244_v28 }
 0x11c   :  { %v1281_v29 = vadd.f32 %v2435_v3, %v1213_v27  ;;  %v787_v30 = vpop.f32.mrf.mxu2  ;;  %v1376_v42 = vmax.f32 %v1312_v37, 0.0 }
 0x11d   :  { %v956_v31 = vpop.f32.mrf.mxu3 }
 0x11e   :  { %v1345_v33 = vmax.f32 %v1281_v29, 0.0  ;;  %v957_v34 = vadd.f32 %v956_v31, %v787_v30  ;;  %v710_v35 = vpop.f32.mrf.mxu0 }
 0x11f   :  { %v879_v36 = vpop.f32.mrf.mxu1 }
 0x120   :  { %v1964_v38 = vpack.c.bf16 %v1345_v33, %v1344_v32  ;;  %v1245_v39 = vmul.f32 %v2429_v63, %v957_v34  ;;  %v880_v41 = vadd.f32 %v879_v36, %v710_v35 }
 0x122   :  { %2092 = vst [vmem:[%s2824_s4 + $0x38] sm:$0xff] %v1964_v38   ;;  %v1313_v40 = vadd.f32 %v2435_v3, %v1245_v39  ;;  %v1214_v47 = vmul.f32 %v2429_v63, %v880_v41 }
 0x124   :  { %v1377_v43 = vmax.f32 %v1313_v40, 0.0  ;;  %v790_v44 = vpop.f32.mrf.mxu2  ;;  %v1282_v52 = vadd.f32 %v2435_v3, %v1214_v47 }
 0x125   :  { %v959_v45 = vpop.f32.mrf.mxu3 }
 0x126   :  { %v2044_v46 = vpack.c.bf16 %v1377_v43, %v1376_v42  ;;  %v712_v48 = vpop.f32.mrf.mxu0  ;;  %v960_v50 = vadd.f32 %v959_v45, %v790_v44  ;;  %v1346_v58 = vmax.f32 %v1282_v52, 0.0 }
 0x127   :  { %v881_v49 = vpop.f32.mrf.mxu1 }
 0x128   :  { %2108 = vst [vmem:[%s2824_s4 + $0xb8] sm:$0xff] %v2044_v46   ;;  %v882_v51 = vadd.f32 %v881_v49, %v712_v48  ;;  %v1246_v54 = vmul.f32 %v2429_v63, %v960_v50 }
 0x12a   :  { %v1215_v53 = vmul.f32 %v2429_v63, %v882_v51  ;;  %v1314_v0 = vadd.f32 %v2435_v3, %v1246_v54 }
 0x12c   :  { %v1283_v55 = vadd.f32 %v2435_v3, %v1215_v53  ;;  %v792_v56 = vpop.f32.mrf.mxu2  ;;  %v1378_v6 = vmax.f32 %v1314_v0, 0.0 }
 0x12d   :  { %v961_v57 = vpop.f32.mrf.mxu3 }
 0x12e   :  { %v1347_v59 = vmax.f32 %v1283_v55, 0.0  ;;  %v962_v60 = vadd.f32 %v961_v57, %v792_v56  ;;  %v715_v61 = vpop.f32.mrf.mxu0 }
 0x12f   :  { %v884_v62 = vpop.f32.mrf.mxu1 }
 0x130   :  { %v1969_v1 = vpack.c.bf16 %v1347_v59, %v1346_v58  ;;  %v1247_v2 = vmul.f32 %v2429_v63, %v962_v60  ;;  %v885_v5 = vadd.f32 %v884_v62, %v715_v61 }
 0x132   :  { %2093 = vst [vmem:[%s2824_s4 + $0x40] sm:$0xff] %v1969_v1   ;;  %v1315_v4 = vadd.f32 %v2435_v3, %v1247_v2  ;;  %v1216_v11 = vmul.f32 %v2429_v63, %v885_v5 }
 0x134   :  { %v1379_v7 = vmax.f32 %v1315_v4, 0.0  ;;  %v795_v8 = vpop.f32.mrf.mxu2  ;;  %v1284_v16 = vadd.f32 %v2435_v3, %v1216_v11 }
 0x135   :  { %v964_v9 = vpop.f32.mrf.mxu3 }
 0x136   :  { %v2049_v10 = vpack.c.bf16 %v1379_v7, %v1378_v6  ;;  %v717_v12 = vpop.f32.mrf.mxu0  ;;  %v965_v14 = vadd.f32 %v964_v9, %v795_v8  ;;  %v1348_v22 = vmax.f32 %v1284_v16, 0.0 }
 0x137   :  { %v886_v13 = vpop.f32.mrf.mxu1 }
 0x138   :  { %2109 = vst [vmem:[%s2824_s4 + $0xc0] sm:$0xff] %v2049_v10   ;;  %v887_v15 = vadd.f32 %v886_v13, %v717_v12  ;;  %v1248_v18 = vmul.f32 %v2429_v63, %v965_v14 }
 0x13a   :  { %v1217_v17 = vmul.f32 %v2429_v63, %v887_v15  ;;  %v1316_v27 = vadd.f32 %v2435_v3, %v1248_v18 }
 0x13c   :  { %v1285_v19 = vadd.f32 %v2435_v3, %v1217_v17  ;;  %v797_v20 = vpop.f32.mrf.mxu2  ;;  %v1380_v32 = vmax.f32 %v1316_v27, 0.0 }
 0x13d   :  { %v966_v21 = vpop.f32.mrf.mxu3 }
 0x13e   :  { %v1349_v23 = vmax.f32 %v1285_v19, 0.0  ;;  %v967_v24 = vadd.f32 %v966_v21, %v797_v20  ;;  %v720_v25 = vpop.f32.mrf.mxu0 }
 0x13f   :  { %v889_v26 = vpop.f32.mrf.mxu1 }
 0x140   :  { %v1974_v28 = vpack.c.bf16 %v1349_v23, %v1348_v22  ;;  %v1249_v29 = vmul.f32 %v2429_v63, %v967_v24  ;;  %v890_v31 = vadd.f32 %v889_v26, %v720_v25 }
 0x142   :  { %2094 = vst [vmem:[%s2824_s4 + $0x48] sm:$0xff] %v1974_v28   ;;  %v1317_v30 = vadd.f32 %v2435_v3, %v1249_v29  ;;  %v1218_v37 = vmul.f32 %v2429_v63, %v890_v31 }
 0x144   :  { %v1381_v33 = vmax.f32 %v1317_v30, 0.0  ;;  %v800_v34 = vpop.f32.mrf.mxu2  ;;  %v1286_v42 = vadd.f32 %v2435_v3, %v1218_v37 }
 0x145   :  { %v969_v35 = vpop.f32.mrf.mxu3 }
 0x146   :  { %v2054_v36 = vpack.c.bf16 %v1381_v33, %v1380_v32  ;;  %v722_v38 = vpop.f32.mrf.mxu0  ;;  %v970_v40 = vadd.f32 %v969_v35, %v800_v34  ;;  %v1350_v48 = vmax.f32 %v1286_v42, 0.0 }
 0x147   :  { %v891_v39 = vpop.f32.mrf.mxu1 }
 0x148   :  { %2110 = vst [vmem:[%s2824_s4 + $0xc8] sm:$0xff] %v2054_v36   ;;  %v892_v41 = vadd.f32 %v891_v39, %v722_v38  ;;  %v1250_v44 = vmul.f32 %v2429_v63, %v970_v40 }
 0x14a   :  { %v1219_v43 = vmul.f32 %v2429_v63, %v892_v41  ;;  %v1318_v53 = vadd.f32 %v2435_v3, %v1250_v44 }
 0x14c   :  { %v1287_v45 = vadd.f32 %v2435_v3, %v1219_v43  ;;  %v802_v46 = vpop.f32.mrf.mxu2  ;;  %v1382_v58 = vmax.f32 %v1318_v53, 0.0 }
 0x14d   :  { %v971_v47 = vpop.f32.mrf.mxu3 }
 0x14e   :  { %v1351_v49 = vmax.f32 %v1287_v45, 0.0  ;;  %v972_v50 = vadd.f32 %v971_v47, %v802_v46  ;;  %v725_v51 = vpop.f32.mrf.mxu0 }
 0x14f   :  { %v894_v52 = vpop.f32.mrf.mxu1 }
 0x150   :  { %v1979_v54 = vpack.c.bf16 %v1351_v49, %v1350_v48  ;;  %v1251_v55 = vmul.f32 %v2429_v63, %v972_v50  ;;  %v895_v57 = vadd.f32 %v894_v52, %v725_v51 }
 0x152   :  { %2095 = vst [vmem:[%s2824_s4 + $0x50] sm:$0xff] %v1979_v54   ;;  %v1319_v56 = vadd.f32 %v2435_v3, %v1251_v55  ;;  %v1220_v0 = vmul.f32 %v2429_v63, %v895_v57 }
 0x154   :  { %v1383_v59 = vmax.f32 %v1319_v56, 0.0  ;;  %v805_v60 = vpop.f32.mrf.mxu2  ;;  %v1288_v6 = vadd.f32 %v2435_v3, %v1220_v0 }
 0x155   :  { %v974_v61 = vpop.f32.mrf.mxu3 }
 0x156   :  { %v2059_v62 = vpack.c.bf16 %v1383_v59, %v1382_v58  ;;  %v727_v1 = vpop.f32.mrf.mxu0  ;;  %v975_v4 = vadd.f32 %v974_v61, %v805_v60  ;;  %v1352_v12 = vmax.f32 %v1288_v6, 0.0 }
 0x157   :  { %v896_v2 = vpop.f32.mrf.mxu1 }
 0x158   :  { %2111 = vst [vmem:[%s2824_s4 + $0xd0] sm:$0xff] %v2059_v62   ;;  %v897_v5 = vadd.f32 %v896_v2, %v727_v1  ;;  %v1252_v8 = vmul.f32 %v2429_v63, %v975_v4 }
 0x15a   :  { %v1221_v7 = vmul.f32 %v2429_v63, %v897_v5  ;;  %v1320_v17 = vadd.f32 %v2435_v3, %v1252_v8 }
 0x15c   :  { %v1289_v9 = vadd.f32 %v2435_v3, %v1221_v7  ;;  %v807_v10 = vpop.f32.mrf.mxu2  ;;  %v1384_v22 = vmax.f32 %v1320_v17, 0.0 }
 0x15d   :  { %v976_v11 = vpop.f32.mrf.mxu3 }
 0x15e   :  { %v1353_v13 = vmax.f32 %v1289_v9, 0.0  ;;  %v977_v14 = vadd.f32 %v976_v11, %v807_v10  ;;  %v730_v15 = vpop.f32.mrf.mxu0 }
 0x15f   :  { %v899_v16 = vpop.f32.mrf.mxu1 }
 0x160   :  { %v1984_v18 = vpack.c.bf16 %v1353_v13, %v1352_v12  ;;  %v1253_v19 = vmul.f32 %v2429_v63, %v977_v14  ;;  %v900_v21 = vadd.f32 %v899_v16, %v730_v15 }
 0x162   :  { %2096 = vst [vmem:[%s2824_s4 + $0x58] sm:$0xff] %v1984_v18   ;;  %v1321_v20 = vadd.f32 %v2435_v3, %v1253_v19  ;;  %v1222_v27 = vmul.f32 %v2429_v63, %v900_v21 }
 0x164   :  { %v1385_v23 = vmax.f32 %v1321_v20, 0.0  ;;  %v810_v24 = vpop.f32.mrf.mxu2  ;;  %v1290_v32 = vadd.f32 %v2435_v3, %v1222_v27 }
 0x165   :  { %v979_v25 = vpop.f32.mrf.mxu3 }
 0x166   :  { %v2064_v26 = vpack.c.bf16 %v1385_v23, %v1384_v22  ;;  %v732_v28 = vpop.f32.mrf.mxu0  ;;  %v980_v30 = vadd.f32 %v979_v25, %v810_v24  ;;  %v1354_v38 = vmax.f32 %v1290_v32, 0.0  ;;  %v2135_v23 = vld [vmem:[%s2822_s2] ss:$0 sm:$0xff] }
 0x167   :  { %v901_v29 = vpop.f32.mrf.mxu1 }
 0x168   :  { %2112 = vst [vmem:[%s2824_s4 + $0xd8] sm:$0xff] %v2064_v26   ;;  %v902_v31 = vadd.f32 %v901_v29, %v732_v28  ;;  %v1254_v34 = vmul.f32 %v2429_v63, %v980_v30 }
 0x16a   :  { %v1223_v33 = vmul.f32 %v2429_v63, %v902_v31  ;;  %v1322_v43 = vadd.f32 %v2435_v3, %v1254_v34 }
 0x16c   :  { %v1291_v35 = vadd.f32 %v2435_v3, %v1223_v33  ;;  %v812_v36 = vpop.f32.mrf.mxu2  ;;  %v1386_v48 = vmax.f32 %v1322_v43, 0.0 }
 0x16d   :  { %v981_v37 = vpop.f32.mrf.mxu3 }
 0x16e   :  { %v1355_v39 = vmax.f32 %v1291_v35, 0.0  ;;  %v982_v40 = vadd.f32 %v981_v37, %v812_v36  ;;  %v735_v41 = vpop.f32.mrf.mxu0 }
 0x16f   :  { %v904_v42 = vpop.f32.mrf.mxu1 }
 0x170   :  { %v1989_v44 = vpack.c.bf16 %v1355_v39, %v1354_v38  ;;  %v1255_v45 = vmul.f32 %v2429_v63, %v982_v40  ;;  %v905_v47 = vadd.f32 %v904_v42, %v735_v41 }
 0x172   :  { %2097 = vst [vmem:[%s2824_s4 + $0x60] sm:$0xff] %v1989_v44   ;;  %v1323_v46 = vadd.f32 %v2435_v3, %v1255_v45  ;;  %v1224_v53 = vmul.f32 %v2429_v63, %v905_v47 }
 0x174   :  { %v1387_v49 = vmax.f32 %v1323_v46, 0.0  ;;  %v815_v50 = vpop.f32.mrf.mxu2  ;;  %v1292_v58 = vadd.f32 %v2435_v3, %v1224_v53 }
 0x175   :  { %v984_v51 = vpop.f32.mrf.mxu3 }
 0x176   :  { %v2069_v52 = vpack.c.bf16 %v1387_v49, %v1386_v48  ;;  %v737_v54 = vpop.f32.mrf.mxu0  ;;  %v985_v56 = vadd.f32 %v984_v51, %v815_v50  ;;  %v1356_v1 = vmax.f32 %v1292_v58, 0.0 }
 0x177   :  { %v906_v55 = vpop.f32.mrf.mxu1 }
 0x178   :  { %2113 = vst [vmem:[%s2824_s4 + $0xe0] sm:$0xff] %v2069_v52   ;;  %v907_v57 = vadd.f32 %v906_v55, %v737_v54  ;;  %v1256_v60 = vmul.f32 %v2429_v63, %v985_v56 }
 0x17a   :  { %v1225_v59 = vmul.f32 %v2429_v63, %v907_v57  ;;  %v1324_v7 = vadd.f32 %v2435_v3, %v1256_v60 }
 0x17c   :  { %v1293_v61 = vadd.f32 %v2435_v3, %v1225_v59  ;;  %v817_v62 = vpop.f32.mrf.mxu2  ;;  %v1388_v12 = vmax.f32 %v1324_v7, 0.0 }
 0x17d   :  { %v986_v0 = vpop.f32.mrf.mxu3 }
 0x17e   :  { %v1357_v2 = vmax.f32 %v1293_v61, 0.0  ;;  %v987_v4 = vadd.f32 %v986_v0, %v817_v62  ;;  %v740_v5 = vpop.f32.mrf.mxu0 }
 0x17f   :  { %v909_v6 = vpop.f32.mrf.mxu1 }
 0x180   :  { %v1994_v8 = vpack.c.bf16 %v1357_v2, %v1356_v1  ;;  %v1257_v9 = vmul.f32 %v2429_v63, %v987_v4  ;;  %v910_v11 = vadd.f32 %v909_v6, %v740_v5 }
 0x182   :  { %2098 = vst [vmem:[%s2824_s4 + $0x68] sm:$0xff] %v1994_v8   ;;  %v1325_v10 = vadd.f32 %v2435_v3, %v1257_v9  ;;  %v1226_v17 = vmul.f32 %v2429_v63, %v910_v11  ;;  %v2136_v63 = vld [vmem:[%s2823_s3] ss:$0 sm:$0xff] }
 0x184   :  { %v1389_v13 = vmax.f32 %v1325_v10, 0.0  ;;  %v820_v14 = vpop.f32.mrf.mxu2  ;;  %v1294_v22 = vadd.f32 %v2435_v3, %v1226_v17 }
 0x185   :  { %v989_v15 = vpop.f32.mrf.mxu3 }
 0x186   :  { %v2074_v16 = vpack.c.bf16 %v1389_v13, %v1388_v12  ;;  %v742_v18 = vpop.f32.mrf.mxu0  ;;  %v990_v20 = vadd.f32 %v989_v15, %v820_v14  ;;  %v1358_v29 = vmax.f32 %v1294_v22, 0.0 }
 0x187   :  { %v911_v19 = vpop.f32.mrf.mxu1 }
 0x188   :  { %2114 = vst [vmem:[%s2824_s4 + $0xe8] sm:$0xff] %v2074_v16   ;;  %v912_v21 = vadd.f32 %v911_v19, %v742_v18  ;;  %v1258_v25 = vmul.f32 %v2135_v23, %v990_v20 }
 0x18a   :  { %v1227_v24 = vmul.f32 %v2135_v23, %v912_v21  ;;  %v1326_v34 = vadd.f32 %v2136_v63, %v1258_v25 }
 0x18c   :  { %v1295_v26 = vadd.f32 %v2136_v63, %v1227_v24  ;;  %v822_v27 = vpop.f32.mrf.mxu2  ;;  %v1390_v38 = vmax.f32 %v1326_v34, 0.0 }
 0x18d   :  { %v991_v28 = vpop.f32.mrf.mxu3 }
 0x18e   :  { %v1359_v30 = vmax.f32 %v1295_v26, 0.0  ;;  %v992_v31 = vadd.f32 %v991_v28, %v822_v27  ;;  %v745_v32 = vpop.f32.mrf.mxu0 }
 0x18f   :  { %v914_v33 = vpop.f32.mrf.mxu1 }
 0x190   :  { %v1999_v3 = vpack.c.bf16 %v1359_v30, %v1358_v29  ;;  %v1259_v35 = vmul.f32 %v2135_v23, %v992_v31  ;;  %v915_v37 = vadd.f32 %v914_v33, %v745_v32 }
 0x192   :  { %2099 = vst [vmem:[%s2824_s4 + $0x70] sm:$0xff] %v1999_v3   ;;  %v1327_v36 = vadd.f32 %v2136_v63, %v1259_v35  ;;  %v1228_v43 = vmul.f32 %v2135_v23, %v915_v37 }
 0x194   :  { %v1391_v39 = vmax.f32 %v1327_v36, 0.0  ;;  %v825_v40 = vpop.f32.mrf.mxu2  ;;  %v1296_v48 = vadd.f32 %v2136_v63, %v1228_v43 }
 0x195   :  { %v994_v41 = vpop.f32.mrf.mxu3 }
 0x196   :  { %v2079_v42 = vpack.c.bf16 %v1391_v39, %v1390_v38  ;;  %v747_v44 = vpop.f32.mrf.mxu0  ;;  %v995_v46 = vadd.f32 %v994_v41, %v825_v40  ;;  %v1360_v54 = vmax.f32 %v1296_v48, 0.0 }
 0x197   :  { %v916_v45 = vpop.f32.mrf.mxu1 }
 0x198   :  { %2115 = vst [vmem:[%s2824_s4 + $0xf0] sm:$0xff] %v2079_v42   ;;  %v917_v47 = vadd.f32 %v916_v45, %v747_v44  ;;  %v1260_v50 = vmul.f32 %v2135_v23, %v995_v46 }
 0x19a   :  { %v1229_v49 = vmul.f32 %v2135_v23, %v917_v47  ;;  %v1328_v57 = vadd.f32 %v2136_v63, %v1260_v50 }
 0x19c   :  { %v1297_v51 = vadd.f32 %v2136_v63, %v1229_v49  ;;  %v827_v52 = vpop.f32.mrf.mxu2  ;;  %v1392_v61 = vmax.f32 %v1328_v57, 0.0 }
 0x19d   :  { %v996_v53 = vpop.f32.mrf.mxu3 }
 0x19e   :  { %v1361_v55 = vmax.f32 %v1297_v51, 0.0  ;;  %v997_v56 = vadd.f32 %v996_v53, %v827_v52 }
 0x1a0   :  { %v2004_v58 = vpack.c.bf16 %v1361_v55, %v1360_v54  ;;  %v1261_v59 = vmul.f32 %v2135_v23, %v997_v56 }
 0x1a2   :  { %2100 = vst [vmem:[%s2824_s4 + $0x78] sm:$0xff] %v2004_v58   ;;  %v1329_v60 = vadd.f32 %v2136_v63, %v1261_v59 }
 0x1a4   :  { %v1393_v62 = vmax.f32 %v1329_v60, 0.0 }
 0x1a6   :  { %v2084_v0 = vpack.c.bf16 %v1393_v62, %v1392_v61 }
 0x1a8   :  { %2116 = vst [vmem:[%s2824_s4 + $0xf8] sm:$0xff] %v2084_v0  }

// kernel: resnet_forward.14
= control target key start
LH: loop header
LB: loop body
LE: loop exit
PB: predicated region body
PF: predicated region fallthrough
CT: control target
= control target key end

     0   :  { %s3293_s1 = inlined_call_operand.vmem [shape: bf16[256,128], index: 1, kind: input, shape index: {}]   ;;  %s3294_s0 = inlined_call_operand.vmem [shape: bf16[512,256], index: 0, kind: input, shape index: {}]   ;;  %s3295_s2 = inlined_call_operand.vmem [shape: f32[1,128], index: 2, kind: input, shape index: {}]   ;;  %s3296_s3 = inlined_call_operand.vmem [shape: f32[1,128], index: 3, kind: input, shape index: {}]   ;;  %s3297_s4 = inlined_call_operand.vmem [shape: bf16[512,128], index: 4, kind: input, shape index: {}]   ;;  %s3298_s5 = inlined_call_operand.vmem [shape: bf16[512,128], index: 5, kind: output, shape index: {}]  }
   0x1   :  { %v2112_v0 = vld [vmem:[%s3293_s1 + $0x38] sm:$0xff]  ;;  %v2111_v2 = vld [vmem:[%s3293_s1 + $0x30] sm:$0xff]  ;;  %v2110_v4 = vld [vmem:[%s3293_s1 + $0x28] sm:$0xff] }
   0x2   :  { %v2120_v1 = vld [vmem:[%s3293_s1 + $0x78] sm:$0xff]  ;;  %664 = vmatpush.bf16.msra.mxu0 %v2112_v0  ;;  %2471 = vmatpush.bf16.msra.mxu2 %v2112_v0  ;;  %v2119_v3 = vld [vmem:[%s3293_s1 + $0x70] sm:$0xff]  ;;  %v2118_v5 = vld [vmem:[%s3293_s1 + $0x68] sm:$0xff] }
   0x3   :  { %833 = vmatpush.bf16.msra.mxu1 %v2120_v1  ;;  %2479 = vmatpush.bf16.msra.mxu3 %v2120_v1  ;;  %v2109_v6 = vld [vmem:[%s3293_s1 + $0x20] sm:$0xff]  ;;  %v2108_v8 = vld [vmem:[%s3293_s1 + $0x18] sm:$0xff]  ;;  %v2107_v10 = vld [vmem:[%s3293_s1 + $0x10] sm:$0xff] }
   0x4   :  { %v2117_v7 = vld [vmem:[%s3293_s1 + $0x60] sm:$0xff]  ;;  %v2116_v9 = vld [vmem:[%s3293_s1 + $0x58] sm:$0xff]  ;;  %v2115_v11 = vld [vmem:[%s3293_s1 + $0x50] sm:$0xff] }
   0x5   :  { %v2106_v12 = vld [vmem:[%s3293_s1 + $0x8] sm:$0xff]  ;;  %v2105_v14 = vld [vmem:[%s3293_s1] sm:$0xff]  ;;  %v1731_v28 = vld [vmem:[%s3294_s0 + $0x10] sm:$0xf] }
   0x6   :  { %665 = vmatpush.bf16.msra.mxu0 %v2111_v2  ;;  %2472 = vmatpush.bf16.msra.mxu2 %v2111_v2  ;;  %v2114_v13 = vld [vmem:[%s3293_s1 + $0x48] sm:$0xff]  ;;  %v2113_v15 = vld [vmem:[%s3293_s1 + $0x40] sm:$0xff]  ;;  %v2044_v29 = vld [vmem:[%s3294_s0 + $0x14] sm:$0xf0] }
   0x7   :  { %834 = vmatpush.bf16.msra.mxu1 %v2119_v3  ;;  %2480 = vmatpush.bf16.msra.mxu3 %v2119_v3  ;;  %v1723_v16 = vld [vmem:[%s3294_s0] sm:$0xf]  ;;  %v2042_v17 = vld [vmem:[%s3294_s0 + $0x4] sm:$0xf0]  ;;  %v2041_v20 = vld [vmem:[%s3294_s0 + $0x4] sm:$0xf]  ;;  %v1732_v36 = vor.u32 %v2044_v29, %v1731_v28 }
   0x8   :  { %v1851_v18 = vld [vmem:[%s3294_s0 + $0x100] sm:$0xf]  ;;  %v2074_v19 = vld [vmem:[%s3294_s0 + $0x104] sm:$0xf0]  ;;  %v1725_v21 = vld [vmem:[%s3294_s0 + $0x8] sm:$0xf0]  ;;  %v1724_v24 = vor.u32 %v2042_v17, %v1723_v16 }
   0x9   :  { %v2073_v22 = vld [vmem:[%s3294_s0 + $0x104] sm:$0xf]  ;;  %v1853_v23 = vld [vmem:[%s3294_s0 + $0x108] sm:$0xf0]  ;;  %v1852_v25 = vor.u32 %v2074_v19, %v1851_v18  ;;  %v1728_v26 = vor.u32 %v2041_v20, %v1725_v21  ;;  %v1859_v30 = vld [vmem:[%s3294_s0 + $0x110] sm:$0xf] }
   0xa   :  { %666 = vmatpush.bf16.msra.mxu0 %v2110_v4  ;;  %2473 = vmatpush.bf16.msra.mxu2 %v2110_v4  ;;  %v1856_v27 = vor.u32 %v2073_v22, %v1853_v23  ;;  %v2076_v31 = vld [vmem:[%s3294_s0 + $0x114] sm:$0xf0]  ;;  %v2043_v32 = vld [vmem:[%s3294_s0 + $0x14] sm:$0xf]  ;;  %v1733_v33 = vld [vmem:[%s3294_s0 + $0x18] sm:$0xf0] }
   0xb   :  { %835 = vmatpush.bf16.msra.mxu1 %v2118_v5  ;;  %2481 = vmatpush.bf16.msra.mxu3 %v2118_v5  ;;  %v2075_v34 = vld [vmem:[%s3294_s0 + $0x114] sm:$0xf]  ;;  %v1861_v35 = vld [vmem:[%s3294_s0 + $0x118] sm:$0xf0]  ;;  %v1860_v37 = vor.u32 %v2076_v31, %v1859_v30  ;;  %v1736_v38 = vor.u32 %v2043_v32, %v1733_v33  ;;  %v1739_v40 = vld [vmem:[%s3294_s0 + $0x20] sm:$0xf] }
   0xc   :  { %v1864_v39 = vor.u32 %v2075_v34, %v1861_v35  ;;  %v2046_v41 = vld [vmem:[%s3294_s0 + $0x24] sm:$0xf0]  ;;  %v1867_v42 = vld [vmem:[%s3294_s0 + $0x120] sm:$0xf]  ;;  %v2045_v44 = vld [vmem:[%s3294_s0 + $0x24] sm:$0xf] }
   0xd   :  { %v2078_v43 = vld [vmem:[%s3294_s0 + $0x124] sm:$0xf0]  ;;  %v1741_v45 = vld [vmem:[%s3294_s0 + $0x28] sm:$0xf0]  ;;  %v2077_v46 = vld [vmem:[%s3294_s0 + $0x124] sm:$0xf]  ;;  %v1740_v48 = vor.u32 %v2046_v41, %v1739_v40 }
   0xe   :  { %667 = vmatpush.bf16.msra.mxu0 %v2109_v6  ;;  %2474 = vmatpush.bf16.msra.mxu2 %v2109_v6  ;;  %v1869_v47 = vld [vmem:[%s3294_s0 + $0x128] sm:$0xf0]  ;;  %v1868_v49 = vor.u32 %v2078_v43, %v1867_v42  ;;  %v1744_v50 = vor.u32 %v2045_v44, %v1741_v45  ;;  %v1747_v52 = vld [vmem:[%s3294_s0 + $0x30] sm:$0xf]  ;;  %v2048_v53 = vld [vmem:[%s3294_s0 + $0x34] sm:$0xf0] }
   0xf   :  { %836 = vmatpush.bf16.msra.mxu1 %v2117_v7  ;;  %2482 = vmatpush.bf16.msra.mxu3 %v2117_v7  ;;  %v1872_v51 = vor.u32 %v2077_v46, %v1869_v47  ;;  %v1875_v54 = vld [vmem:[%s3294_s0 + $0x130] sm:$0xf]  ;;  %v2080_v55 = vld [vmem:[%s3294_s0 + $0x134] sm:$0xf0]  ;;  %v2047_v56 = vld [vmem:[%s3294_s0 + $0x34] sm:$0xf]  ;;  %v1748_v60 = vor.u32 %v2048_v53, %v1747_v52 }
  0x10   :  { %v1749_v57 = vld [vmem:[%s3294_s0 + $0x38] sm:$0xf0]  ;;  %v2079_v58 = vld [vmem:[%s3294_s0 + $0x134] sm:$0xf]  ;;  %v1876_v61 = vor.u32 %v2080_v55, %v1875_v54  ;;  %v1755_v0 = vld [vmem:[%s3294_s0 + $0x40] sm:$0xf] }
  0x11   :  { %v1877_v59 = vld [vmem:[%s3294_s0 + $0x138] sm:$0xf0]  ;;  %v1752_v62 = vor.u32 %v2047_v56, %v1749_v57  ;;  %v2050_v1 = vld [vmem:[%s3294_s0 + $0x44] sm:$0xf0]  ;;  %v1883_v2 = vld [vmem:[%s3294_s0 + $0x140] sm:$0xf] }
  0x12   :  { %668 = vmatpush.bf16.msra.mxu0 %v2108_v8  ;;  %2475 = vmatpush.bf16.msra.mxu2 %v2108_v8  ;;  %v1880_v63 = vor.u32 %v2079_v58, %v1877_v59  ;;  %v2082_v3 = vld [vmem:[%s3294_s0 + $0x144] sm:$0xf0]  ;;  %v2049_v4 = vld [vmem:[%s3294_s0 + $0x44] sm:$0xf]  ;;  %v1757_v5 = vld [vmem:[%s3294_s0 + $0x48] sm:$0xf0]  ;;  %v1756_v8 = vor.u32 %v2050_v1, %v1755_v0 }
  0x13   :  { %837 = vmatpush.bf16.msra.mxu1 %v2116_v9  ;;  %2483 = vmatpush.bf16.msra.mxu3 %v2116_v9  ;;  %v2081_v6 = vld [vmem:[%s3294_s0 + $0x144] sm:$0xf]  ;;  %v1885_v7 = vld [vmem:[%s3294_s0 + $0x148] sm:$0xf0]  ;;  %v1884_v9 = vor.u32 %v2082_v3, %v1883_v2  ;;  %v2051_v16 = vld [vmem:[%s3294_s0 + $0x54] sm:$0xf] }
  0x14   :  { %v1765_v17 = vld [vmem:[%s3294_s0 + $0x58] sm:$0xf0]  ;;  %v2083_v18 = vld [vmem:[%s3294_s0 + $0x154] sm:$0xf]  ;;  %v2053_v28 = vld [vmem:[%s3294_s0 + $0x64] sm:$0xf] }
  0x15   :  { %v1893_v19 = vld [vmem:[%s3294_s0 + $0x158] sm:$0xf0]  ;;  %v1768_v22 = vor.u32 %v2051_v16, %v1765_v17  ;;  %v1773_v29 = vld [vmem:[%s3294_s0 + $0x68] sm:$0xf0]  ;;  %v2085_v30 = vld [vmem:[%s3294_s0 + $0x164] sm:$0xf] }
  0x16   :  { %669 = vmatpush.bf16.msra.mxu0 %v2107_v10  ;;  %2476 = vmatpush.bf16.msra.mxu2 %v2107_v10  ;;  %v1760_v10 = vor.u32 %v2049_v4, %v1757_v5  ;;  %v1896_v23 = vor.u32 %v2083_v18, %v1893_v19  ;;  %v1901_v31 = vld [vmem:[%s3294_s0 + $0x168] sm:$0xf0]  ;;  %v1776_v34 = vor.u32 %v2053_v28, %v1773_v29  ;;  %v2055_v40 = vld [vmem:[%s3294_s0 + $0x74] sm:$0xf]  ;;  %v1781_v41 = vld [vmem:[%s3294_s0 + $0x78] sm:$0xf0] }
  0x17   :  { %838 = vmatpush.bf16.msra.mxu1 %v2115_v11  ;;  %2484 = vmatpush.bf16.msra.mxu3 %v2115_v11  ;;  %v1888_v11 = vor.u32 %v2081_v6, %v1885_v7  ;;  %v1904_v35 = vor.u32 %v2085_v30, %v1901_v31  ;;  %v2087_v42 = vld [vmem:[%s3294_s0 + $0x174] sm:$0xf]  ;;  %v1909_v43 = vld [vmem:[%s3294_s0 + $0x178] sm:$0xf0]  ;;  %v1784_v46 = vor.u32 %v2055_v40, %v1781_v41  ;;  %v2057_v52 = vld [vmem:[%s3294_s0 + $0x84] sm:$0xf] }
  0x18   :  { %v1912_v47 = vor.u32 %v2087_v42, %v1909_v43  ;;  %v1789_v53 = vld [vmem:[%s3294_s0 + $0x88] sm:$0xf0]  ;;  %v2089_v54 = vld [vmem:[%s3294_s0 + $0x184] sm:$0xf]  ;;  %v2794_v1 = vld [vmem:[%s3296_s3] ss:$0 sm:$0xff] }
  0x19   :  { %v1917_v55 = vld [vmem:[%s3294_s0 + $0x188] sm:$0xf0]  ;;  %v1792_v59 = vor.u32 %v2057_v52, %v1789_v53  ;;  %v2122_v3 = vld [vmem:[%s3297_s4] sm:$0xff]   ;;  %v2092_v18 = vld [vmem:[%s3294_s0 + $0x194] sm:$0xf0] }
  0x1a   :  { %670 = vmatpush.bf16.msra.mxu0 %v2106_v12  ;;  %2477 = vmatpush.bf16.msra.mxu2 %v2106_v12  ;;  %v1763_v12 = vld [vmem:[%s3294_s0 + $0x50] sm:$0xf]  ;;  %v2124_v17 = vunpack.c.h.bf16 %v2122_v3  ;;  %v2059_v19 = vld [vmem:[%s3294_s0 + $0x94] sm:$0xf] }
  0x1b   :  { %839 = vmatpush.bf16.msra.mxu1 %v2114_v13  ;;  %2485 = vmatpush.bf16.msra.mxu3 %v2114_v13  ;;  %v2052_v13 = vld [vmem:[%s3294_s0 + $0x54] sm:$0xf0] }
  0x1c   :  { %v1764_v20 = vor.u32 %v2052_v13, %v1763_v12  ;;  %v1795_v12 = vld [vmem:[%s3294_s0 + $0x90] sm:$0xf]  ;;  %v2060_v13 = vld [vmem:[%s3294_s0 + $0x94] sm:$0xf0] }
  0x1d   :  { %v1796_v28 = vor.u32 %v2060_v13, %v1795_v12 }
  0x1e   :  { %671 = vmatpush.bf16.msra.mxu0 %v2105_v14  ;;  %2478 = vmatpush.bf16.msra.mxu2 %v2105_v14  ;;  %v1891_v14 = vld [vmem:[%s3294_s0 + $0x150] sm:$0xf] }
  0x1f   :  { %840 = vmatpush.bf16.msra.mxu1 %v2113_v15  ;;  %2486 = vmatpush.bf16.msra.mxu3 %v2113_v15  ;;  %v2084_v15 = vld [vmem:[%s3294_s0 + $0x154] sm:$0xf0] }
  0x20   :  { %v1892_v21 = vor.u32 %v2084_v15, %v1891_v14  ;;  %v1923_v14 = vld [vmem:[%s3294_s0 + $0x190] sm:$0xf] }
  0x21   :  { %672 = vmatmul.bf16.vlgmr.msra.gmra.mxu0 %v1724_v24  ;;  %752 = vmatmul.bf16.vlgmr.msra.gmra.mxu2 %v1852_v25  ;;  %v1771_v24 = vld [vmem:[%s3294_s0 + $0x60] sm:$0xf]  ;;  %v2054_v25 = vld [vmem:[%s3294_s0 + $0x64] sm:$0xf0]  ;;  %v1924_v29 = vor.u32 %v2092_v18, %v1923_v14 }
  0x22   :  { %841 = vmatmul.bf16.vlgmr.msra.gmra.mxu1 %v1728_v26  ;;  %921 = vmatmul.bf16.vlgmr.msra.gmra.mxu3 %v1856_v27  ;;  %v1899_v26 = vld [vmem:[%s3294_s0 + $0x160] sm:$0xf]  ;;  %v2086_v27 = vld [vmem:[%s3294_s0 + $0x164] sm:$0xf0]  ;;  %v1772_v32 = vor.u32 %v2054_v25, %v1771_v24 }
  0x23   :  { %v1900_v33 = vor.u32 %v2086_v27, %v1899_v26 }
  0x31   :  { %677 = vmatmul.bf16.gmra.mxu0 %v1732_v36  ;;  %757 = vmatmul.bf16.gmra.mxu2 %v1860_v37  ;;  %v1779_v36 = vld [vmem:[%s3294_s0 + $0x70] sm:$0xf]  ;;  %v2056_v37 = vld [vmem:[%s3294_s0 + $0x74] sm:$0xf0] }
  0x32   :  { %846 = vmatmul.bf16.gmra.mxu1 %v1736_v38  ;;  %926 = vmatmul.bf16.gmra.mxu3 %v1864_v39  ;;  %v1907_v38 = vld [vmem:[%s3294_s0 + $0x170] sm:$0xf]  ;;  %v2088_v39 = vld [vmem:[%s3294_s0 + $0x174] sm:$0xf0]  ;;  %v1780_v44 = vor.u32 %v2056_v37, %v1779_v36 }
  0x33   :  { %v1908_v45 = vor.u32 %v2088_v39, %v1907_v38 }
  0x41   :  { %682 = vmatmul.bf16.gmra.mxu0 %v1740_v48  ;;  %762 = vmatmul.bf16.gmra.mxu2 %v1868_v49  ;;  %v1787_v48 = vld [vmem:[%s3294_s0 + $0x80] sm:$0xf]  ;;  %v2058_v49 = vld [vmem:[%s3294_s0 + $0x84] sm:$0xf0] }
  0x42   :  { %851 = vmatmul.bf16.gmra.mxu1 %v1744_v50  ;;  %931 = vmatmul.bf16.gmra.mxu3 %v1872_v51  ;;  %v1915_v50 = vld [vmem:[%s3294_s0 + $0x180] sm:$0xf]  ;;  %v2090_v51 = vld [vmem:[%s3294_s0 + $0x184] sm:$0xf0]  ;;  %v1788_v56 = vor.u32 %v2058_v49, %v1787_v48 }
  0x43   :  { %v1916_v57 = vor.u32 %v2090_v51, %v1915_v50  ;;  %v2409_v48 = vld [vmem:[%s3297_s4 + $0x8] sm:$0xff]  }
  0x51   :  { %687 = vmatmul.bf16.gmra.mxu0 %v1748_v60  ;;  %767 = vmatmul.bf16.gmra.mxu2 %v1876_v61  ;;  %v1920_v60 = vor.u32 %v2089_v54, %v1917_v55 }
  0x52   :  { %856 = vmatmul.bf16.gmra.mxu1 %v1752_v62  ;;  %936 = vmatmul.bf16.gmra.mxu3 %v1880_v63  ;;  %v2788_v63 = vld [vmem:[%s3295_s2] ss:$0 sm:$0xff] }
  0x61   :  { %692 = vmatmul.bf16.gmra.mxu0 %v1756_v8  ;;  %772 = vmatmul.bf16.gmra.mxu2 %v1884_v9  ;;  %v2123_v9 = vunpack.c.l.bf16 %v2122_v3 }
  0x62   :  { %861 = vmatmul.bf16.gmra.mxu1 %v1760_v10  ;;  %941 = vmatmul.bf16.gmra.mxu3 %v1888_v11  ;;  %v2424_v10 = vld [vmem:[%s3297_s4 + $0x80] sm:$0xff]  }
  0x63   :  { %v2187_v26 = vunpack.c.l.bf16 %v2424_v10  ;;  %v2188_v36 = vunpack.c.h.bf16 %v2424_v10 }
  0x71   :  { %697 = vmatmul.bf16.gmra.mxu0 %v1764_v20  ;;  %777 = vmatmul.bf16.gmra.mxu2 %v1892_v21  ;;  %v1797_v20 = vld [vmem:[%s3294_s0 + $0x98] sm:$0xf0]  ;;  %v2091_v21 = vld [vmem:[%s3294_s0 + $0x194] sm:$0xf] }
  0x72   :  { %866 = vmatmul.bf16.gmra.mxu1 %v1768_v22  ;;  %946 = vmatmul.bf16.gmra.mxu3 %v1896_v23  ;;  %v1925_v22 = vld [vmem:[%s3294_s0 + $0x198] sm:$0xf0]  ;;  %v1800_v30 = vor.u32 %v2059_v19, %v1797_v20 }
  0x81   :  { %702 = vmatmul.bf16.gmra.mxu0 %v1772_v32  ;;  %782 = vmatmul.bf16.gmra.mxu2 %v1900_v33 }
  0x82   :  { %871 = vmatmul.bf16.gmra.mxu1 %v1776_v34  ;;  %951 = vmatmul.bf16.gmra.mxu3 %v1904_v35  ;;  %v1928_v35 = vor.u32 %v2091_v21, %v1925_v22 }
  0x91   :  { %707 = vmatmul.bf16.gmra.mxu0 %v1780_v44  ;;  %787 = vmatmul.bf16.gmra.mxu2 %v1908_v45 }
  0x92   :  { %876 = vmatmul.bf16.gmra.mxu1 %v1784_v46  ;;  %956 = vmatmul.bf16.gmra.mxu3 %v1912_v47 }
  0x9e   :  { %v673_v58 = vpop.f32.mrf.mxu0 }
  0x9f   :  { %v842_v61 = vpop.f32.mrf.mxu1 }
  0xa0   :  { %v843_v62 = vadd.f32 %v842_v61, %v673_v58  ;;  %v1931_v61 = vld [vmem:[%s3294_s0 + $0x1a0] sm:$0xf] }
  0xa1   :  { %712 = vmatmul.bf16.gmra.mxu0 %v1788_v56  ;;  %792 = vmatmul.bf16.gmra.mxu2 %v1916_v57  ;;  %v2127_v57 = vunpack.c.l.bf16 %v2409_v48 }
  0xa2   :  { %881 = vmatmul.bf16.gmra.mxu1 %v1792_v59  ;;  %961 = vmatmul.bf16.gmra.mxu3 %v1920_v60  ;;  %v1201_v0 = vmul.f32 %v2788_v63, %v843_v62  ;;  %v1803_v59 = vld [vmem:[%s3294_s0 + $0xa0] sm:$0xf]  ;;  %v2062_v60 = vld [vmem:[%s3294_s0 + $0xa4] sm:$0xf0] }
  0xa3   :  { %v2094_v62 = vld [vmem:[%s3294_s0 + $0x1a4] sm:$0xf0]  ;;  %v1804_v14 = vor.u32 %v2062_v60, %v1803_v59 }
  0xa4   :  { %v753_v2 = vpop.f32.mrf.mxu2  ;;  %v1269_v8 = vadd.f32 %v2794_v1, %v1201_v0 }
  0xa5   :  { %v922_v4 = vpop.f32.mrf.mxu3 }
  0xa6   :  { %v923_v5 = vadd.f32 %v922_v4, %v753_v2  ;;  %v675_v6 = vpop.f32.mrf.mxu0  ;;  %v1461_v23 = vadd.f32 %v2123_v9, %v1269_v8  ;;  %v2425_v2 = vld [vmem:[%s3297_s4 + $0x88] sm:$0xff]   ;;  %v2128_v4 = vunpack.c.h.bf16 %v2409_v48  ;;  %v2096_v48 = vld [vmem:[%s3294_s0 + $0x1b4] sm:$0xf0] }
  0xa7   :  { %v844_v7 = vpop.f32.mrf.mxu1  ;;  %v1933_v8 = vld [vmem:[%s3294_s0 + $0x1a8] sm:$0xf0]  ;;  %v2191_v12 = vunpack.c.l.bf16 %v2425_v2  ;;  %v2192_v22 = vunpack.c.h.bf16 %v2425_v2 }
  0xa8   :  { %v845_v11 = vadd.f32 %v844_v7, %v675_v6  ;;  %v1233_v15 = vmul.f32 %v2788_v63, %v923_v5  ;;  %v1525_v38 = vmax.f32 %v1461_v23, 0.0  ;;  %v2061_v5 = vld [vmem:[%s3294_s0 + $0xa4] sm:$0xf]  ;;  %v1805_v6 = vld [vmem:[%s3294_s0 + $0xa8] sm:$0xf0] }
  0xa9   :  { %v2093_v7 = vld [vmem:[%s3294_s0 + $0x1a4] sm:$0xf] }
  0xaa   :  { %v1202_v16 = vmul.f32 %v2788_v63, %v845_v11  ;;  %v1301_v31 = vadd.f32 %v2794_v1, %v1233_v15  ;;  %v1932_v15 = vor.u32 %v2094_v62, %v1931_v61  ;;  %v1936_v21 = vor.u32 %v2093_v7, %v1933_v8 }
  0xac   :  { %v1270_v24 = vadd.f32 %v2794_v1, %v1202_v16  ;;  %v755_v25 = vpop.f32.mrf.mxu2  ;;  %v1493_v42 = vadd.f32 %v2187_v26, %v1301_v31  ;;  %v1808_v16 = vor.u32 %v2061_v5, %v1805_v6 }
  0xad   :  { %v924_v27 = vpop.f32.mrf.mxu3 }
  0xae   :  { %v1462_v32 = vadd.f32 %v2124_v17, %v1270_v24  ;;  %v925_v33 = vadd.f32 %v924_v27, %v755_v25  ;;  %v678_v34 = vpop.f32.mrf.mxu0  ;;  %v1557_v50 = vmax.f32 %v1493_v42, 0.0 }
  0xaf   :  { %v847_v37 = vpop.f32.mrf.mxu1 }
  0xb0   :  { %v1526_v39 = vmax.f32 %v1462_v32, 0.0  ;;  %v1234_v40 = vmul.f32 %v2788_v63, %v925_v33  ;;  %v848_v41 = vadd.f32 %v847_v37, %v678_v34  ;;  %v2410_v34 = vld [vmem:[%s3297_s4 + $0x10] sm:$0xff]  }
  0xb1   :  { %717 = vmatmul.bf16.gmra.mxu0 %v1796_v28  ;;  %797 = vmatmul.bf16.gmra.mxu2 %v1924_v29 }
  0xb2   :  { %v2252_v43 = vpack.c.bf16 %v1526_v39, %v1525_v38  ;;  %v1302_v44 = vadd.f32 %v2794_v1, %v1234_v40  ;;  %886 = vmatmul.bf16.gmra.mxu1 %v1800_v30  ;;  %966 = vmatmul.bf16.gmra.mxu3 %v1928_v35  ;;  %v1203_v46 = vmul.f32 %v2788_v63, %v848_v41 }
  0xb4   :  { %2253 = vst [vmem:[%s3298_s5] sm:$0xff] %v2252_v43   ;;  %v1494_v45 = vadd.f32 %v2188_v36, %v1302_v44  ;;  %v758_v47 = vpop.f32.mrf.mxu2  ;;  %v1271_v56 = vadd.f32 %v2794_v1, %v1203_v46  ;;  %v2131_v43 = vunpack.c.l.bf16 %v2410_v34  ;;  %v2064_v46 = vld [vmem:[%s3294_s0 + $0xb4] sm:$0xf0] }
  0xb5   :  { %v927_v49 = vpop.f32.mrf.mxu3 }
  0xb6   :  { %v1558_v51 = vmax.f32 %v1494_v45, 0.0  ;;  %v928_v52 = vadd.f32 %v927_v49, %v758_v47  ;;  %v680_v53 = vpop.f32.mrf.mxu0  ;;  %v1463_v9 = vadd.f32 %v2127_v57, %v1271_v56  ;;  %v1811_v45 = vld [vmem:[%s3294_s0 + $0xb0] sm:$0xf]  ;;  %v1941_v56 = vld [vmem:[%s3294_s0 + $0x1b8] sm:$0xf0] }
  0xb7   :  { %v849_v54 = vpop.f32.mrf.mxu1  ;;  %v1939_v47 = vld [vmem:[%s3294_s0 + $0x1b0] sm:$0xf]  ;;  %v1812_v62 = vor.u32 %v2064_v46, %v1811_v45 }
  0xb8   :  { %v2332_v55 = vpack.c.bf16 %v1558_v51, %v1557_v50  ;;  %v850_v58 = vadd.f32 %v849_v54, %v680_v53  ;;  %v1235_v0 = vmul.f32 %v2788_v63, %v928_v52  ;;  %v1527_v24 = vmax.f32 %v1463_v9, 0.0  ;;  %v2426_v50 = vld [vmem:[%s3297_s4 + $0x90] sm:$0xff]   ;;  %v1813_v54 = vld [vmem:[%s3294_s0 + $0xb8] sm:$0xf0] }
  0xb9   :  { %v2132_v52 = vunpack.c.h.bf16 %v2410_v34  ;;  %v2063_v53 = vld [vmem:[%s3294_s0 + $0xb4] sm:$0xf]  ;;  %v2195_v60 = vunpack.c.l.bf16 %v2426_v50  ;;  %v2196_v8 = vunpack.c.h.bf16 %v2426_v50  ;;  %v2098_v34 = vld [vmem:[%s3294_s0 + $0x1c4] sm:$0xf0] }
  0xba   :  { %2455 = vst [vmem:[%s3298_s5 + $0x80] sm:$0xff] %v2332_v55   ;;  %v1204_v3 = vmul.f32 %v2788_v63, %v850_v58  ;;  %v1303_v17 = vadd.f32 %v2794_v1, %v1235_v0  ;;  %v2095_v55 = vld [vmem:[%s3294_s0 + $0x1b4] sm:$0xf]  ;;  %v1940_v0 = vor.u32 %v2096_v48, %v1939_v47  ;;  %v1816_v2 = vor.u32 %v2063_v53, %v1813_v54 }
  0xbb   :  { %v1944_v7 = vor.u32 %v2095_v55, %v1941_v56 }
  0xbc   :  { %v1272_v10 = vadd.f32 %v2794_v1, %v1204_v3  ;;  %v760_v11 = vpop.f32.mrf.mxu2  ;;  %v1495_v28 = vadd.f32 %v2191_v12, %v1303_v17 }
  0xbd   :  { %v929_v13 = vpop.f32.mrf.mxu3 }
  0xbe   :  { %v1464_v18 = vadd.f32 %v2128_v4, %v1272_v10  ;;  %v930_v19 = vadd.f32 %v929_v13, %v760_v11  ;;  %v683_v20 = vpop.f32.mrf.mxu0  ;;  %v1559_v36 = vmax.f32 %v1495_v28, 0.0 }
  0xbf   :  { %v852_v23 = vpop.f32.mrf.mxu1 }
  0xc0   :  { %v1528_v25 = vmax.f32 %v1464_v18, 0.0  ;;  %v1236_v26 = vmul.f32 %v2788_v63, %v930_v19  ;;  %v853_v27 = vadd.f32 %v852_v23, %v683_v20  ;;  %v2411_v20 = vld [vmem:[%s3297_s4 + $0x18] sm:$0xff]  }
  0xc1   :  { %722 = vmatmul.bf16.gmra.mxu0 %v1804_v14  ;;  %802 = vmatmul.bf16.gmra.mxu2 %v1932_v15 }
  0xc2   :  { %v2257_v29 = vpack.c.bf16 %v1528_v25, %v1527_v24  ;;  %v1304_v30 = vadd.f32 %v2794_v1, %v1236_v26  ;;  %891 = vmatmul.bf16.gmra.mxu1 %v1808_v16  ;;  %971 = vmatmul.bf16.gmra.mxu3 %v1936_v21  ;;  %v1205_v32 = vmul.f32 %v2788_v63, %v853_v27 }
  0xc4   :  { %2440 = vst [vmem:[%s3298_s5 + $0x8] sm:$0xff] %v2257_v29   ;;  %v1496_v31 = vadd.f32 %v2192_v22, %v1304_v30  ;;  %v763_v33 = vpop.f32.mrf.mxu2  ;;  %v1273_v42 = vadd.f32 %v2794_v1, %v1205_v32  ;;  %v2135_v29 = vunpack.c.l.bf16 %v2411_v20  ;;  %v2066_v32 = vld [vmem:[%s3294_s0 + $0xc4] sm:$0xf0] }
  0xc5   :  { %v932_v35 = vpop.f32.mrf.mxu3 }
  0xc6   :  { %v1560_v37 = vmax.f32 %v1496_v31, 0.0  ;;  %v933_v38 = vadd.f32 %v932_v35, %v763_v33  ;;  %v685_v39 = vpop.f32.mrf.mxu0  ;;  %v1465_v57 = vadd.f32 %v2131_v43, %v1273_v42  ;;  %v1819_v31 = vld [vmem:[%s3294_s0 + $0xc0] sm:$0xf]  ;;  %v1949_v42 = vld [vmem:[%s3294_s0 + $0x1c8] sm:$0xf0] }
  0xc7   :  { %v854_v40 = vpop.f32.mrf.mxu1  ;;  %v1947_v33 = vld [vmem:[%s3294_s0 + $0x1c0] sm:$0xf]  ;;  %v1820_v48 = vor.u32 %v2066_v32, %v1819_v31 }
  0xc8   :  { %v2337_v41 = vpack.c.bf16 %v1560_v37, %v1559_v36  ;;  %v855_v44 = vadd.f32 %v854_v40, %v685_v39  ;;  %v1237_v49 = vmul.f32 %v2788_v63, %v933_v38  ;;  %v1529_v10 = vmax.f32 %v1465_v57, 0.0  ;;  %v2427_v36 = vld [vmem:[%s3297_s4 + $0x98] sm:$0xff]   ;;  %v2065_v39 = vld [vmem:[%s3294_s0 + $0xc4] sm:$0xf]  ;;  %v1821_v40 = vld [vmem:[%s3294_s0 + $0xc8] sm:$0xf0] }
  0xc9   :  { %v2136_v38 = vunpack.c.h.bf16 %v2411_v20  ;;  %v2199_v46 = vunpack.c.l.bf16 %v2427_v36  ;;  %v1824_v50 = vor.u32 %v2065_v39, %v1821_v40  ;;  %v2200_v56 = vunpack.c.h.bf16 %v2427_v36  ;;  %v2100_v20 = vld [vmem:[%s3294_s0 + $0x1d4] sm:$0xf0] }
  0xca   :  { %2456 = vst [vmem:[%s3298_s5 + $0x88] sm:$0xff] %v2337_v41   ;;  %v1206_v51 = vmul.f32 %v2788_v63, %v855_v44  ;;  %v1305_v3 = vadd.f32 %v2794_v1, %v1237_v49  ;;  %v2097_v41 = vld [vmem:[%s3294_s0 + $0x1c4] sm:$0xf]  ;;  %v1948_v49 = vor.u32 %v2098_v34, %v1947_v33 }
  0xcb   :  { %v1952_v55 = vor.u32 %v2097_v41, %v1949_v42 }
  0xcc   :  { %v1274_v58 = vadd.f32 %v2794_v1, %v1206_v51  ;;  %v765_v59 = vpop.f32.mrf.mxu2  ;;  %v1497_v14 = vadd.f32 %v2195_v60, %v1305_v3 }
  0xcd   :  { %v934_v61 = vpop.f32.mrf.mxu3 }
  0xce   :  { %v1466_v4 = vadd.f32 %v2132_v52, %v1274_v58  ;;  %v935_v5 = vadd.f32 %v934_v61, %v765_v59  ;;  %v688_v6 = vpop.f32.mrf.mxu0  ;;  %v1561_v22 = vmax.f32 %v1497_v14, 0.0 }
  0xcf   :  { %v857_v9 = vpop.f32.mrf.mxu1 }
  0xd0   :  { %v1530_v11 = vmax.f32 %v1466_v4, 0.0  ;;  %v1238_v12 = vmul.f32 %v2788_v63, %v935_v5  ;;  %v858_v13 = vadd.f32 %v857_v9, %v688_v6  ;;  %v2412_v6 = vld [vmem:[%s3297_s4 + $0x20] sm:$0xff]  }
  0xd1   :  { %727 = vmatmul.bf16.gmra.mxu0 %v1812_v62  ;;  %807 = vmatmul.bf16.gmra.mxu2 %v1940_v0 }
  0xd2   :  { %v2262_v15 = vpack.c.bf16 %v1530_v11, %v1529_v10  ;;  %v1306_v16 = vadd.f32 %v2794_v1, %v1238_v12  ;;  %896 = vmatmul.bf16.gmra.mxu1 %v1816_v2  ;;  %976 = vmatmul.bf16.gmra.mxu3 %v1944_v7  ;;  %v1207_v18 = vmul.f32 %v2788_v63, %v858_v13 }
  0xd4   :  { %2441 = vst [vmem:[%s3298_s5 + $0x10] sm:$0xff] %v2262_v15   ;;  %v1498_v17 = vadd.f32 %v2196_v8, %v1306_v16  ;;  %v768_v19 = vpop.f32.mrf.mxu2  ;;  %v1275_v28 = vadd.f32 %v2794_v1, %v1207_v18  ;;  %v2139_v15 = vunpack.c.l.bf16 %v2412_v6  ;;  %v2068_v18 = vld [vmem:[%s3294_s0 + $0xd4] sm:$0xf0] }
  0xd5   :  { %v937_v21 = vpop.f32.mrf.mxu3 }
  0xd6   :  { %v1562_v23 = vmax.f32 %v1498_v17, 0.0  ;;  %v938_v24 = vadd.f32 %v937_v21, %v768_v19  ;;  %v690_v25 = vpop.f32.mrf.mxu0  ;;  %v1467_v43 = vadd.f32 %v2135_v29, %v1275_v28  ;;  %v1827_v17 = vld [vmem:[%s3294_s0 + $0xd0] sm:$0xf]  ;;  %v1957_v28 = vld [vmem:[%s3294_s0 + $0x1d8] sm:$0xf0] }
  0xd7   :  { %v859_v26 = vpop.f32.mrf.mxu1  ;;  %v1955_v19 = vld [vmem:[%s3294_s0 + $0x1d0] sm:$0xf]  ;;  %v1828_v34 = vor.u32 %v2068_v18, %v1827_v17 }
  0xd8   :  { %v2342_v27 = vpack.c.bf16 %v1562_v23, %v1561_v22  ;;  %v860_v30 = vadd.f32 %v859_v26, %v690_v25  ;;  %v1239_v35 = vmul.f32 %v2788_v63, %v938_v24  ;;  %v1531_v58 = vmax.f32 %v1467_v43, 0.0  ;;  %v2428_v22 = vld [vmem:[%s3297_s4 + $0xa0] sm:$0xff]   ;;  %v2067_v25 = vld [vmem:[%s3294_s0 + $0xd4] sm:$0xf]  ;;  %v1829_v26 = vld [vmem:[%s3294_s0 + $0xd8] sm:$0xf0] }
  0xd9   :  { %v2140_v24 = vunpack.c.h.bf16 %v2412_v6  ;;  %v2203_v32 = vunpack.c.l.bf16 %v2428_v22  ;;  %v1832_v36 = vor.u32 %v2067_v25, %v1829_v26  ;;  %v2204_v42 = vunpack.c.h.bf16 %v2428_v22  ;;  %v2102_v6 = vld [vmem:[%s3294_s0 + $0x1e4] sm:$0xf0] }
  0xda   :  { %2457 = vst [vmem:[%s3298_s5 + $0x90] sm:$0xff] %v2342_v27   ;;  %v1208_v37 = vmul.f32 %v2788_v63, %v860_v30  ;;  %v1307_v51 = vadd.f32 %v2794_v1, %v1239_v35  ;;  %v2099_v27 = vld [vmem:[%s3294_s0 + $0x1d4] sm:$0xf]  ;;  %v1956_v35 = vor.u32 %v2100_v20, %v1955_v19 }
  0xdb   :  { %v1960_v41 = vor.u32 %v2099_v27, %v1957_v28 }
  0xdc   :  { %v1276_v44 = vadd.f32 %v2794_v1, %v1208_v37  ;;  %v770_v45 = vpop.f32.mrf.mxu2  ;;  %v1499_v62 = vadd.f32 %v2199_v46, %v1307_v51 }
  0xdd   :  { %v939_v47 = vpop.f32.mrf.mxu3 }
  0xde   :  { %v1468_v52 = vadd.f32 %v2136_v38, %v1276_v44  ;;  %v940_v53 = vadd.f32 %v939_v47, %v770_v45  ;;  %v693_v54 = vpop.f32.mrf.mxu0  ;;  %v1563_v8 = vmax.f32 %v1499_v62, 0.0 }
  0xdf   :  { %v862_v57 = vpop.f32.mrf.mxu1 }
  0xe0   :  { %v1532_v59 = vmax.f32 %v1468_v52, 0.0  ;;  %v1240_v60 = vmul.f32 %v2788_v63, %v940_v53  ;;  %v863_v61 = vadd.f32 %v862_v57, %v693_v54  ;;  %v2413_v54 = vld [vmem:[%s3297_s4 + $0x28] sm:$0xff]  }
  0xe1   :  { %732 = vmatmul.bf16.gmra.mxu0 %v1820_v48  ;;  %812 = vmatmul.bf16.gmra.mxu2 %v1948_v49 }
  0xe2   :  { %v2267_v0 = vpack.c.bf16 %v1532_v59, %v1531_v58  ;;  %v1308_v2 = vadd.f32 %v2794_v1, %v1240_v60  ;;  %901 = vmatmul.bf16.gmra.mxu1 %v1824_v50  ;;  %981 = vmatmul.bf16.gmra.mxu3 %v1952_v55  ;;  %v1209_v4 = vmul.f32 %v2788_v63, %v863_v61 }
  0xe4   :  { %2442 = vst [vmem:[%s3298_s5 + $0x18] sm:$0xff] %v2267_v0   ;;  %v1500_v3 = vadd.f32 %v2200_v56, %v1308_v2  ;;  %v773_v5 = vpop.f32.mrf.mxu2  ;;  %v1277_v14 = vadd.f32 %v2794_v1, %v1209_v4  ;;  %v2143_v0 = vunpack.c.l.bf16 %v2413_v54  ;;  %v2070_v4 = vld [vmem:[%s3294_s0 + $0xe4] sm:$0xf0] }
  0xe5   :  { %v942_v7 = vpop.f32.mrf.mxu3 }
  0xe6   :  { %v1564_v9 = vmax.f32 %v1500_v3, 0.0  ;;  %v943_v10 = vadd.f32 %v942_v7, %v773_v5  ;;  %v695_v11 = vpop.f32.mrf.mxu0  ;;  %v1469_v29 = vadd.f32 %v2139_v15, %v1277_v14  ;;  %v1835_v3 = vld [vmem:[%s3294_s0 + $0xe0] sm:$0xf]  ;;  %v1965_v14 = vld [vmem:[%s3294_s0 + $0x1e8] sm:$0xf0] }
  0xe7   :  { %v864_v12 = vpop.f32.mrf.mxu1  ;;  %v1963_v5 = vld [vmem:[%s3294_s0 + $0x1e0] sm:$0xf]  ;;  %v1836_v20 = vor.u32 %v2070_v4, %v1835_v3 }
  0xe8   :  { %v2347_v13 = vpack.c.bf16 %v1564_v9, %v1563_v8  ;;  %v865_v16 = vadd.f32 %v864_v12, %v695_v11  ;;  %v1241_v21 = vmul.f32 %v2788_v63, %v943_v10  ;;  %v1533_v44 = vmax.f32 %v1469_v29, 0.0  ;;  %v2429_v8 = vld [vmem:[%s3297_s4 + $0xa8] sm:$0xff]   ;;  %v2069_v11 = vld [vmem:[%s3294_s0 + $0xe4] sm:$0xf] }
  0xe9   :  { %v2144_v10 = vunpack.c.h.bf16 %v2413_v54  ;;  %v1837_v12 = vld [vmem:[%s3294_s0 + $0xe8] sm:$0xf0]  ;;  %v2207_v18 = vunpack.c.l.bf16 %v2429_v8  ;;  %v2208_v28 = vunpack.c.h.bf16 %v2429_v8  ;;  %v2104_v54 = vld [vmem:[%s3294_s0 + $0x1f4] sm:$0xf0] }
  0xea   :  { %2458 = vst [vmem:[%s3298_s5 + $0x98] sm:$0xff] %v2347_v13   ;;  %v1210_v23 = vmul.f32 %v2788_v63, %v865_v16  ;;  %v1309_v37 = vadd.f32 %v2794_v1, %v1241_v21  ;;  %v2101_v13 = vld [vmem:[%s3294_s0 + $0x1e4] sm:$0xf]  ;;  %v1964_v21 = vor.u32 %v2102_v6, %v1963_v5  ;;  %v1840_v22 = vor.u32 %v2069_v11, %v1837_v12 }
  0xeb   :  { %v1968_v27 = vor.u32 %v2101_v13, %v1965_v14 }
  0xec   :  { %v1278_v30 = vadd.f32 %v2794_v1, %v1210_v23  ;;  %v775_v31 = vpop.f32.mrf.mxu2  ;;  %v1501_v48 = vadd.f32 %v2203_v32, %v1309_v37 }
  0xed   :  { %v944_v33 = vpop.f32.mrf.mxu3 }
  0xee   :  { %v1470_v38 = vadd.f32 %v2140_v24, %v1278_v30  ;;  %v945_v39 = vadd.f32 %v944_v33, %v775_v31  ;;  %v698_v40 = vpop.f32.mrf.mxu0  ;;  %v1565_v56 = vmax.f32 %v1501_v48, 0.0 }
  0xef   :  { %v867_v43 = vpop.f32.mrf.mxu1 }
  0xf0   :  { %v1534_v45 = vmax.f32 %v1470_v38, 0.0  ;;  %v1242_v46 = vmul.f32 %v2788_v63, %v945_v39  ;;  %v868_v47 = vadd.f32 %v867_v43, %v698_v40  ;;  %v2414_v40 = vld [vmem:[%s3297_s4 + $0x30] sm:$0xff]  }
  0xf1   :  { %737 = vmatmul.bf16.gmra.mxu0 %v1828_v34  ;;  %817 = vmatmul.bf16.gmra.mxu2 %v1956_v35 }
  0xf2   :  { %v2272_v49 = vpack.c.bf16 %v1534_v45, %v1533_v44  ;;  %v1310_v50 = vadd.f32 %v2794_v1, %v1242_v46  ;;  %906 = vmatmul.bf16.gmra.mxu1 %v1832_v36  ;;  %986 = vmatmul.bf16.gmra.mxu3 %v1960_v41  ;;  %v1211_v52 = vmul.f32 %v2788_v63, %v868_v47 }
  0xf4   :  { %2443 = vst [vmem:[%s3298_s5 + $0x20] sm:$0xff] %v2272_v49   ;;  %v1502_v51 = vadd.f32 %v2204_v42, %v1310_v50  ;;  %v778_v53 = vpop.f32.mrf.mxu2  ;;  %v1279_v62 = vadd.f32 %v2794_v1, %v1211_v52  ;;  %v2147_v49 = vunpack.c.l.bf16 %v2414_v40  ;;  %v2072_v52 = vld [vmem:[%s3294_s0 + $0xf4] sm:$0xf0] }
  0xf5   :  { %v947_v55 = vpop.f32.mrf.mxu3 }
  0xf6   :  { %v1566_v57 = vmax.f32 %v1502_v51, 0.0  ;;  %v948_v58 = vadd.f32 %v947_v55, %v778_v53  ;;  %v700_v59 = vpop.f32.mrf.mxu0  ;;  %v1471_v15 = vadd.f32 %v2143_v0, %v1279_v62  ;;  %v1843_v51 = vld [vmem:[%s3294_s0 + $0xf0] sm:$0xf]  ;;  %v1973_v62 = vld [vmem:[%s3294_s0 + $0x1f8] sm:$0xf0] }
  0xf7   :  { %v869_v60 = vpop.f32.mrf.mxu1  ;;  %v1971_v53 = vld [vmem:[%s3294_s0 + $0x1f0] sm:$0xf]  ;;  %v1844_v6 = vor.u32 %v2072_v52, %v1843_v51 }
  0xf8   :  { %v2352_v61 = vpack.c.bf16 %v1566_v57, %v1565_v56  ;;  %v870_v2 = vadd.f32 %v869_v60, %v700_v59  ;;  %v1243_v7 = vmul.f32 %v2788_v63, %v948_v58  ;;  %v1535_v30 = vmax.f32 %v1471_v15, 0.0  ;;  %v2430_v56 = vld [vmem:[%s3297_s4 + $0xb0] sm:$0xff]   ;;  %v1845_v60 = vld [vmem:[%s3294_s0 + $0xf8] sm:$0xf0] }
  0xf9   :  { %v2148_v58 = vunpack.c.h.bf16 %v2414_v40  ;;  %v2071_v59 = vld [vmem:[%s3294_s0 + $0xf4] sm:$0xf]  ;;  %v2211_v4 = vunpack.c.l.bf16 %v2430_v56  ;;  %v2212_v14 = vunpack.c.h.bf16 %v2430_v56  ;;  %v2431_v40 = vld [vmem:[%s3297_s4 + $0xb8] sm:$0xff]  }
  0xfa   :  { %2459 = vst [vmem:[%s3298_s5 + $0xa0] sm:$0xff] %v2352_v61   ;;  %v1212_v9 = vmul.f32 %v2788_v63, %v870_v2  ;;  %v1311_v23 = vadd.f32 %v2794_v1, %v1243_v7  ;;  %v2103_v61 = vld [vmem:[%s3294_s0 + $0x1f4] sm:$0xf]  ;;  %v1972_v7 = vor.u32 %v2104_v54, %v1971_v53  ;;  %v1848_v8 = vor.u32 %v2071_v59, %v1845_v60 }
  0xfb   :  { %v1976_v13 = vor.u32 %v2103_v61, %v1973_v62  ;;  %v2416_v62 = vld [vmem:[%s3297_s4 + $0x40] sm:$0xff]  }
  0xfc   :  { %v1280_v16 = vadd.f32 %v2794_v1, %v1212_v9  ;;  %v780_v17 = vpop.f32.mrf.mxu2  ;;  %v1503_v34 = vadd.f32 %v2207_v18, %v1311_v23 }
  0xfd   :  { %v949_v19 = vpop.f32.mrf.mxu3 }
  0xfe   :  { %v1472_v24 = vadd.f32 %v2144_v10, %v1280_v16  ;;  %v950_v25 = vadd.f32 %v949_v19, %v780_v17  ;;  %v703_v26 = vpop.f32.mrf.mxu0  ;;  %v1567_v42 = vmax.f32 %v1503_v34, 0.0 }
  0xff   :  { %v872_v29 = vpop.f32.mrf.mxu1 }
 0x100   :  { %v1536_v31 = vmax.f32 %v1472_v24, 0.0  ;;  %v1244_v32 = vmul.f32 %v2788_v63, %v950_v25  ;;  %v873_v33 = vadd.f32 %v872_v29, %v703_v26  ;;  %v2415_v26 = vld [vmem:[%s3297_s4 + $0x38] sm:$0xff]  }
 0x101   :  { %742 = vmatmul.bf16.gmra.mxu0 %v1836_v20  ;;  %822 = vmatmul.bf16.gmra.mxu2 %v1964_v21 }
 0x102   :  { %v2277_v35 = vpack.c.bf16 %v1536_v31, %v1535_v30  ;;  %v1312_v36 = vadd.f32 %v2794_v1, %v1244_v32  ;;  %911 = vmatmul.bf16.gmra.mxu1 %v1840_v22  ;;  %991 = vmatmul.bf16.gmra.mxu3 %v1968_v27  ;;  %v1213_v38 = vmul.f32 %v2788_v63, %v873_v33 }
 0x104   :  { %2444 = vst [vmem:[%s3298_s5 + $0x28] sm:$0xff] %v2277_v35   ;;  %v1504_v37 = vadd.f32 %v2208_v28, %v1312_v36  ;;  %v783_v39 = vpop.f32.mrf.mxu2  ;;  %v1281_v48 = vadd.f32 %v2794_v1, %v1213_v38  ;;  %v2151_v35 = vunpack.c.l.bf16 %v2415_v26 }
 0x105   :  { %v952_v41 = vpop.f32.mrf.mxu3 }
 0x106   :  { %v1568_v43 = vmax.f32 %v1504_v37, 0.0  ;;  %v953_v44 = vadd.f32 %v952_v41, %v783_v39  ;;  %v705_v45 = vpop.f32.mrf.mxu0  ;;  %v1473_v0 = vadd.f32 %v2147_v49, %v1281_v48  ;;  %v2152_v39 = vunpack.c.h.bf16 %v2415_v26 }
 0x107   :  { %v874_v46 = vpop.f32.mrf.mxu1 }
 0x108   :  { %v2357_v47 = vpack.c.bf16 %v1568_v43, %v1567_v42  ;;  %v875_v50 = vadd.f32 %v874_v46, %v705_v45  ;;  %v1245_v55 = vmul.f32 %v2788_v63, %v953_v44  ;;  %v1537_v16 = vmax.f32 %v1473_v0, 0.0 }
 0x109   :  { %v2215_v46 = vunpack.c.l.bf16 %v2431_v40 }
 0x10a   :  { %2460 = vst [vmem:[%s3298_s5 + $0xa8] sm:$0xff] %v2357_v47   ;;  %v1214_v57 = vmul.f32 %v2788_v63, %v875_v50  ;;  %v1313_v9 = vadd.f32 %v2794_v1, %v1245_v55  ;;  %v2216_v50 = vunpack.c.h.bf16 %v2431_v40 }
 0x10c   :  { %v1282_v2 = vadd.f32 %v2794_v1, %v1214_v57  ;;  %v785_v3 = vpop.f32.mrf.mxu2  ;;  %v1505_v20 = vadd.f32 %v2211_v4, %v1313_v9  ;;  %v2155_v9 = vunpack.c.l.bf16 %v2416_v62 }
 0x10d   :  { %v954_v5 = vpop.f32.mrf.mxu3 }
 0x10e   :  { %v1474_v10 = vadd.f32 %v2148_v58, %v1282_v2  ;;  %v955_v11 = vadd.f32 %v954_v5, %v785_v3  ;;  %v708_v12 = vpop.f32.mrf.mxu0  ;;  %v1569_v28 = vmax.f32 %v1505_v20, 0.0 }
 0x10f   :  { %v877_v15 = vpop.f32.mrf.mxu1 }
 0x110   :  { %v1538_v17 = vmax.f32 %v1474_v10, 0.0  ;;  %v1246_v18 = vmul.f32 %v2788_v63, %v955_v11  ;;  %v878_v19 = vadd.f32 %v877_v15, %v708_v12 }
 0x111   :  { %747 = vmatmul.bf16.gmra.mxu0 %v1844_v6  ;;  %827 = vmatmul.bf16.gmra.mxu2 %v1972_v7 }
 0x112   :  { %v2282_v21 = vpack.c.bf16 %v1538_v17, %v1537_v16  ;;  %v1314_v22 = vadd.f32 %v2794_v1, %v1246_v18  ;;  %916 = vmatmul.bf16.gmra.mxu1 %v1848_v8  ;;  %996 = vmatmul.bf16.gmra.mxu3 %v1976_v13  ;;  %v1215_v24 = vmul.f32 %v2788_v63, %v878_v19  ;;  %v2156_v13 = vunpack.c.h.bf16 %v2416_v62 }
 0x114   :  { %2445 = vst [vmem:[%s3298_s5 + $0x30] sm:$0xff] %v2282_v21   ;;  %v1506_v23 = vadd.f32 %v2212_v14, %v1314_v22  ;;  %v788_v25 = vpop.f32.mrf.mxu2  ;;  %v1283_v34 = vadd.f32 %v2794_v1, %v1215_v24  ;;  %v2432_v14 = vld [vmem:[%s3297_s4 + $0xc0] sm:$0xff]  }
 0x115   :  { %v957_v27 = vpop.f32.mrf.mxu3  ;;  %v2219_v20 = vunpack.c.l.bf16 %v2432_v14  ;;  %v2220_v24 = vunpack.c.h.bf16 %v2432_v14 }
 0x116   :  { %v1570_v29 = vmax.f32 %v1506_v23, 0.0  ;;  %v958_v30 = vadd.f32 %v957_v27, %v788_v25  ;;  %v710_v31 = vpop.f32.mrf.mxu0  ;;  %v1475_v41 = vadd.f32 %v2151_v35, %v1283_v34 }
 0x117   :  { %v879_v32 = vpop.f32.mrf.mxu1 }
 0x118   :  { %v2362_v33 = vpack.c.bf16 %v1570_v29, %v1569_v28  ;;  %v880_v36 = vadd.f32 %v879_v32, %v710_v31  ;;  %v1247_v37 = vmul.f32 %v2788_v63, %v958_v30  ;;  %v1539_v52 = vmax.f32 %v1475_v41, 0.0 }
 0x11a   :  { %2461 = vst [vmem:[%s3298_s5 + $0xb0] sm:$0xff] %v2362_v33   ;;  %v1216_v38 = vmul.f32 %v2788_v63, %v880_v36  ;;  %v1315_v45 = vadd.f32 %v2794_v1, %v1247_v37  ;;  %v2417_v36 = vld [vmem:[%s3297_s4 + $0x48] sm:$0xff]  }
 0x11c   :  { %v1284_v42 = vadd.f32 %v2794_v1, %v1216_v38  ;;  %v790_v43 = vpop.f32.mrf.mxu2  ;;  %v1507_v56 = vadd.f32 %v2215_v46, %v1315_v45  ;;  %v2159_v45 = vunpack.c.l.bf16 %v2417_v36 }
 0x11d   :  { %v959_v44 = vpop.f32.mrf.mxu3 }
 0x11e   :  { %v1476_v47 = vadd.f32 %v2152_v39, %v1284_v42  ;;  %v960_v48 = vadd.f32 %v959_v44, %v790_v43  ;;  %v713_v49 = vpop.f32.mrf.mxu0  ;;  %v1571_v2 = vmax.f32 %v1507_v56, 0.0 }
 0x11f   :  { %v882_v51 = vpop.f32.mrf.mxu1 }
 0x120   :  { %v1540_v53 = vmax.f32 %v1476_v47, 0.0  ;;  %v1248_v54 = vmul.f32 %v2788_v63, %v960_v48  ;;  %v883_v55 = vadd.f32 %v882_v51, %v713_v49  ;;  %v2160_v49 = vunpack.c.h.bf16 %v2417_v36 }
 0x122   :  { %v2287_v57 = vpack.c.bf16 %v1540_v53, %v1539_v52  ;;  %v1316_v58 = vadd.f32 %v2794_v1, %v1248_v54  ;;  %v1217_v60 = vmul.f32 %v2788_v63, %v883_v55 }
 0x124   :  { %2446 = vst [vmem:[%s3298_s5 + $0x38] sm:$0xff] %v2287_v57   ;;  %v1508_v59 = vadd.f32 %v2216_v50, %v1316_v58  ;;  %v793_v61 = vpop.f32.mrf.mxu2  ;;  %v1285_v8 = vadd.f32 %v2794_v1, %v1217_v60  ;;  %v2433_v50 = vld [vmem:[%s3297_s4 + $0xc8] sm:$0xff]  }
 0x125   :  { %v962_v0 = vpop.f32.mrf.mxu3  ;;  %v2223_v56 = vunpack.c.l.bf16 %v2433_v50  ;;  %v2224_v60 = vunpack.c.h.bf16 %v2433_v50 }
 0x126   :  { %v1572_v3 = vmax.f32 %v1508_v59, 0.0  ;;  %v963_v4 = vadd.f32 %v962_v0, %v793_v61  ;;  %v715_v5 = vpop.f32.mrf.mxu0  ;;  %v1477_v15 = vadd.f32 %v2155_v9, %v1285_v8 }
 0x127   :  { %v884_v6 = vpop.f32.mrf.mxu1 }
 0x128   :  { %v2367_v7 = vpack.c.bf16 %v1572_v3, %v1571_v2  ;;  %v885_v10 = vadd.f32 %v884_v6, %v715_v5  ;;  %v1249_v11 = vmul.f32 %v2788_v63, %v963_v4  ;;  %v1541_v26 = vmax.f32 %v1477_v15, 0.0 }
 0x12a   :  { %2462 = vst [vmem:[%s3298_s5 + $0xb8] sm:$0xff] %v2367_v7   ;;  %v1218_v12 = vmul.f32 %v2788_v63, %v885_v10  ;;  %v1317_v19 = vadd.f32 %v2794_v1, %v1249_v11  ;;  %v2418_v10 = vld [vmem:[%s3297_s4 + $0x50] sm:$0xff]  }
 0x12c   :  { %v1286_v16 = vadd.f32 %v2794_v1, %v1218_v12  ;;  %v795_v17 = vpop.f32.mrf.mxu2  ;;  %v1509_v30 = vadd.f32 %v2219_v20, %v1317_v19  ;;  %v2163_v19 = vunpack.c.l.bf16 %v2418_v10 }
 0x12d   :  { %v964_v18 = vpop.f32.mrf.mxu3 }
 0x12e   :  { %v1478_v21 = vadd.f32 %v2156_v13, %v1286_v16  ;;  %v965_v22 = vadd.f32 %v964_v18, %v795_v17  ;;  %v718_v23 = vpop.f32.mrf.mxu0  ;;  %v1573_v38 = vmax.f32 %v1509_v30, 0.0 }
 0x12f   :  { %v887_v25 = vpop.f32.mrf.mxu1 }
 0x130   :  { %v1542_v27 = vmax.f32 %v1478_v21, 0.0  ;;  %v1250_v28 = vmul.f32 %v2788_v63, %v965_v22  ;;  %v888_v29 = vadd.f32 %v887_v25, %v718_v23  ;;  %v2164_v23 = vunpack.c.h.bf16 %v2418_v10 }
 0x132   :  { %v2292_v31 = vpack.c.bf16 %v1542_v27, %v1541_v26  ;;  %v1318_v32 = vadd.f32 %v2794_v1, %v1250_v28  ;;  %v1219_v34 = vmul.f32 %v2788_v63, %v888_v29 }
 0x134   :  { %2447 = vst [vmem:[%s3298_s5 + $0x40] sm:$0xff] %v2292_v31   ;;  %v1510_v33 = vadd.f32 %v2220_v24, %v1318_v32  ;;  %v798_v35 = vpop.f32.mrf.mxu2  ;;  %v1287_v44 = vadd.f32 %v2794_v1, %v1219_v34  ;;  %v2434_v24 = vld [vmem:[%s3297_s4 + $0xd0] sm:$0xff]  }
 0x135   :  { %v967_v37 = vpop.f32.mrf.mxu3  ;;  %v2227_v30 = vunpack.c.l.bf16 %v2434_v24  ;;  %v2228_v34 = vunpack.c.h.bf16 %v2434_v24 }
 0x136   :  { %v1574_v39 = vmax.f32 %v1510_v33, 0.0  ;;  %v968_v40 = vadd.f32 %v967_v37, %v798_v35  ;;  %v720_v41 = vpop.f32.mrf.mxu0  ;;  %v1479_v51 = vadd.f32 %v2159_v45, %v1287_v44  ;;  %v3178_v37 = vld [vmem:[%s3295_s2] ss:$0 sm:$0xff] }
 0x137   :  { %v889_v42 = vpop.f32.mrf.mxu1 }
 0x138   :  { %v2372_v43 = vpack.c.bf16 %v1574_v39, %v1573_v38  ;;  %v890_v46 = vadd.f32 %v889_v42, %v720_v41  ;;  %v1251_v47 = vmul.f32 %v2788_v63, %v968_v40  ;;  %v1543_v62 = vmax.f32 %v1479_v51, 0.0 }
 0x13a   :  { %2463 = vst [vmem:[%s3298_s5 + $0xc0] sm:$0xff] %v2372_v43   ;;  %v1220_v48 = vmul.f32 %v2788_v63, %v890_v46  ;;  %v1319_v55 = vadd.f32 %v2794_v1, %v1251_v47  ;;  %v2419_v46 = vld [vmem:[%s3297_s4 + $0x58] sm:$0xff]  }
 0x13c   :  { %v1288_v52 = vadd.f32 %v2794_v1, %v1220_v48  ;;  %v800_v53 = vpop.f32.mrf.mxu2  ;;  %v1511_v4 = vadd.f32 %v2223_v56, %v1319_v55  ;;  %v2167_v55 = vunpack.c.l.bf16 %v2419_v46 }
 0x13d   :  { %v969_v54 = vpop.f32.mrf.mxu3 }
 0x13e   :  { %v1480_v57 = vadd.f32 %v2160_v49, %v1288_v52  ;;  %v970_v58 = vadd.f32 %v969_v54, %v800_v53  ;;  %v723_v59 = vpop.f32.mrf.mxu0  ;;  %v1575_v12 = vmax.f32 %v1511_v4, 0.0 }
 0x13f   :  { %v892_v61 = vpop.f32.mrf.mxu1 }
 0x140   :  { %v1544_v0 = vmax.f32 %v1480_v57, 0.0  ;;  %v1252_v2 = vmul.f32 %v2788_v63, %v970_v58  ;;  %v893_v3 = vadd.f32 %v892_v61, %v723_v59  ;;  %v2168_v59 = vunpack.c.h.bf16 %v2419_v46 }
 0x142   :  { %v2297_v5 = vpack.c.bf16 %v1544_v0, %v1543_v62  ;;  %v1320_v6 = vadd.f32 %v2794_v1, %v1252_v2  ;;  %v1221_v8 = vmul.f32 %v2788_v63, %v893_v3 }
 0x144   :  { %2448 = vst [vmem:[%s3298_s5 + $0x48] sm:$0xff] %v2297_v5   ;;  %v1512_v7 = vadd.f32 %v2224_v60, %v1320_v6  ;;  %v803_v9 = vpop.f32.mrf.mxu2  ;;  %v1289_v18 = vadd.f32 %v2794_v1, %v1221_v8  ;;  %v2435_v60 = vld [vmem:[%s3297_s4 + $0xd8] sm:$0xff]  }
 0x145   :  { %v972_v11 = vpop.f32.mrf.mxu3  ;;  %v2231_v4 = vunpack.c.l.bf16 %v2435_v60  ;;  %v2232_v8 = vunpack.c.h.bf16 %v2435_v60 }
 0x146   :  { %v1576_v13 = vmax.f32 %v1512_v7, 0.0  ;;  %v973_v14 = vadd.f32 %v972_v11, %v803_v9  ;;  %v725_v15 = vpop.f32.mrf.mxu0  ;;  %v1481_v25 = vadd.f32 %v2163_v19, %v1289_v18 }
 0x147   :  { %v894_v16 = vpop.f32.mrf.mxu1 }
 0x148   :  { %v2377_v17 = vpack.c.bf16 %v1576_v13, %v1575_v12  ;;  %v895_v20 = vadd.f32 %v894_v16, %v725_v15  ;;  %v1253_v21 = vmul.f32 %v2788_v63, %v973_v14  ;;  %v1545_v36 = vmax.f32 %v1481_v25, 0.0 }
 0x14a   :  { %2464 = vst [vmem:[%s3298_s5 + $0xc8] sm:$0xff] %v2377_v17   ;;  %v1222_v22 = vmul.f32 %v2788_v63, %v895_v20  ;;  %v1321_v29 = vadd.f32 %v2794_v1, %v1253_v21  ;;  %v2420_v20 = vld [vmem:[%s3297_s4 + $0x60] sm:$0xff]  }
 0x14c   :  { %v1290_v26 = vadd.f32 %v2794_v1, %v1222_v22  ;;  %v805_v27 = vpop.f32.mrf.mxu2  ;;  %v1513_v40 = vadd.f32 %v2227_v30, %v1321_v29  ;;  %v3184_v1 = vld [vmem:[%s3296_s3] ss:$0 sm:$0xff]  ;;  %v2171_v29 = vunpack.c.l.bf16 %v2420_v20 }
 0x14d   :  { %v974_v28 = vpop.f32.mrf.mxu3 }
 0x14e   :  { %v1482_v31 = vadd.f32 %v2164_v23, %v1290_v26  ;;  %v975_v32 = vadd.f32 %v974_v28, %v805_v27  ;;  %v728_v33 = vpop.f32.mrf.mxu0  ;;  %v1577_v48 = vmax.f32 %v1513_v40, 0.0 }
 0x14f   :  { %v897_v35 = vpop.f32.mrf.mxu1 }
 0x150   :  { %v1546_v63 = vmax.f32 %v1482_v31, 0.0  ;;  %v1254_v38 = vmul.f32 %v3178_v37, %v975_v32  ;;  %v898_v39 = vadd.f32 %v897_v35, %v728_v33  ;;  %v2172_v33 = vunpack.c.h.bf16 %v2420_v20 }
 0x152   :  { %v2302_v41 = vpack.c.bf16 %v1546_v63, %v1545_v36  ;;  %v1322_v42 = vadd.f32 %v3184_v1, %v1254_v38  ;;  %v1223_v44 = vmul.f32 %v3178_v37, %v898_v39 }
 0x154   :  { %2449 = vst [vmem:[%s3298_s5 + $0x50] sm:$0xff] %v2302_v41   ;;  %v1514_v43 = vadd.f32 %v2228_v34, %v1322_v42  ;;  %v808_v45 = vpop.f32.mrf.mxu2  ;;  %v1291_v54 = vadd.f32 %v3184_v1, %v1223_v44  ;;  %v2436_v34 = vld [vmem:[%s3297_s4 + $0xe0] sm:$0xff]  }
 0x155   :  { %v977_v47 = vpop.f32.mrf.mxu3  ;;  %v2235_v40 = vunpack.c.l.bf16 %v2436_v34  ;;  %v2236_v44 = vunpack.c.h.bf16 %v2436_v34 }
 0x156   :  { %v1578_v49 = vmax.f32 %v1514_v43, 0.0  ;;  %v978_v50 = vadd.f32 %v977_v47, %v808_v45  ;;  %v730_v51 = vpop.f32.mrf.mxu0  ;;  %v1483_v61 = vadd.f32 %v2167_v55, %v1291_v54 }
 0x157   :  { %v899_v52 = vpop.f32.mrf.mxu1 }
 0x158   :  { %v2382_v53 = vpack.c.bf16 %v1578_v49, %v1577_v48  ;;  %v900_v56 = vadd.f32 %v899_v52, %v730_v51  ;;  %v1255_v57 = vmul.f32 %v3178_v37, %v978_v50  ;;  %v1547_v10 = vmax.f32 %v1483_v61, 0.0 }
 0x15a   :  { %2465 = vst [vmem:[%s3298_s5 + $0xd0] sm:$0xff] %v2382_v53   ;;  %v1224_v58 = vmul.f32 %v3178_v37, %v900_v56  ;;  %v1323_v3 = vadd.f32 %v3184_v1, %v1255_v57  ;;  %v2421_v56 = vld [vmem:[%s3297_s4 + $0x68] sm:$0xff]  }
 0x15c   :  { %v1292_v62 = vadd.f32 %v3184_v1, %v1224_v58  ;;  %v810_v0 = vpop.f32.mrf.mxu2  ;;  %v1515_v14 = vadd.f32 %v2231_v4, %v1323_v3  ;;  %v2175_v3 = vunpack.c.l.bf16 %v2421_v56 }
 0x15d   :  { %v979_v2 = vpop.f32.mrf.mxu3 }
 0x15e   :  { %v1484_v5 = vadd.f32 %v2168_v59, %v1292_v62  ;;  %v980_v6 = vadd.f32 %v979_v2, %v810_v0  ;;  %v733_v7 = vpop.f32.mrf.mxu0  ;;  %v1579_v22 = vmax.f32 %v1515_v14, 0.0 }
 0x15f   :  { %v902_v9 = vpop.f32.mrf.mxu1 }
 0x160   :  { %v1548_v11 = vmax.f32 %v1484_v5, 0.0  ;;  %v1256_v12 = vmul.f32 %v3178_v37, %v980_v6  ;;  %v903_v13 = vadd.f32 %v902_v9, %v733_v7  ;;  %v2176_v7 = vunpack.c.h.bf16 %v2421_v56 }
 0x162   :  { %v2307_v15 = vpack.c.bf16 %v1548_v11, %v1547_v10  ;;  %v1324_v16 = vadd.f32 %v3184_v1, %v1256_v12  ;;  %v1225_v18 = vmul.f32 %v3178_v37, %v903_v13 }
 0x164   :  { %2450 = vst [vmem:[%s3298_s5 + $0x58] sm:$0xff] %v2307_v15   ;;  %v1516_v17 = vadd.f32 %v2232_v8, %v1324_v16  ;;  %v813_v19 = vpop.f32.mrf.mxu2  ;;  %v1293_v28 = vadd.f32 %v3184_v1, %v1225_v18  ;;  %v2437_v8 = vld [vmem:[%s3297_s4 + $0xe8] sm:$0xff]  }
 0x165   :  { %v982_v21 = vpop.f32.mrf.mxu3  ;;  %v2239_v14 = vunpack.c.l.bf16 %v2437_v8  ;;  %v2240_v18 = vunpack.c.h.bf16 %v2437_v8 }
 0x166   :  { %v1580_v23 = vmax.f32 %v1516_v17, 0.0  ;;  %v983_v24 = vadd.f32 %v982_v21, %v813_v19  ;;  %v735_v25 = vpop.f32.mrf.mxu0  ;;  %v1485_v35 = vadd.f32 %v2171_v29, %v1293_v28 }
 0x167   :  { %v904_v26 = vpop.f32.mrf.mxu1 }
 0x168   :  { %v2387_v27 = vpack.c.bf16 %v1580_v23, %v1579_v22  ;;  %v905_v30 = vadd.f32 %v904_v26, %v735_v25  ;;  %v1257_v31 = vmul.f32 %v3178_v37, %v983_v24  ;;  %v1549_v46 = vmax.f32 %v1485_v35, 0.0 }
 0x16a   :  { %2466 = vst [vmem:[%s3298_s5 + $0xd8] sm:$0xff] %v2387_v27   ;;  %v1226_v32 = vmul.f32 %v3178_v37, %v905_v30  ;;  %v1325_v39 = vadd.f32 %v3184_v1, %v1257_v31  ;;  %v2422_v30 = vld [vmem:[%s3297_s4 + $0x70] sm:$0xff]  }
 0x16c   :  { %v1294_v36 = vadd.f32 %v3184_v1, %v1226_v32  ;;  %v815_v63 = vpop.f32.mrf.mxu2  ;;  %v1517_v50 = vadd.f32 %v2235_v40, %v1325_v39  ;;  %v2179_v39 = vunpack.c.l.bf16 %v2422_v30 }
 0x16d   :  { %v984_v38 = vpop.f32.mrf.mxu3 }
 0x16e   :  { %v1486_v41 = vadd.f32 %v2172_v33, %v1294_v36  ;;  %v985_v42 = vadd.f32 %v984_v38, %v815_v63  ;;  %v738_v43 = vpop.f32.mrf.mxu0  ;;  %v1581_v58 = vmax.f32 %v1517_v50, 0.0 }
 0x16f   :  { %v907_v45 = vpop.f32.mrf.mxu1 }
 0x170   :  { %v1550_v47 = vmax.f32 %v1486_v41, 0.0  ;;  %v1258_v48 = vmul.f32 %v3178_v37, %v985_v42  ;;  %v908_v49 = vadd.f32 %v907_v45, %v738_v43  ;;  %v2180_v43 = vunpack.c.h.bf16 %v2422_v30 }
 0x172   :  { %v2312_v51 = vpack.c.bf16 %v1550_v47, %v1549_v46  ;;  %v1326_v52 = vadd.f32 %v3184_v1, %v1258_v48  ;;  %v1227_v54 = vmul.f32 %v3178_v37, %v908_v49 }
 0x174   :  { %2451 = vst [vmem:[%s3298_s5 + $0x60] sm:$0xff] %v2312_v51   ;;  %v1518_v53 = vadd.f32 %v2236_v44, %v1326_v52  ;;  %v818_v55 = vpop.f32.mrf.mxu2  ;;  %v1295_v2 = vadd.f32 %v3184_v1, %v1227_v54  ;;  %v2438_v44 = vld [vmem:[%s3297_s4 + $0xf0] sm:$0xff]  }
 0x175   :  { %v987_v57 = vpop.f32.mrf.mxu3  ;;  %v2243_v50 = vunpack.c.l.bf16 %v2438_v44  ;;  %v2244_v54 = vunpack.c.h.bf16 %v2438_v44 }
 0x176   :  { %v1582_v59 = vmax.f32 %v1518_v53, 0.0  ;;  %v988_v60 = vadd.f32 %v987_v57, %v818_v55  ;;  %v740_v61 = vpop.f32.mrf.mxu0  ;;  %v1487_v9 = vadd.f32 %v2175_v3, %v1295_v2 }
 0x177   :  { %v909_v62 = vpop.f32.mrf.mxu1 }
 0x178   :  { %v2392_v0 = vpack.c.bf16 %v1582_v59, %v1581_v58  ;;  %v910_v4 = vadd.f32 %v909_v62, %v740_v61  ;;  %v1259_v5 = vmul.f32 %v3178_v37, %v988_v60  ;;  %v1551_v20 = vmax.f32 %v1487_v9, 0.0 }
 0x17a   :  { %2467 = vst [vmem:[%s3298_s5 + $0xe0] sm:$0xff] %v2392_v0   ;;  %v1228_v6 = vmul.f32 %v3178_v37, %v910_v4  ;;  %v1327_v13 = vadd.f32 %v3184_v1, %v1259_v5  ;;  %v2423_v4 = vld [vmem:[%s3297_s4 + $0x78] sm:$0xff]  }
 0x17c   :  { %v1296_v10 = vadd.f32 %v3184_v1, %v1228_v6  ;;  %v820_v11 = vpop.f32.mrf.mxu2  ;;  %v1519_v24 = vadd.f32 %v2239_v14, %v1327_v13  ;;  %v2183_v13 = vunpack.c.l.bf16 %v2423_v4 }
 0x17d   :  { %v989_v12 = vpop.f32.mrf.mxu3 }
 0x17e   :  { %v1488_v15 = vadd.f32 %v2176_v7, %v1296_v10  ;;  %v990_v16 = vadd.f32 %v989_v12, %v820_v11  ;;  %v743_v17 = vpop.f32.mrf.mxu0  ;;  %v1583_v32 = vmax.f32 %v1519_v24, 0.0 }
 0x17f   :  { %v912_v19 = vpop.f32.mrf.mxu1 }
 0x180   :  { %v1552_v21 = vmax.f32 %v1488_v15, 0.0  ;;  %v1260_v22 = vmul.f32 %v3178_v37, %v990_v16  ;;  %v913_v23 = vadd.f32 %v912_v19, %v743_v17  ;;  %v2184_v17 = vunpack.c.h.bf16 %v2423_v4 }
 0x182   :  { %v2317_v25 = vpack.c.bf16 %v1552_v21, %v1551_v20  ;;  %v1328_v26 = vadd.f32 %v3184_v1, %v1260_v22  ;;  %v1229_v28 = vmul.f32 %v3178_v37, %v913_v23 }
 0x184   :  { %2452 = vst [vmem:[%s3298_s5 + $0x68] sm:$0xff] %v2317_v25   ;;  %v1520_v27 = vadd.f32 %v2240_v18, %v1328_v26  ;;  %v823_v29 = vpop.f32.mrf.mxu2  ;;  %v1297_v38 = vadd.f32 %v3184_v1, %v1229_v28  ;;  %v2439_v18 = vld [vmem:[%s3297_s4 + $0xf8] sm:$0xff]  }
 0x185   :  { %v992_v31 = vpop.f32.mrf.mxu3  ;;  %v2247_v24 = vunpack.c.l.bf16 %v2439_v18  ;;  %v2248_v30 = vunpack.c.h.bf16 %v2439_v18 }
 0x186   :  { %v1584_v33 = vmax.f32 %v1520_v27, 0.0  ;;  %v993_v34 = vadd.f32 %v992_v31, %v823_v29  ;;  %v745_v35 = vpop.f32.mrf.mxu0  ;;  %v1489_v45 = vadd.f32 %v2179_v39, %v1297_v38 }
 0x187   :  { %v914_v36 = vpop.f32.mrf.mxu1 }
 0x188   :  { %v2397_v63 = vpack.c.bf16 %v1584_v33, %v1583_v32  ;;  %v915_v40 = vadd.f32 %v914_v36, %v745_v35  ;;  %v1261_v41 = vmul.f32 %v3178_v37, %v993_v34  ;;  %v1553_v56 = vmax.f32 %v1489_v45, 0.0 }
 0x18a   :  { %2468 = vst [vmem:[%s3298_s5 + $0xe8] sm:$0xff] %v2397_v63   ;;  %v1230_v42 = vmul.f32 %v3178_v37, %v915_v40  ;;  %v1329_v49 = vadd.f32 %v3184_v1, %v1261_v41 }
 0x18c   :  { %v1298_v46 = vadd.f32 %v3184_v1, %v1230_v42  ;;  %v825_v47 = vpop.f32.mrf.mxu2  ;;  %v1521_v60 = vadd.f32 %v2243_v50, %v1329_v49 }
 0x18d   :  { %v994_v48 = vpop.f32.mrf.mxu3 }
 0x18e   :  { %v1490_v51 = vadd.f32 %v2180_v43, %v1298_v46  ;;  %v995_v52 = vadd.f32 %v994_v48, %v825_v47  ;;  %v748_v53 = vpop.f32.mrf.mxu0  ;;  %v1585_v6 = vmax.f32 %v1521_v60, 0.0 }
 0x18f   :  { %v917_v55 = vpop.f32.mrf.mxu1 }
 0x190   :  { %v1554_v57 = vmax.f32 %v1490_v51, 0.0  ;;  %v1262_v58 = vmul.f32 %v3178_v37, %v995_v52  ;;  %v918_v59 = vadd.f32 %v917_v55, %v748_v53 }
 0x192   :  { %v2322_v61 = vpack.c.bf16 %v1554_v57, %v1553_v56  ;;  %v1330_v62 = vadd.f32 %v3184_v1, %v1262_v58  ;;  %v1231_v2 = vmul.f32 %v3178_v37, %v918_v59 }
 0x194   :  { %2453 = vst [vmem:[%s3298_s5 + $0x70] sm:$0xff] %v2322_v61   ;;  %v1522_v0 = vadd.f32 %v2244_v54, %v1330_v62  ;;  %v828_v3 = vpop.f32.mrf.mxu2  ;;  %v1299_v12 = vadd.f32 %v3184_v1, %v1231_v2 }
 0x195   :  { %v997_v5 = vpop.f32.mrf.mxu3 }
 0x196   :  { %v1586_v7 = vmax.f32 %v1522_v0, 0.0  ;;  %v998_v8 = vadd.f32 %v997_v5, %v828_v3  ;;  %v750_v9 = vpop.f32.mrf.mxu0  ;;  %v1491_v19 = vadd.f32 %v2183_v13, %v1299_v12 }
 0x197   :  { %v919_v10 = vpop.f32.mrf.mxu1 }
 0x198   :  { %v2402_v11 = vpack.c.bf16 %v1586_v7, %v1585_v6  ;;  %v920_v14 = vadd.f32 %v919_v10, %v750_v9  ;;  %v1263_v15 = vmul.f32 %v3178_v37, %v998_v8  ;;  %v1555_v27 = vmax.f32 %v1491_v19, 0.0 }
 0x19a   :  { %2469 = vst [vmem:[%s3298_s5 + $0xf0] sm:$0xff] %v2402_v11   ;;  %v1232_v16 = vmul.f32 %v3178_v37, %v920_v14  ;;  %v1331_v23 = vadd.f32 %v3184_v1, %v1263_v15 }
 0x19c   :  { %v1300_v20 = vadd.f32 %v3184_v1, %v1232_v16  ;;  %v830_v21 = vpop.f32.mrf.mxu2  ;;  %v1523_v31 = vadd.f32 %v2247_v24, %v1331_v23 }
 0x19d   :  { %v999_v22 = vpop.f32.mrf.mxu3 }
 0x19e   :  { %v1492_v25 = vadd.f32 %v2184_v17, %v1300_v20  ;;  %v1000_v26 = vadd.f32 %v999_v22, %v830_v21  ;;  %v1587_v35 = vmax.f32 %v1523_v31, 0.0 }
 0x1a0   :  { %v1556_v28 = vmax.f32 %v1492_v25, 0.0  ;;  %v1264_v29 = vmul.f32 %v3178_v37, %v1000_v26 }
 0x1a2   :  { %v2327_v32 = vpack.c.bf16 %v1556_v28, %v1555_v27  ;;  %v1332_v33 = vadd.f32 %v3184_v1, %v1264_v29 }
 0x1a4   :  { %2454 = vst [vmem:[%s3298_s5 + $0x78] sm:$0xff] %v2327_v32   ;;  %v1524_v34 = vadd.f32 %v2248_v30, %v1332_v33 }
 0x1a6   :  { %v1588_v36 = vmax.f32 %v1524_v34, 0.0 }
 0x1a8   :  { %v2407_v63 = vpack.c.bf16 %v1588_v36, %v1587_v35 }
 0x1aa   :  { %2470 = vst [vmem:[%s3298_s5 + $0xf8] sm:$0xff] %v2407_v63  }

// kernel: resnet_forward.18
= control target key start
LH: loop header
LB: loop body
LE: loop exit
PB: predicated region body
PF: predicated region fallthrough
CT: control target
= control target key end

     0   :  { %s978_s1 = inlined_call_operand.vmem [shape: bf16[256,128], index: 1, kind: input, shape index: {}]   ;;  %s979_s0 = inlined_call_operand.vmem [shape: bf16[128,256], index: 0, kind: input, shape index: {}]   ;;  %s980_s2 = inlined_call_operand.vmem [shape: f32[1,128], index: 2, kind: input, shape index: {}]   ;;  %s981_s3 = inlined_call_operand.vmem [shape: f32[1,128], index: 3, kind: input, shape index: {}]   ;;  %s982_s4 = inlined_call_operand.vmem [shape: bf16[128,128], index: 4, kind: output, shape index: {}]  }
   0x1   :  { %v669_v0 = vld [vmem:[%s978_s1 + $0x38] sm:$0xff]  ;;  %v668_v2 = vld [vmem:[%s978_s1 + $0x30] sm:$0xff]  ;;  %v667_v4 = vld [vmem:[%s978_s1 + $0x28] sm:$0xff] }
   0x2   :  { %v677_v1 = vld [vmem:[%s978_s1 + $0x78] sm:$0xff]  ;;  %277 = vmatpush.bf16.msra.mxu0 %v669_v0  ;;  %725 = vmatpush.bf16.msra.mxu2 %v669_v0  ;;  %v676_v3 = vld [vmem:[%s978_s1 + $0x70] sm:$0xff]  ;;  %v675_v5 = vld [vmem:[%s978_s1 + $0x68] sm:$0xff] }
   0x3   :  { %326 = vmatpush.bf16.msra.mxu1 %v677_v1  ;;  %733 = vmatpush.bf16.msra.mxu3 %v677_v1  ;;  %v666_v6 = vld [vmem:[%s978_s1 + $0x20] sm:$0xff]  ;;  %v665_v8 = vld [vmem:[%s978_s1 + $0x18] sm:$0xff]  ;;  %v664_v10 = vld [vmem:[%s978_s1 + $0x10] sm:$0xff] }
   0x4   :  { %v674_v7 = vld [vmem:[%s978_s1 + $0x60] sm:$0xff]  ;;  %v673_v9 = vld [vmem:[%s978_s1 + $0x58] sm:$0xff]  ;;  %v672_v11 = vld [vmem:[%s978_s1 + $0x50] sm:$0xff] }
   0x5   :  { %v663_v12 = vld [vmem:[%s978_s1 + $0x8] sm:$0xff]  ;;  %v662_v14 = vld [vmem:[%s978_s1] sm:$0xff]  ;;  %v528_v28 = vld [vmem:[%s979_s0 + $0x10] sm:$0xf] }
   0x6   :  { %278 = vmatpush.bf16.msra.mxu0 %v668_v2  ;;  %726 = vmatpush.bf16.msra.mxu2 %v668_v2  ;;  %v671_v13 = vld [vmem:[%s978_s1 + $0x48] sm:$0xff]  ;;  %v670_v15 = vld [vmem:[%s978_s1 + $0x40] sm:$0xff]  ;;  %v649_v29 = vld [vmem:[%s979_s0 + $0x14] sm:$0xf0] }
   0x7   :  { %327 = vmatpush.bf16.msra.mxu1 %v676_v3  ;;  %734 = vmatpush.bf16.msra.mxu3 %v676_v3  ;;  %v520_v16 = vld [vmem:[%s979_s0] sm:$0xf]  ;;  %v647_v17 = vld [vmem:[%s979_s0 + $0x4] sm:$0xf0]  ;;  %v646_v20 = vld [vmem:[%s979_s0 + $0x4] sm:$0xf]  ;;  %v529_v36 = vor.u32 %v649_v29, %v528_v28 }
   0x8   :  { %v552_v18 = vld [vmem:[%s979_s0 + $0x40] sm:$0xf]  ;;  %v655_v19 = vld [vmem:[%s979_s0 + $0x44] sm:$0xf0]  ;;  %v522_v21 = vld [vmem:[%s979_s0 + $0x8] sm:$0xf0]  ;;  %v521_v24 = vor.u32 %v647_v17, %v520_v16 }
   0x9   :  { %v654_v22 = vld [vmem:[%s979_s0 + $0x44] sm:$0xf]  ;;  %v554_v23 = vld [vmem:[%s979_s0 + $0x48] sm:$0xf0]  ;;  %v553_v25 = vor.u32 %v655_v19, %v552_v18  ;;  %v525_v26 = vor.u32 %v646_v20, %v522_v21  ;;  %v560_v30 = vld [vmem:[%s979_s0 + $0x50] sm:$0xf] }
   0xa   :  { %279 = vmatpush.bf16.msra.mxu0 %v667_v4  ;;  %727 = vmatpush.bf16.msra.mxu2 %v667_v4  ;;  %v557_v27 = vor.u32 %v654_v22, %v554_v23  ;;  %v657_v31 = vld [vmem:[%s979_s0 + $0x54] sm:$0xf0]  ;;  %v648_v32 = vld [vmem:[%s979_s0 + $0x14] sm:$0xf]  ;;  %v530_v33 = vld [vmem:[%s979_s0 + $0x18] sm:$0xf0] }
   0xb   :  { %328 = vmatpush.bf16.msra.mxu1 %v675_v5  ;;  %735 = vmatpush.bf16.msra.mxu3 %v675_v5  ;;  %v656_v34 = vld [vmem:[%s979_s0 + $0x54] sm:$0xf]  ;;  %v562_v35 = vld [vmem:[%s979_s0 + $0x58] sm:$0xf0]  ;;  %v561_v37 = vor.u32 %v657_v31, %v560_v30  ;;  %v533_v38 = vor.u32 %v648_v32, %v530_v33  ;;  %v536_v40 = vld [vmem:[%s979_s0 + $0x20] sm:$0xf] }
   0xc   :  { %v565_v39 = vor.u32 %v656_v34, %v562_v35  ;;  %v651_v41 = vld [vmem:[%s979_s0 + $0x24] sm:$0xf0]  ;;  %v568_v42 = vld [vmem:[%s979_s0 + $0x60] sm:$0xf]  ;;  %v650_v44 = vld [vmem:[%s979_s0 + $0x24] sm:$0xf] }
   0xd   :  { %v659_v43 = vld [vmem:[%s979_s0 + $0x64] sm:$0xf0]  ;;  %v538_v45 = vld [vmem:[%s979_s0 + $0x28] sm:$0xf0]  ;;  %v658_v46 = vld [vmem:[%s979_s0 + $0x64] sm:$0xf]  ;;  %v537_v48 = vor.u32 %v651_v41, %v536_v40 }
   0xe   :  { %280 = vmatpush.bf16.msra.mxu0 %v666_v6  ;;  %728 = vmatpush.bf16.msra.mxu2 %v666_v6  ;;  %v570_v47 = vld [vmem:[%s979_s0 + $0x68] sm:$0xf0]  ;;  %v569_v49 = vor.u32 %v659_v43, %v568_v42  ;;  %v541_v50 = vor.u32 %v650_v44, %v538_v45  ;;  %v544_v52 = vld [vmem:[%s979_s0 + $0x30] sm:$0xf]  ;;  %v653_v53 = vld [vmem:[%s979_s0 + $0x34] sm:$0xf0] }
   0xf   :  { %329 = vmatpush.bf16.msra.mxu1 %v674_v7  ;;  %736 = vmatpush.bf16.msra.mxu3 %v674_v7  ;;  %v573_v51 = vor.u32 %v658_v46, %v570_v47  ;;  %v576_v54 = vld [vmem:[%s979_s0 + $0x70] sm:$0xf]  ;;  %v661_v55 = vld [vmem:[%s979_s0 + $0x74] sm:$0xf0]  ;;  %v652_v56 = vld [vmem:[%s979_s0 + $0x34] sm:$0xf]  ;;  %v545_v60 = vor.u32 %v653_v53, %v544_v52 }
  0x10   :  { %v546_v57 = vld [vmem:[%s979_s0 + $0x38] sm:$0xf0]  ;;  %v660_v58 = vld [vmem:[%s979_s0 + $0x74] sm:$0xf]  ;;  %v577_v61 = vor.u32 %v661_v55, %v576_v54  ;;  %v915_v3 = vld [vmem:[%s980_s2] ss:$0 sm:$0xff] }
  0x11   :  { %v578_v59 = vld [vmem:[%s979_s0 + $0x78] sm:$0xf0]  ;;  %v549_v62 = vor.u32 %v652_v56, %v546_v57  ;;  %v921_v7 = vld [vmem:[%s981_s3] ss:$0 sm:$0xff] }
  0x12   :  { %281 = vmatpush.bf16.msra.mxu0 %v665_v8  ;;  %729 = vmatpush.bf16.msra.mxu2 %v665_v8  ;;  %v581_v63 = vor.u32 %v660_v58, %v578_v59 }
  0x13   :  { %330 = vmatpush.bf16.msra.mxu1 %v673_v9  ;;  %737 = vmatpush.bf16.msra.mxu3 %v673_v9 }
  0x16   :  { %282 = vmatpush.bf16.msra.mxu0 %v664_v10  ;;  %730 = vmatpush.bf16.msra.mxu2 %v664_v10 }
  0x17   :  { %331 = vmatpush.bf16.msra.mxu1 %v672_v11  ;;  %738 = vmatpush.bf16.msra.mxu3 %v672_v11 }
  0x1a   :  { %283 = vmatpush.bf16.msra.mxu0 %v663_v12  ;;  %731 = vmatpush.bf16.msra.mxu2 %v663_v12 }
  0x1b   :  { %332 = vmatpush.bf16.msra.mxu1 %v671_v13  ;;  %739 = vmatpush.bf16.msra.mxu3 %v671_v13 }
  0x1e   :  { %284 = vmatpush.bf16.msra.mxu0 %v662_v14  ;;  %732 = vmatpush.bf16.msra.mxu2 %v662_v14 }
  0x1f   :  { %333 = vmatpush.bf16.msra.mxu1 %v670_v15  ;;  %740 = vmatpush.bf16.msra.mxu3 %v670_v15 }
  0x21   :  { %285 = vmatmul.bf16.vlgmr.msra.gmra.mxu0 %v521_v24  ;;  %305 = vmatmul.bf16.vlgmr.msra.gmra.mxu2 %v553_v25 }
  0x22   :  { %334 = vmatmul.bf16.vlgmr.msra.gmra.mxu1 %v525_v26  ;;  %354 = vmatmul.bf16.vlgmr.msra.gmra.mxu3 %v557_v27 }
  0x31   :  { %290 = vmatmul.bf16.gmra.mxu0 %v529_v36  ;;  %310 = vmatmul.bf16.gmra.mxu2 %v561_v37 }
  0x32   :  { %339 = vmatmul.bf16.gmra.mxu1 %v533_v38  ;;  %359 = vmatmul.bf16.gmra.mxu3 %v565_v39 }
  0x41   :  { %295 = vmatmul.bf16.gmra.mxu0 %v537_v48  ;;  %315 = vmatmul.bf16.gmra.mxu2 %v569_v49 }
  0x42   :  { %344 = vmatmul.bf16.gmra.mxu1 %v541_v50  ;;  %364 = vmatmul.bf16.gmra.mxu3 %v573_v51 }
  0x51   :  { %300 = vmatmul.bf16.gmra.mxu0 %v545_v60  ;;  %320 = vmatmul.bf16.gmra.mxu2 %v577_v61 }
  0x52   :  { %349 = vmatmul.bf16.gmra.mxu1 %v549_v62  ;;  %369 = vmatmul.bf16.gmra.mxu3 %v581_v63 }
  0x9e   :  { %v286_v0 = vpop.f32.mrf.mxu0 }
  0x9f   :  { %v335_v1 = vpop.f32.mrf.mxu1 }
  0xa0   :  { %v336_v2 = vadd.f32 %v335_v1, %v286_v0 }
  0xa2   :  { %v430_v6 = vmul.f32 %v915_v3, %v336_v2 }
  0xa4   :  { %v306_v4 = vpop.f32.mrf.mxu2  ;;  %v450_v12 = vadd.f32 %v921_v7, %v430_v6 }
  0xa5   :  { %v355_v5 = vpop.f32.mrf.mxu3 }
  0xa6   :  { %v288_v8 = vpop.f32.mrf.mxu0  ;;  %v356_v10 = vadd.f32 %v355_v5, %v306_v4  ;;  %v466_v18 = vmax.f32 %v450_v12, 0.0 }
  0xa7   :  { %v337_v9 = vpop.f32.mrf.mxu1 }
  0xa8   :  { %v338_v11 = vadd.f32 %v337_v9, %v288_v8  ;;  %v438_v14 = vmul.f32 %v915_v3, %v356_v10 }
  0xaa   :  { %v431_v13 = vmul.f32 %v915_v3, %v338_v11  ;;  %v458_v23 = vadd.f32 %v921_v7, %v438_v14 }
  0xac   :  { %v451_v15 = vadd.f32 %v921_v7, %v431_v13  ;;  %v308_v16 = vpop.f32.mrf.mxu2  ;;  %v474_v28 = vmax.f32 %v458_v23, 0.0 }
  0xad   :  { %v357_v17 = vpop.f32.mrf.mxu3 }
  0xae   :  { %v467_v19 = vmax.f32 %v451_v15, 0.0  ;;  %v358_v20 = vadd.f32 %v357_v17, %v308_v16  ;;  %v291_v21 = vpop.f32.mrf.mxu0 }
  0xaf   :  { %v340_v22 = vpop.f32.mrf.mxu1 }
  0xb0   :  { %v681_v24 = vpack.c.bf16 %v467_v19, %v466_v18  ;;  %v439_v25 = vmul.f32 %v915_v3, %v358_v20  ;;  %v341_v27 = vadd.f32 %v340_v22, %v291_v21 }
  0xb2   :  { %682 = vst [vmem:[%s982_s4] sm:$0xff] %v681_v24   ;;  %v459_v26 = vadd.f32 %v921_v7, %v439_v25  ;;  %v432_v33 = vmul.f32 %v915_v3, %v341_v27 }
  0xb4   :  { %v475_v29 = vmax.f32 %v459_v26, 0.0  ;;  %v311_v30 = vpop.f32.mrf.mxu2  ;;  %v452_v38 = vadd.f32 %v921_v7, %v432_v33 }
  0xb5   :  { %v360_v31 = vpop.f32.mrf.mxu3 }
  0xb6   :  { %v701_v32 = vpack.c.bf16 %v475_v29, %v474_v28  ;;  %v293_v34 = vpop.f32.mrf.mxu0  ;;  %v361_v36 = vadd.f32 %v360_v31, %v311_v30  ;;  %v468_v44 = vmax.f32 %v452_v38, 0.0 }
  0xb7   :  { %v342_v35 = vpop.f32.mrf.mxu1 }
  0xb8   :  { %721 = vst [vmem:[%s982_s4 + $0x20] sm:$0xff] %v701_v32   ;;  %v343_v37 = vadd.f32 %v342_v35, %v293_v34  ;;  %v440_v40 = vmul.f32 %v915_v3, %v361_v36 }
  0xba   :  { %v433_v39 = vmul.f32 %v915_v3, %v343_v37  ;;  %v460_v49 = vadd.f32 %v921_v7, %v440_v40 }
  0xbc   :  { %v453_v41 = vadd.f32 %v921_v7, %v433_v39  ;;  %v313_v42 = vpop.f32.mrf.mxu2  ;;  %v476_v54 = vmax.f32 %v460_v49, 0.0 }
  0xbd   :  { %v362_v43 = vpop.f32.mrf.mxu3 }
  0xbe   :  { %v469_v45 = vmax.f32 %v453_v41, 0.0  ;;  %v363_v46 = vadd.f32 %v362_v43, %v313_v42  ;;  %v296_v47 = vpop.f32.mrf.mxu0 }
  0xbf   :  { %v345_v48 = vpop.f32.mrf.mxu1 }
  0xc0   :  { %v686_v50 = vpack.c.bf16 %v469_v45, %v468_v44  ;;  %v441_v51 = vmul.f32 %v915_v3, %v363_v46  ;;  %v346_v53 = vadd.f32 %v345_v48, %v296_v47 }
  0xc2   :  { %718 = vst [vmem:[%s982_s4 + $0x8] sm:$0xff] %v686_v50   ;;  %v461_v52 = vadd.f32 %v921_v7, %v441_v51  ;;  %v434_v59 = vmul.f32 %v915_v3, %v346_v53 }
  0xc4   :  { %v477_v55 = vmax.f32 %v461_v52, 0.0  ;;  %v316_v56 = vpop.f32.mrf.mxu2  ;;  %v454_v0 = vadd.f32 %v921_v7, %v434_v59 }
  0xc5   :  { %v365_v57 = vpop.f32.mrf.mxu3 }
  0xc6   :  { %v706_v58 = vpack.c.bf16 %v477_v55, %v476_v54  ;;  %v298_v60 = vpop.f32.mrf.mxu0  ;;  %v366_v62 = vadd.f32 %v365_v57, %v316_v56  ;;  %v470_v8 = vmax.f32 %v454_v0, 0.0 }
  0xc7   :  { %v347_v61 = vpop.f32.mrf.mxu1 }
  0xc8   :  { %722 = vst [vmem:[%s982_s4 + $0x28] sm:$0xff] %v706_v58   ;;  %v348_v63 = vadd.f32 %v347_v61, %v298_v60  ;;  %v442_v2 = vmul.f32 %v915_v3, %v366_v62 }
  0xca   :  { %v435_v1 = vmul.f32 %v915_v3, %v348_v63  ;;  %v462_v13 = vadd.f32 %v921_v7, %v442_v2 }
  0xcc   :  { %v455_v4 = vadd.f32 %v921_v7, %v435_v1  ;;  %v318_v5 = vpop.f32.mrf.mxu2  ;;  %v478_v18 = vmax.f32 %v462_v13, 0.0 }
  0xcd   :  { %v367_v6 = vpop.f32.mrf.mxu3 }
  0xce   :  { %v471_v9 = vmax.f32 %v455_v4, 0.0  ;;  %v368_v10 = vadd.f32 %v367_v6, %v318_v5  ;;  %v301_v11 = vpop.f32.mrf.mxu0 }
  0xcf   :  { %v350_v12 = vpop.f32.mrf.mxu1 }
  0xd0   :  { %v691_v14 = vpack.c.bf16 %v471_v9, %v470_v8  ;;  %v443_v15 = vmul.f32 %v915_v3, %v368_v10  ;;  %v351_v17 = vadd.f32 %v350_v12, %v301_v11 }
  0xd2   :  { %719 = vst [vmem:[%s982_s4 + $0x10] sm:$0xff] %v691_v14   ;;  %v463_v16 = vadd.f32 %v921_v7, %v443_v15  ;;  %v436_v23 = vmul.f32 %v915_v3, %v351_v17 }
  0xd4   :  { %v479_v19 = vmax.f32 %v463_v16, 0.0  ;;  %v321_v20 = vpop.f32.mrf.mxu2  ;;  %v456_v28 = vadd.f32 %v921_v7, %v436_v23 }
  0xd5   :  { %v370_v21 = vpop.f32.mrf.mxu3 }
  0xd6   :  { %v711_v22 = vpack.c.bf16 %v479_v19, %v478_v18  ;;  %v303_v24 = vpop.f32.mrf.mxu0  ;;  %v371_v26 = vadd.f32 %v370_v21, %v321_v20  ;;  %v472_v34 = vmax.f32 %v456_v28, 0.0 }
  0xd7   :  { %v352_v25 = vpop.f32.mrf.mxu1 }
  0xd8   :  { %723 = vst [vmem:[%s982_s4 + $0x30] sm:$0xff] %v711_v22   ;;  %v353_v27 = vadd.f32 %v352_v25, %v303_v24  ;;  %v444_v30 = vmul.f32 %v915_v3, %v371_v26 }
  0xda   :  { %v437_v29 = vmul.f32 %v915_v3, %v353_v27  ;;  %v464_v37 = vadd.f32 %v921_v7, %v444_v30 }
  0xdc   :  { %v457_v31 = vadd.f32 %v921_v7, %v437_v29  ;;  %v323_v32 = vpop.f32.mrf.mxu2  ;;  %v480_v41 = vmax.f32 %v464_v37, 0.0 }
  0xdd   :  { %v372_v33 = vpop.f32.mrf.mxu3 }
  0xde   :  { %v473_v35 = vmax.f32 %v457_v31, 0.0  ;;  %v373_v36 = vadd.f32 %v372_v33, %v323_v32 }
  0xe0   :  { %v696_v38 = vpack.c.bf16 %v473_v35, %v472_v34  ;;  %v445_v39 = vmul.f32 %v915_v3, %v373_v36 }
  0xe2   :  { %720 = vst [vmem:[%s982_s4 + $0x18] sm:$0xff] %v696_v38   ;;  %v465_v40 = vadd.f32 %v921_v7, %v445_v39 }
  0xe4   :  { %v481_v42 = vmax.f32 %v465_v40, 0.0 }
  0xe6   :  { %v716_v43 = vpack.c.bf16 %v481_v42, %v480_v41 }
  0xe8   :  { %724 = vst [vmem:[%s982_s4 + $0x38] sm:$0xff] %v716_v43  }

// kernel: resnet_forward.17
= control target key start
LH: loop header
LB: loop body
LE: loop exit
PB: predicated region body
PF: predicated region fallthrough
CT: control target
= control target key end

     0   :  { %s613_s1 = inlined_call_operand.vmem [shape: bf16[128,128], index: 1, kind: input, shape index: {}]   ;;  %s614_s2 = inlined_call_operand.vmem [shape: f32[1,128], index: 2, kind: input, shape index: {}]   ;;  %s615_s3 = inlined_call_operand.vmem [shape: f32[1,128], index: 3, kind: input, shape index: {}]   ;;  %s616_s0 = inlined_call_operand.vmem [shape: bf16[128,128], index: 0, kind: input, shape index: {}]   ;;  %s617_s4 = inlined_call_operand.vmem [shape: bf16[128,128], index: 4, kind: output, shape index: {}]  }
   0x1   :  { %v436_v0 = vld [vmem:[%s613_s1 + $0x38] sm:$0xff]  ;;  %v435_v1 = vld [vmem:[%s613_s1 + $0x30] sm:$0xff]  ;;  %v434_v2 = vld [vmem:[%s613_s1 + $0x28] sm:$0xff] }
   0x2   :  { %181 = vmatpush.bf16.msra.mxu0 %v436_v0  ;;  %484 = vmatpush.bf16.msra.mxu1 %v436_v0  ;;  %v433_v3 = vld [vmem:[%s613_s1 + $0x20] sm:$0xff]  ;;  %v432_v4 = vld [vmem:[%s613_s1 + $0x18] sm:$0xff]  ;;  %v431_v5 = vld [vmem:[%s613_s1 + $0x10] sm:$0xff] }
   0x3   :  { %485 = vmatpush.bf16.msra.mxu2 %v436_v0  ;;  %486 = vmatpush.bf16.msra.mxu3 %v436_v0  ;;  %v430_v6 = vld [vmem:[%s613_s1 + $0x8] sm:$0xff]  ;;  %v429_v7 = vld [vmem:[%s613_s1] sm:$0xff]  ;;  %v423_v9 = vld [vmem:[%s616_s0 + $0x10] sm:$0xff] }
   0x4   :  { %v421_v8 = vld [vmem:[%s616_s0] sm:$0xff]  ;;  %v427_v11 = vld [vmem:[%s616_s0 + $0x30] sm:$0xff]  ;;  %v422_v12 = vld [vmem:[%s616_s0 + $0x8] sm:$0xff] }
   0x5   :  { %v425_v10 = vld [vmem:[%s616_s0 + $0x20] sm:$0xff]  ;;  %v424_v13 = vld [vmem:[%s616_s0 + $0x18] sm:$0xff]  ;;  %v426_v14 = vld [vmem:[%s616_s0 + $0x28] sm:$0xff] }
   0x6   :  { %182 = vmatpush.bf16.msra.mxu0 %v435_v1  ;;  %487 = vmatpush.bf16.msra.mxu1 %v435_v1  ;;  %v428_v15 = vld [vmem:[%s616_s0 + $0x38] sm:$0xff]  ;;  %v508_v18 = vld [vmem:[%s614_s2] ss:$0 sm:$0xff] }
   0x7   :  { %488 = vmatpush.bf16.msra.mxu2 %v435_v1  ;;  %489 = vmatpush.bf16.msra.mxu3 %v435_v1  ;;  %v509_v20 = vld [vmem:[%s615_s3] ss:$0 sm:$0xff] }
   0xa   :  { %183 = vmatpush.bf16.msra.mxu0 %v434_v2  ;;  %490 = vmatpush.bf16.msra.mxu1 %v434_v2 }
   0xb   :  { %491 = vmatpush.bf16.msra.mxu2 %v434_v2  ;;  %492 = vmatpush.bf16.msra.mxu3 %v434_v2 }
   0xe   :  { %184 = vmatpush.bf16.msra.mxu0 %v433_v3  ;;  %493 = vmatpush.bf16.msra.mxu1 %v433_v3 }
   0xf   :  { %494 = vmatpush.bf16.msra.mxu2 %v433_v3  ;;  %495 = vmatpush.bf16.msra.mxu3 %v433_v3 }
  0x12   :  { %185 = vmatpush.bf16.msra.mxu0 %v432_v4  ;;  %496 = vmatpush.bf16.msra.mxu1 %v432_v4 }
  0x13   :  { %497 = vmatpush.bf16.msra.mxu2 %v432_v4  ;;  %498 = vmatpush.bf16.msra.mxu3 %v432_v4 }
  0x16   :  { %186 = vmatpush.bf16.msra.mxu0 %v431_v5  ;;  %499 = vmatpush.bf16.msra.mxu1 %v431_v5 }
  0x17   :  { %500 = vmatpush.bf16.msra.mxu2 %v431_v5  ;;  %501 = vmatpush.bf16.msra.mxu3 %v431_v5 }
  0x1a   :  { %187 = vmatpush.bf16.msra.mxu0 %v430_v6  ;;  %502 = vmatpush.bf16.msra.mxu1 %v430_v6 }
  0x1b   :  { %503 = vmatpush.bf16.msra.mxu2 %v430_v6  ;;  %504 = vmatpush.bf16.msra.mxu3 %v430_v6 }
  0x1e   :  { %188 = vmatpush.bf16.msra.mxu0 %v429_v7  ;;  %505 = vmatpush.bf16.msra.mxu1 %v429_v7 }
  0x1f   :  { %506 = vmatpush.bf16.msra.mxu2 %v429_v7  ;;  %507 = vmatpush.bf16.msra.mxu3 %v429_v7 }
  0x21   :  { %189 = vmatmul.bf16.vlgmr.msra.gmra.mxu0 %v421_v8  ;;  %199 = vmatmul.bf16.vlgmr.msra.gmra.mxu1 %v423_v9 }
  0x22   :  { %209 = vmatmul.bf16.vlgmr.msra.gmra.mxu2 %v425_v10  ;;  %219 = vmatmul.bf16.vlgmr.msra.gmra.mxu3 %v427_v11 }
  0x31   :  { %194 = vmatmul.bf16.gmra.mxu0 %v422_v12  ;;  %204 = vmatmul.bf16.gmra.mxu1 %v424_v13 }
  0x32   :  { %214 = vmatmul.bf16.gmra.mxu2 %v426_v14  ;;  %224 = vmatmul.bf16.gmra.mxu3 %v428_v15 }
  0x9e   :  { %v190_v16 = vpop.f32.mrf.mxu0  ;;  %v200_v17 = vpop.f32.mrf.mxu1 }
  0x9f   :  { %v285_v19 = vmul.f32 %v508_v18, %v190_v16  ;;  %v289_v21 = vmul.f32 %v508_v18, %v200_v17 }
  0xa1   :  { %v305_v28 = vadd.f32 %v509_v20, %v285_v19  ;;  %v309_v29 = vadd.f32 %v509_v20, %v289_v21 }
  0xa5   :  { %v210_v22 = vpop.f32.mrf.mxu2  ;;  %v220_v23 = vpop.f32.mrf.mxu3 }
  0xa6   :  { %v192_v24 = vpop.f32.mrf.mxu0  ;;  %v202_v25 = vpop.f32.mrf.mxu1  ;;  %v293_v34 = vmul.f32 %v508_v18, %v210_v22  ;;  %v297_v35 = vmul.f32 %v508_v18, %v220_v23 }
  0xa7   :  { %v286_v26 = vmul.f32 %v508_v18, %v192_v24  ;;  %v290_v27 = vmul.f32 %v508_v18, %v202_v25 }
  0xa8   :  { %v313_v42 = vadd.f32 %v509_v20, %v293_v34  ;;  %v317_v43 = vadd.f32 %v509_v20, %v297_v35 }
  0xa9   :  { %v306_v30 = vadd.f32 %v509_v20, %v286_v26  ;;  %v310_v31 = vadd.f32 %v509_v20, %v290_v27 }
  0xab   :  { %v440_v32 = vpack.c.bf16 %v306_v30, %v305_v28  ;;  %v450_v33 = vpack.c.bf16 %v310_v31, %v309_v29 }
  0xad   :  { %441 = vst [vmem:[%s617_s4] sm:$0xff] %v440_v32   ;;  %v212_v36 = vpop.f32.mrf.mxu2  ;;  %v222_v37 = vpop.f32.mrf.mxu3 }
  0xae   :  { %478 = vst [vmem:[%s617_s4 + $0x10] sm:$0xff] %v450_v33   ;;  %v294_v38 = vmul.f32 %v508_v18, %v212_v36  ;;  %v298_v39 = vmul.f32 %v508_v18, %v222_v37  ;;  %v195_v40 = vpop.f32.mrf.mxu0  ;;  %v205_v41 = vpop.f32.mrf.mxu1 }
  0xaf   :  { %v287_v48 = vmul.f32 %v508_v18, %v195_v40  ;;  %v291_v49 = vmul.f32 %v508_v18, %v205_v41 }
  0xb0   :  { %v314_v44 = vadd.f32 %v509_v20, %v294_v38  ;;  %v318_v45 = vadd.f32 %v509_v20, %v298_v39 }
  0xb1   :  { %v307_v56 = vadd.f32 %v509_v20, %v287_v48  ;;  %v311_v57 = vadd.f32 %v509_v20, %v291_v49 }
  0xb2   :  { %v460_v46 = vpack.c.bf16 %v314_v44, %v313_v42  ;;  %v470_v47 = vpack.c.bf16 %v318_v45, %v317_v43 }
  0xb4   :  { %480 = vst [vmem:[%s617_s4 + $0x20] sm:$0xff] %v460_v46  }
  0xb5   :  { %482 = vst [vmem:[%s617_s4 + $0x30] sm:$0xff] %v470_v47   ;;  %v215_v50 = vpop.f32.mrf.mxu2  ;;  %v225_v51 = vpop.f32.mrf.mxu3 }
  0xb6   :  { %v197_v52 = vpop.f32.mrf.mxu0  ;;  %v207_v53 = vpop.f32.mrf.mxu1  ;;  %v295_v62 = vmul.f32 %v508_v18, %v215_v50  ;;  %v299_v63 = vmul.f32 %v508_v18, %v225_v51 }
  0xb7   :  { %v288_v54 = vmul.f32 %v508_v18, %v197_v52  ;;  %v292_v55 = vmul.f32 %v508_v18, %v207_v53 }
  0xb8   :  { %v315_v4 = vadd.f32 %v509_v20, %v295_v62  ;;  %v319_v5 = vadd.f32 %v509_v20, %v299_v63 }
  0xb9   :  { %v308_v58 = vadd.f32 %v509_v20, %v288_v54  ;;  %v312_v59 = vadd.f32 %v509_v20, %v292_v55 }
  0xbb   :  { %v445_v60 = vpack.c.bf16 %v308_v58, %v307_v56  ;;  %v455_v61 = vpack.c.bf16 %v312_v59, %v311_v57 }
  0xbd   :  { %477 = vst [vmem:[%s617_s4 + $0x8] sm:$0xff] %v445_v60   ;;  %v217_v0 = vpop.f32.mrf.mxu2  ;;  %v227_v1 = vpop.f32.mrf.mxu3 }
  0xbe   :  { %479 = vst [vmem:[%s617_s4 + $0x18] sm:$0xff] %v455_v61   ;;  %v296_v2 = vmul.f32 %v508_v18, %v217_v0  ;;  %v300_v3 = vmul.f32 %v508_v18, %v227_v1 }
  0xc0   :  { %v316_v6 = vadd.f32 %v509_v20, %v296_v2  ;;  %v320_v7 = vadd.f32 %v509_v20, %v300_v3 }
  0xc2   :  { %v465_v8 = vpack.c.bf16 %v316_v6, %v315_v4  ;;  %v475_v9 = vpack.c.bf16 %v320_v7, %v319_v5 }
  0xc4   :  { %481 = vst [vmem:[%s617_s4 + $0x28] sm:$0xff] %v465_v8  }
  0xc5   :  { %483 = vst [vmem:[%s617_s4 + $0x38] sm:$0xff] %v475_v9  }

// kernel: resnet_forward.19
= control target key start
LH: loop header
LB: loop body
LE: loop exit
PB: predicated region body
PF: predicated region fallthrough
CT: control target
= control target key end

     0   :  { %s1493_s1 = inlined_call_operand.vmem [shape: bf16[384,128], index: 1, kind: input, shape index: {}]   ;;  %s1494_s0 = inlined_call_operand.vmem [shape: bf16[128,384], index: 0, kind: input, shape index: {}]   ;;  %s1495_s2 = inlined_call_operand.vmem [shape: f32[1,128], index: 2, kind: input, shape index: {}]   ;;  %s1496_s3 = inlined_call_operand.vmem [shape: f32[1,128], index: 3, kind: input, shape index: {}]   ;;  %s1497_s4 = inlined_call_operand.vmem [shape: bf16[128,128], index: 4, kind: input, shape index: {}]   ;;  %s1498_s5 = inlined_call_operand.vmem [shape: bf16[128,128], index: 5, kind: output, shape index: {}]  }
   0x1   :  { %v969_v0 = vld [vmem:[%s1493_s1 + $0x38] sm:$0xff]  ;;  %v968_v3 = vld [vmem:[%s1493_s1 + $0x30] sm:$0xff]  ;;  %v967_v6 = vld [vmem:[%s1493_s1 + $0x28] sm:$0xff] }
   0x2   :  { %v1134_v1 = vld [vmem:[%s1493_s1 + $0x78] sm:$0xff]  ;;  %408 = vmatpush.bf16.msra.mxu0 %v969_v0  ;;  %1072 = vmatpush.bf16.msra.mxu3 %v969_v0  ;;  %v1149_v4 = vld [vmem:[%s1493_s1 + $0x70] sm:$0xff]  ;;  %v975_v7 = vld [vmem:[%s1493_s1 + $0x68] sm:$0xff] }
   0x3   :  { %v1139_v2 = vld [vmem:[%s1493_s1 + $0xb8] sm:$0xff]  ;;  %457 = vmatpush.bf16.msra.mxu1 %v1134_v1  ;;  %v1154_v5 = vld [vmem:[%s1493_s1 + $0xb0] sm:$0xff]  ;;  %v1167_v8 = vld [vmem:[%s1493_s1 + $0xa8] sm:$0xff] }
   0x4   :  { %506 = vmatpush.bf16.msra.mxu2 %v1139_v2  ;;  %v966_v9 = vld [vmem:[%s1493_s1 + $0x20] sm:$0xff]  ;;  %v965_v12 = vld [vmem:[%s1493_s1 + $0x18] sm:$0xff]  ;;  %v964_v15 = vld [vmem:[%s1493_s1 + $0x10] sm:$0xff] }
   0x5   :  { %v1176_v10 = vld [vmem:[%s1493_s1 + $0x60] sm:$0xff]  ;;  %v973_v13 = vld [vmem:[%s1493_s1 + $0x58] sm:$0xff]  ;;  %v972_v16 = vld [vmem:[%s1493_s1 + $0x50] sm:$0xff] }
   0x6   :  { %409 = vmatpush.bf16.msra.mxu0 %v968_v3  ;;  %1073 = vmatpush.bf16.msra.mxu3 %v968_v3  ;;  %v1181_v11 = vld [vmem:[%s1493_s1 + $0xa0] sm:$0xff]  ;;  %v1194_v14 = vld [vmem:[%s1493_s1 + $0x98] sm:$0xff]  ;;  %v1206_v17 = vld [vmem:[%s1493_s1 + $0x90] sm:$0xff] }
   0x7   :  { %458 = vmatpush.bf16.msra.mxu1 %v1149_v4  ;;  %v963_v18 = vld [vmem:[%s1493_s1 + $0x8] sm:$0xff]  ;;  %v962_v21 = vld [vmem:[%s1493_s1] sm:$0xff]  ;;  %v820_v26 = vld [vmem:[%s1494_s0 + $0x90] sm:$0xf] }
   0x8   :  { %507 = vmatpush.bf16.msra.mxu2 %v1154_v5  ;;  %v971_v19 = vld [vmem:[%s1493_s1 + $0x48] sm:$0xff]  ;;  %v970_v22 = vld [vmem:[%s1493_s1 + $0x40] sm:$0xff]  ;;  %v957_v27 = vld [vmem:[%s1494_s0 + $0x98] sm:$0xf0] }
   0x9   :  { %v1218_v20 = vld [vmem:[%s1493_s1 + $0x88] sm:$0xff]  ;;  %v1229_v23 = vld [vmem:[%s1493_s1 + $0x80] sm:$0xff]  ;;  %v750_v29 = vld [vmem:[%s1494_s0 + $0xc] sm:$0xf0]  ;;  %v821_v33 = vor.u32 %v957_v27, %v820_v26 }
   0xa   :  { %410 = vmatpush.bf16.msra.mxu0 %v967_v6  ;;  %1074 = vmatpush.bf16.msra.mxu3 %v967_v6  ;;  %v748_v24 = vld [vmem:[%s1494_s0] sm:$0xf]  ;;  %v939_v25 = vld [vmem:[%s1494_s0 + $0x8] sm:$0xf0]  ;;  %v938_v28 = vld [vmem:[%s1494_s0 + $0x4] sm:$0xf] }
   0xb   :  { %459 = vmatpush.bf16.msra.mxu1 %v975_v7  ;;  %v756_v30 = vld [vmem:[%s1494_s0 + $0x8] sm:$0xf]  ;;  %v940_v31 = vld [vmem:[%s1494_s0 + $0x10] sm:$0xf0]  ;;  %v749_v32 = vor.u32 %v939_v25, %v748_v24  ;;  %v753_v34 = vor.u32 %v938_v28, %v750_v29  ;;  %v760_v36 = vld [vmem:[%s1494_s0 + $0x18] sm:$0xf] }
   0xc   :  { %508 = vmatpush.bf16.msra.mxu2 %v1167_v8  ;;  %v757_v35 = vor.u32 %v940_v31, %v756_v30  ;;  %v942_v37 = vld [vmem:[%s1494_s0 + $0x20] sm:$0xf0]  ;;  %v832_v38 = vld [vmem:[%s1494_s0 + $0xa8] sm:$0xf]  ;;  %v960_v39 = vld [vmem:[%s1494_s0 + $0xb0] sm:$0xf0] }
   0xd   :  { %v941_v40 = vld [vmem:[%s1494_s0 + $0x1c] sm:$0xf]  ;;  %v762_v41 = vld [vmem:[%s1494_s0 + $0x24] sm:$0xf0]  ;;  %v768_v42 = vld [vmem:[%s1494_s0 + $0x20] sm:$0xf]  ;;  %v761_v44 = vor.u32 %v942_v37, %v760_v36  ;;  %v833_v45 = vor.u32 %v960_v39, %v832_v38 }
   0xe   :  { %411 = vmatpush.bf16.msra.mxu0 %v966_v9  ;;  %1075 = vmatpush.bf16.msra.mxu3 %v966_v9  ;;  %v943_v43 = vld [vmem:[%s1494_s0 + $0x28] sm:$0xf0]  ;;  %v765_v46 = vor.u32 %v941_v40, %v762_v41  ;;  %v772_v48 = vld [vmem:[%s1494_s0 + $0x30] sm:$0xf]  ;;  %v945_v49 = vld [vmem:[%s1494_s0 + $0x38] sm:$0xf0] }
   0xf   :  { %460 = vmatpush.bf16.msra.mxu1 %v1176_v10  ;;  %v769_v47 = vor.u32 %v943_v43, %v768_v42  ;;  %v944_v50 = vld [vmem:[%s1494_s0 + $0x34] sm:$0xf]  ;;  %v822_v52 = vld [vmem:[%s1494_s0 + $0x9c] sm:$0xf0]  ;;  %v780_v54 = vld [vmem:[%s1494_s0 + $0x38] sm:$0xf]  ;;  %v773_v56 = vor.u32 %v945_v49, %v772_v48 }
  0x10   :  { %509 = vmatpush.bf16.msra.mxu2 %v1181_v11  ;;  %v956_v51 = vld [vmem:[%s1494_s0 + $0x94] sm:$0xf]  ;;  %v774_v53 = vld [vmem:[%s1494_s0 + $0x3c] sm:$0xf0]  ;;  %v946_v55 = vld [vmem:[%s1494_s0 + $0x40] sm:$0xf0] }
  0x11   :  { %v825_v57 = vor.u32 %v956_v51, %v822_v52  ;;  %v777_v58 = vor.u32 %v944_v50, %v774_v53  ;;  %v781_v59 = vor.u32 %v946_v55, %v780_v54  ;;  %v784_v60 = vld [vmem:[%s1494_s0 + $0x48] sm:$0xf]  ;;  %v948_v61 = vld [vmem:[%s1494_s0 + $0x50] sm:$0xf0]  ;;  %v947_v62 = vld [vmem:[%s1494_s0 + $0x4c] sm:$0xf] }
  0x12   :  { %412 = vmatpush.bf16.msra.mxu0 %v965_v12  ;;  %1076 = vmatpush.bf16.msra.mxu3 %v965_v12  ;;  %v959_v63 = vld [vmem:[%s1494_s0 + $0xac] sm:$0xf]  ;;  %v834_v0 = vld [vmem:[%s1494_s0 + $0xb4] sm:$0xf0]  ;;  %v949_v3 = vld [vmem:[%s1494_s0 + $0x58] sm:$0xf0] }
  0x13   :  { %461 = vmatpush.bf16.msra.mxu1 %v973_v13  ;;  %v951_v9 = vld [vmem:[%s1494_s0 + $0x68] sm:$0xf0]  ;;  %v958_v12 = vld [vmem:[%s1494_s0 + $0xa0] sm:$0xf0]  ;;  %v961_v24 = vld [vmem:[%s1494_s0 + $0xb8] sm:$0xf0] }
  0x14   :  { %510 = vmatpush.bf16.msra.mxu2 %v1194_v14  ;;  %v810_v25 = vld [vmem:[%s1494_s0 + $0x84] sm:$0xf0]  ;;  %v816_v26 = vld [vmem:[%s1494_s0 + $0x80] sm:$0xf]  ;;  %v955_v27 = vld [vmem:[%s1494_s0 + $0x88] sm:$0xf0] }
  0x15   :  { %v817_v31 = vor.u32 %v955_v27, %v816_v26  ;;  %v1393_v38 = vld [vmem:[%s1495_s2] ss:$0 sm:$0xff]  ;;  %v1059_v27 = vld [vmem:[%s1497_s4 + $0x10] sm:$0xff]  }
  0x16   :  { %413 = vmatpush.bf16.msra.mxu0 %v964_v15  ;;  %1077 = vmatpush.bf16.msra.mxu3 %v964_v15  ;;  %v952_v15 = vld [vmem:[%s1494_s0 + $0x70] sm:$0xf0]  ;;  %v1399_v42 = vld [vmem:[%s1496_s3] ss:$0 sm:$0xff] }
  0x17   :  { %462 = vmatpush.bf16.msra.mxu1 %v972_v16  ;;  %v987_v43 = vld [vmem:[%s1497_s4] sm:$0xff]  }
  0x18   :  { %511 = vmatpush.bf16.msra.mxu2 %v1206_v17  ;;  %v988_v48 = vunpack.c.l.bf16 %v987_v43  ;;  %v989_v53 = vunpack.c.h.bf16 %v987_v43 }
  0x1a   :  { %414 = vmatpush.bf16.msra.mxu0 %v963_v18  ;;  %1078 = vmatpush.bf16.msra.mxu3 %v963_v18 }
  0x1b   :  { %463 = vmatpush.bf16.msra.mxu1 %v971_v19 }
  0x1c   :  { %512 = vmatpush.bf16.msra.mxu2 %v1218_v20 }
  0x1e   :  { %415 = vmatpush.bf16.msra.mxu0 %v962_v21  ;;  %1079 = vmatpush.bf16.msra.mxu3 %v962_v21  ;;  %v954_v21 = vld [vmem:[%s1494_s0 + $0x80] sm:$0xf0] }
  0x1f   :  { %464 = vmatpush.bf16.msra.mxu1 %v970_v22 }
  0x20   :  { %513 = vmatpush.bf16.msra.mxu2 %v1229_v23 }
  0x21   :  { %416 = vmatmul.bf16.vlgmr.msra.gmra.mxu0 %v749_v32  ;;  %446 = vmatmul.bf16.vlgmr.msra.gmra.mxu3 %v821_v33 }
  0x22   :  { %1080 = vmatpush.bf16.msrb.mxu3 %v1134_v1  ;;  %465 = vmatmul.bf16.vlgmr.msra.gmra.mxu1 %v753_v34  ;;  %v786_v1 = vld [vmem:[%s1494_s0 + $0x54] sm:$0xf0] }
  0x23   :  { %514 = vmatmul.bf16.vlgmr.msra.gmra.mxu2 %v757_v35  ;;  %v789_v6 = vor.u32 %v947_v62, %v786_v1 }
  0x26   :  { %1081 = vmatpush.bf16.msrb.mxu3 %v1149_v4  ;;  %v785_v4 = vor.u32 %v948_v61, %v784_v60 }
  0x2a   :  { %1082 = vmatpush.bf16.msrb.mxu3 %v975_v7 }
  0x2e   :  { %1083 = vmatpush.bf16.msrb.mxu3 %v1176_v10  ;;  %v950_v10 = vld [vmem:[%s1494_s0 + $0x64] sm:$0xf] }
  0x31   :  { %421 = vmatmul.bf16.gmra.mxu0 %v761_v44  ;;  %451 = vmatmul.bf16.gmra.mxu3 %v833_v45 }
  0x32   :  { %1084 = vmatpush.bf16.msrb.mxu3 %v973_v13  ;;  %470 = vmatmul.bf16.gmra.mxu1 %v765_v46  ;;  %v798_v13 = vld [vmem:[%s1494_s0 + $0x6c] sm:$0xf0] }
  0x33   :  { %519 = vmatmul.bf16.gmra.mxu2 %v769_v47  ;;  %v801_v18 = vor.u32 %v950_v10, %v798_v13 }
  0x36   :  { %1085 = vmatpush.bf16.msrb.mxu3 %v972_v16 }
  0x3a   :  { %1086 = vmatpush.bf16.msrb.mxu3 %v971_v19 }
  0x3e   :  { %1087 = vmatpush.bf16.msrb.mxu3 %v970_v22  ;;  %v953_v22 = vld [vmem:[%s1494_s0 + $0x7c] sm:$0xf] }
  0x3f   :  { %v813_v30 = vor.u32 %v953_v22, %v810_v25 }
  0x41   :  { %426 = vmatmul.bf16.gmra.mxu0 %v773_v56  ;;  %495 = vmatmul.bf16.vlgmr.msrb.gmra.mxu3 %v825_v57 }
  0x42   :  { %1088 = vmatpush.bf16.msra.mxu3 %v1139_v2  ;;  %475 = vmatmul.bf16.gmra.mxu1 %v777_v58  ;;  %v792_v2 = vld [vmem:[%s1494_s0 + $0x50] sm:$0xf] }
  0x43   :  { %524 = vmatmul.bf16.gmra.mxu2 %v781_v59  ;;  %v793_v7 = vor.u32 %v949_v3, %v792_v2  ;;  %v1058_v3 = vld [vmem:[%s1497_s4 + $0x8] sm:$0xff]  }
  0x44   :  { %v993_v13 = vunpack.c.h.bf16 %v1058_v3 }
  0x46   :  { %1089 = vmatpush.bf16.msra.mxu3 %v1154_v5  ;;  %v837_v5 = vor.u32 %v959_v63, %v834_v0 }
  0x4a   :  { %1090 = vmatpush.bf16.msra.mxu3 %v1167_v8  ;;  %v796_v8 = vld [vmem:[%s1494_s0 + $0x60] sm:$0xf] }
  0x4b   :  { %v797_v16 = vor.u32 %v951_v9, %v796_v8  ;;  %v992_v8 = vunpack.c.l.bf16 %v1058_v3 }
  0x4e   :  { %1091 = vmatpush.bf16.msra.mxu3 %v1181_v11  ;;  %v828_v11 = vld [vmem:[%s1494_s0 + $0x98] sm:$0xf] }
  0x51   :  { %431 = vmatmul.bf16.gmra.mxu0 %v785_v4  ;;  %500 = vmatmul.bf16.gmra.mxu3 %v837_v5 }
  0x52   :  { %1092 = vmatpush.bf16.msra.mxu3 %v1194_v14  ;;  %480 = vmatmul.bf16.gmra.mxu1 %v789_v6  ;;  %v804_v14 = vld [vmem:[%s1494_s0 + $0x68] sm:$0xf] }
  0x53   :  { %529 = vmatmul.bf16.gmra.mxu2 %v793_v7  ;;  %v805_v19 = vor.u32 %v952_v15, %v804_v14 }
  0x56   :  { %1093 = vmatpush.bf16.msra.mxu3 %v1206_v17  ;;  %v829_v17 = vor.u32 %v958_v12, %v828_v11 }
  0x5a   :  { %1094 = vmatpush.bf16.msra.mxu3 %v1218_v20  ;;  %v808_v20 = vld [vmem:[%s1494_s0 + $0x78] sm:$0xf] }
  0x5b   :  { %v809_v28 = vor.u32 %v954_v21, %v808_v20 }
  0x5e   :  { %1095 = vmatpush.bf16.msra.mxu3 %v1229_v23  ;;  %v840_v23 = vld [vmem:[%s1494_s0 + $0xb0] sm:$0xf] }
  0x5f   :  { %v841_v29 = vor.u32 %v961_v24, %v840_v23 }
  0x61   :  { %436 = vmatmul.bf16.gmra.mxu0 %v797_v16  ;;  %544 = vmatmul.bf16.vlgmr.msra.gmra.mxu3 %v829_v17 }
  0x62   :  { %485 = vmatmul.bf16.gmra.mxu1 %v801_v18 }
  0x63   :  { %534 = vmatmul.bf16.gmra.mxu2 %v805_v19 }
  0x71   :  { %441 = vmatmul.bf16.gmra.mxu0 %v809_v28  ;;  %549 = vmatmul.bf16.gmra.mxu3 %v841_v29 }
  0x72   :  { %490 = vmatmul.bf16.gmra.mxu1 %v813_v30 }
  0x73   :  { %539 = vmatmul.bf16.gmra.mxu2 %v817_v31 }
  0x9e   :  { %v417_v32 = vpop.f32.mrf.mxu0 }
  0x9f   :  { %v466_v33 = vpop.f32.mrf.mxu1 }
  0xa0   :  { %v467_v34 = vadd.f32 %v466_v33, %v417_v32  ;;  %v996_v32 = vunpack.c.l.bf16 %v1059_v27 }
  0xa4   :  { %v1388_v35 = vpop.f32.mrf.mxu3 }
  0xa6   :  { %v515_v36 = vpop.f32.mrf.mxu2  ;;  %v419_v39 = vpop.f32.mrf.mxu0 }
  0xa7   :  { %v516_v37 = vadd.f32 %v515_v36, %v467_v34  ;;  %v468_v40 = vpop.f32.mrf.mxu1 }
  0xa8   :  { %v469_v44 = vadd.f32 %v468_v40, %v419_v39  ;;  %v997_v39 = vunpack.c.h.bf16 %v1059_v27 }
  0xa9   :  { %v610_v41 = vmul.f32 %v1393_v38, %v516_v37 }
  0xab   :  { %v630_v47 = vadd.f32 %v1399_v42, %v610_v41 }
  0xac   :  { %v1404_v45 = vpop.f32.mrf.mxu3 }
  0xad   :  { %v678_v54 = vadd.f32 %v988_v48, %v630_v47 }
  0xae   :  { %v517_v46 = vpop.f32.mrf.mxu2  ;;  %v422_v50 = vpop.f32.mrf.mxu0 }
  0xaf   :  { %v518_v49 = vadd.f32 %v517_v46, %v469_v44  ;;  %v471_v51 = vpop.f32.mrf.mxu1  ;;  %v694_v60 = vmax.f32 %v678_v54, 0.0 }
  0xb0   :  { %v472_v56 = vadd.f32 %v471_v51, %v422_v50 }
  0xb1   :  { %v611_v52 = vmul.f32 %v1393_v38, %v518_v49 }
  0xb3   :  { %v631_v55 = vadd.f32 %v1399_v42, %v611_v52 }
  0xb4   :  { %v1409_v58 = vpop.f32.mrf.mxu3 }
  0xb5   :  { %v679_v57 = vadd.f32 %v989_v53, %v631_v55  ;;  %v1060_v55 = vld [vmem:[%s1497_s4 + $0x18] sm:$0xff]  }
  0xb6   :  { %v520_v59 = vpop.f32.mrf.mxu2  ;;  %v424_v63 = vpop.f32.mrf.mxu0 }
  0xb7   :  { %v695_v61 = vmax.f32 %v679_v57, 0.0  ;;  %v521_v62 = vadd.f32 %v520_v59, %v472_v56  ;;  %v473_v0 = vpop.f32.mrf.mxu1 }
  0xb8   :  { %v474_v4 = vadd.f32 %v473_v0, %v424_v63 }
  0xb9   :  { %v1021_v1 = vpack.c.bf16 %v695_v61, %v694_v60  ;;  %v612_v2 = vmul.f32 %v1393_v38, %v521_v62  ;;  %v1000_v61 = vunpack.c.l.bf16 %v1060_v55 }
  0xbb   :  { %1022 = vst [vmem:[%s1498_s5] sm:$0xff] %v1021_v1   ;;  %v632_v7 = vadd.f32 %v1399_v42, %v612_v2  ;;  %v1001_v2 = vunpack.c.h.bf16 %v1060_v55 }
  0xbc   :  { %v1418_v5 = vpop.f32.mrf.mxu3 }
  0xbd   :  { %v680_v14 = vadd.f32 %v992_v8, %v632_v7 }
  0xbe   :  { %v522_v6 = vpop.f32.mrf.mxu2  ;;  %v427_v10 = vpop.f32.mrf.mxu0 }
  0xbf   :  { %v523_v9 = vadd.f32 %v522_v6, %v474_v4  ;;  %v476_v11 = vpop.f32.mrf.mxu1  ;;  %v696_v20 = vmax.f32 %v680_v14, 0.0 }
  0xc0   :  { %v477_v16 = vadd.f32 %v476_v11, %v427_v10 }
  0xc1   :  { %v613_v12 = vmul.f32 %v1393_v38, %v523_v9 }
  0xc3   :  { %v633_v15 = vadd.f32 %v1399_v42, %v613_v12 }
  0xc4   :  { %v496_v18 = vpop.f32.mrf.mxu3 }
  0xc5   :  { %v681_v17 = vadd.f32 %v993_v13, %v633_v15  ;;  %v497_v7 = vadd.f32 %v496_v18, %v1388_v35  ;;  %v1063_v35 = vld [vmem:[%s1497_s4 + $0x30] sm:$0xff]  }
  0xc6   :  { %v525_v19 = vpop.f32.mrf.mxu2  ;;  %v429_v23 = vpop.f32.mrf.mxu0 }
  0xc7   :  { %v697_v21 = vmax.f32 %v681_v17, 0.0  ;;  %v526_v22 = vadd.f32 %v525_v19, %v477_v16  ;;  %v478_v24 = vpop.f32.mrf.mxu1 }
  0xc8   :  { %v479_v28 = vadd.f32 %v478_v24, %v429_v23 }
  0xc9   :  { %v1026_v25 = vpack.c.bf16 %v697_v21, %v696_v20  ;;  %v614_v26 = vmul.f32 %v1393_v38, %v526_v22  ;;  %v1061_v21 = vld [vmem:[%s1497_s4 + $0x20] sm:$0xff]  }
  0xcb   :  { %1065 = vst [vmem:[%s1498_s5 + $0x8] sm:$0xff] %v1026_v25   ;;  %v634_v31 = vadd.f32 %v1399_v42, %v614_v26  ;;  %v1012_v25 = vunpack.c.l.bf16 %v1063_v35 }
  0xcc   :  { %v498_v29 = vpop.f32.mrf.mxu3 }
  0xcd   :  { %v682_v40 = vadd.f32 %v996_v32, %v634_v31  ;;  %v499_v18 = vadd.f32 %v498_v29, %v1404_v45 }
  0xce   :  { %v527_v30 = vpop.f32.mrf.mxu2  ;;  %v432_v34 = vpop.f32.mrf.mxu0 }
  0xcf   :  { %v528_v33 = vadd.f32 %v527_v30, %v479_v28  ;;  %v481_v36 = vpop.f32.mrf.mxu1  ;;  %v698_v48 = vmax.f32 %v682_v40, 0.0  ;;  %v1004_v30 = vunpack.c.l.bf16 %v1061_v21 }
  0xd0   :  { %v482_v43 = vadd.f32 %v481_v36, %v432_v34  ;;  %v1005_v36 = vunpack.c.h.bf16 %v1061_v21 }
  0xd1   :  { %v615_v37 = vmul.f32 %v1393_v38, %v528_v33  ;;  %v1013_v33 = vunpack.c.h.bf16 %v1063_v35 }
  0xd3   :  { %v635_v41 = vadd.f32 %v1399_v42, %v615_v37 }
  0xd4   :  { %v501_v46 = vpop.f32.mrf.mxu3 }
  0xd5   :  { %v683_v44 = vadd.f32 %v997_v39, %v635_v41 }
  0xd6   :  { %v530_v47 = vpop.f32.mrf.mxu2  ;;  %v434_v51 = vpop.f32.mrf.mxu0 }
  0xd7   :  { %v699_v49 = vmax.f32 %v683_v44, 0.0  ;;  %v531_v50 = vadd.f32 %v530_v47, %v482_v43  ;;  %v483_v52 = vpop.f32.mrf.mxu1  ;;  %v502_v44 = vadd.f32 %v501_v46, %v1409_v58 }
  0xd8   :  { %v484_v56 = vadd.f32 %v483_v52, %v434_v51 }
  0xd9   :  { %v1031_v53 = vpack.c.bf16 %v699_v49, %v698_v48  ;;  %v616_v54 = vmul.f32 %v1393_v38, %v531_v50 }
  0xdb   :  { %1066 = vst [vmem:[%s1498_s5 + $0x10] sm:$0xff] %v1031_v53   ;;  %v636_v60 = vadd.f32 %v1399_v42, %v616_v54 }
  0xdc   :  { %v1440_v57 = vpop.f32.mrf.mxu3 }
  0xdd   :  { %v684_v3 = vadd.f32 %v1000_v61, %v636_v60 }
  0xde   :  { %v532_v59 = vpop.f32.mrf.mxu2  ;;  %v437_v63 = vpop.f32.mrf.mxu0 }
  0xdf   :  { %v533_v62 = vadd.f32 %v532_v59, %v484_v56  ;;  %v486_v0 = vpop.f32.mrf.mxu1  ;;  %v700_v12 = vmax.f32 %v684_v3, 0.0 }
  0xe0   :  { %v487_v6 = vadd.f32 %v486_v0, %v437_v63  ;;  %v1064_v63 = vld [vmem:[%s1497_s4 + $0x38] sm:$0xff]   ;;  %v504_v0 = vadd.f32 %v1440_v57, %v1418_v5 }
  0xe1   :  { %v617_v1 = vmul.f32 %v1393_v38, %v533_v62 }
  0xe3   :  { %v637_v4 = vadd.f32 %v1399_v42, %v617_v1  ;;  %v1062_v1 = vld [vmem:[%s1497_s4 + $0x28] sm:$0xff]  }
  0xe4   :  { %v545_v9 = vpop.f32.mrf.mxu3  ;;  %v1009_v57 = vunpack.c.h.bf16 %v1062_v1 }
  0xe5   :  { %v685_v8 = vadd.f32 %v1001_v2, %v637_v4  ;;  %v546_v11 = vadd.f32 %v545_v9, %v497_v7 }
  0xe6   :  { %v535_v10 = vpop.f32.mrf.mxu2  ;;  %v439_v15 = vpop.f32.mrf.mxu0 }
  0xe7   :  { %v701_v13 = vmax.f32 %v685_v8, 0.0  ;;  %v536_v14 = vadd.f32 %v535_v10, %v487_v6  ;;  %v488_v16 = vpop.f32.mrf.mxu1  ;;  %v622_v19 = vmul.f32 %v1393_v38, %v546_v11  ;;  %v1016_v6 = vunpack.c.l.bf16 %v1064_v63 }
  0xe8   :  { %v489_v22 = vadd.f32 %v488_v16, %v439_v15  ;;  %v1008_v10 = vunpack.c.l.bf16 %v1062_v1 }
  0xe9   :  { %v1036_v17 = vpack.c.bf16 %v701_v13, %v700_v12  ;;  %v618_v20 = vmul.f32 %v1393_v38, %v536_v14  ;;  %v642_v24 = vadd.f32 %v1399_v42, %v622_v19  ;;  %v1017_v13 = vunpack.c.h.bf16 %v1064_v63 }
  0xeb   :  { %1067 = vst [vmem:[%s1498_s5 + $0x18] sm:$0xff] %v1036_v17   ;;  %v638_v28 = vadd.f32 %v1399_v42, %v618_v20  ;;  %v690_v37 = vadd.f32 %v1012_v25, %v642_v24 }
  0xec   :  { %v547_v23 = vpop.f32.mrf.mxu3 }
  0xed   :  { %v548_v27 = vadd.f32 %v547_v23, %v499_v18  ;;  %v686_v40 = vadd.f32 %v1004_v30, %v638_v28  ;;  %v706_v50 = vmax.f32 %v690_v37, 0.0 }
  0xee   :  { %v537_v26 = vpop.f32.mrf.mxu2  ;;  %v442_v34 = vpop.f32.mrf.mxu0 }
  0xef   :  { %v538_v31 = vadd.f32 %v537_v26, %v489_v22  ;;  %v623_v32 = vmul.f32 %v1393_v38, %v548_v27  ;;  %v491_v45 = vpop.f32.mrf.mxu1  ;;  %v702_v54 = vmax.f32 %v686_v40, 0.0 }
  0xf0   :  { %v492_v43 = vadd.f32 %v491_v45, %v442_v34 }
  0xf1   :  { %v619_v29 = vmul.f32 %v1393_v38, %v538_v31  ;;  %v643_v39 = vadd.f32 %v1399_v42, %v623_v32 }
  0xf3   :  { %v639_v41 = vadd.f32 %v1399_v42, %v619_v29  ;;  %v691_v47 = vadd.f32 %v1013_v33, %v643_v39 }
  0xf4   :  { %v550_v49 = vpop.f32.mrf.mxu3 }
  0xf5   :  { %v687_v48 = vadd.f32 %v1005_v36, %v639_v41  ;;  %v707_v51 = vmax.f32 %v691_v47, 0.0  ;;  %v551_v53 = vadd.f32 %v550_v49, %v502_v44 }
  0xf6   :  { %v540_v52 = vpop.f32.mrf.mxu2  ;;  %v444_v62 = vpop.f32.mrf.mxu0 }
  0xf7   :  { %v703_v55 = vmax.f32 %v687_v48, 0.0  ;;  %v541_v56 = vadd.f32 %v540_v52, %v492_v43  ;;  %v1051_v59 = vpack.c.bf16 %v707_v51, %v706_v50  ;;  %v624_v61 = vmul.f32 %v1393_v38, %v551_v53  ;;  %v493_v58 = vpop.f32.mrf.mxu1 }
  0xf8   :  { %v494_v2 = vadd.f32 %v493_v58, %v444_v62 }
  0xf9   :  { %v1041_v60 = vpack.c.bf16 %v703_v55, %v702_v54  ;;  %1070 = vst [vmem:[%s1498_s5 + $0x30] sm:$0xff] %v1051_v59   ;;  %v620_v46 = vmul.f32 %v1393_v38, %v541_v56  ;;  %v644_v4 = vadd.f32 %v1399_v42, %v624_v61 }
  0xfb   :  { %1068 = vst [vmem:[%s1498_s5 + $0x20] sm:$0xff] %v1041_v60   ;;  %v640_v9 = vadd.f32 %v1399_v42, %v620_v46  ;;  %v692_v14 = vadd.f32 %v1016_v6, %v644_v4 }
  0xfc   :  { %v552_v3 = vpop.f32.mrf.mxu3 }
  0xfd   :  { %v553_v8 = vadd.f32 %v552_v3, %v504_v0  ;;  %v688_v16 = vadd.f32 %v1008_v10, %v640_v9  ;;  %v708_v35 = vmax.f32 %v692_v14, 0.0 }
  0xfe   :  { %v542_v7 = vpop.f32.mrf.mxu2 }
  0xff   :  { %v543_v11 = vadd.f32 %v542_v7, %v494_v2  ;;  %v625_v12 = vmul.f32 %v1393_v38, %v553_v8  ;;  %v704_v21 = vmax.f32 %v688_v16, 0.0 }
 0x101   :  { %v621_v5 = vmul.f32 %v1393_v38, %v543_v11  ;;  %v645_v15 = vadd.f32 %v1399_v42, %v625_v12 }
 0x103   :  { %v641_v17 = vadd.f32 %v1399_v42, %v621_v5  ;;  %v693_v19 = vadd.f32 %v1017_v13, %v645_v15 }
 0x105   :  { %v689_v20 = vadd.f32 %v1009_v57, %v641_v17  ;;  %v709_v18 = vmax.f32 %v693_v19, 0.0 }
 0x107   :  { %v705_v22 = vmax.f32 %v689_v20, 0.0  ;;  %v1056_v23 = vpack.c.bf16 %v709_v18, %v708_v35 }
 0x109   :  { %v1046_v24 = vpack.c.bf16 %v705_v22, %v704_v21  ;;  %1071 = vst [vmem:[%s1498_s5 + $0x38] sm:$0xff] %v1056_v23  }
 0x10b   :  { %1069 = vst [vmem:[%s1498_s5 + $0x28] sm:$0xff] %v1046_v24  }

// kernel: resnet_forward.21
= control target key start
LH: loop header
LB: loop body
LE: loop exit
PB: predicated region body
PF: predicated region fallthrough
CT: control target
= control target key end

     0   :  { %s681_s1 = inlined_call_operand.vmem [shape: bf16[384,128], index: 1, kind: input, shape index: {}]   ;;  %s682_s0 = inlined_call_operand.vmem [shape: bf16[32,384], index: 0, kind: input, shape index: {}]   ;;  %s683_s2 = inlined_call_operand.vmem [shape: f32[1,128], index: 2, kind: input, shape index: {}]   ;;  %s684_s3 = inlined_call_operand.vmem [shape: f32[1,128], index: 3, kind: input, shape index: {}]   ;;  %s685_s4 = inlined_call_operand.vmem [shape: bf16[32,128], index: 4, kind: output, shape index: {}]  }
   0x1   :  { %v498_v0 = vld [vmem:[%s681_s1 + $0x38] sm:$0xff]  ;;  %v497_v3 = vld [vmem:[%s681_s1 + $0x30] sm:$0xff]  ;;  %v496_v6 = vld [vmem:[%s681_s1 + $0x28] sm:$0xff] }
   0x2   :  { %v506_v1 = vld [vmem:[%s681_s1 + $0x78] sm:$0xff]  ;;  %261 = vmatpush.bf16.msra.mxu0 %v498_v0  ;;  %v505_v4 = vld [vmem:[%s681_s1 + $0x70] sm:$0xff]  ;;  %526 = vmatpush.bf16.msra.mxu3 %v498_v0  ;;  %v504_v7 = vld [vmem:[%s681_s1 + $0x68] sm:$0xff] }
   0x3   :  { %v514_v2 = vld [vmem:[%s681_s1 + $0xb8] sm:$0xff]  ;;  %280 = vmatpush.bf16.msra.mxu1 %v506_v1  ;;  %v513_v5 = vld [vmem:[%s681_s1 + $0xb0] sm:$0xff]  ;;  %v512_v8 = vld [vmem:[%s681_s1 + $0xa8] sm:$0xff] }
   0x4   :  { %299 = vmatpush.bf16.msra.mxu2 %v514_v2  ;;  %v495_v9 = vld [vmem:[%s681_s1 + $0x20] sm:$0xff]  ;;  %v494_v12 = vld [vmem:[%s681_s1 + $0x18] sm:$0xff]  ;;  %v493_v15 = vld [vmem:[%s681_s1 + $0x10] sm:$0xff] }
   0x5   :  { %v503_v10 = vld [vmem:[%s681_s1 + $0x60] sm:$0xff]  ;;  %v502_v13 = vld [vmem:[%s681_s1 + $0x58] sm:$0xff]  ;;  %v501_v16 = vld [vmem:[%s681_s1 + $0x50] sm:$0xff] }
   0x6   :  { %262 = vmatpush.bf16.msra.mxu0 %v497_v3  ;;  %527 = vmatpush.bf16.msra.mxu3 %v497_v3  ;;  %v511_v11 = vld [vmem:[%s681_s1 + $0xa0] sm:$0xff]  ;;  %v510_v14 = vld [vmem:[%s681_s1 + $0x98] sm:$0xff]  ;;  %v509_v17 = vld [vmem:[%s681_s1 + $0x90] sm:$0xff] }
   0x7   :  { %281 = vmatpush.bf16.msra.mxu1 %v505_v4  ;;  %v492_v18 = vld [vmem:[%s681_s1 + $0x8] sm:$0xff]  ;;  %v491_v21 = vld [vmem:[%s681_s1] sm:$0xff]  ;;  %v369_v27 = vld [vmem:[%s682_s0 + $0xc] sm:$0xf0] }
   0x8   :  { %300 = vmatpush.bf16.msra.mxu2 %v513_v5  ;;  %v500_v19 = vld [vmem:[%s681_s1 + $0x48] sm:$0xff]  ;;  %v499_v22 = vld [vmem:[%s681_s1 + $0x40] sm:$0xff]  ;;  %v487_v29 = vld [vmem:[%s682_s0 + $0x10] sm:$0xf0] }
   0x9   :  { %v508_v20 = vld [vmem:[%s681_s1 + $0x88] sm:$0xff]  ;;  %v507_v23 = vld [vmem:[%s681_s1 + $0x80] sm:$0xff]  ;;  %v379_v30 = vld [vmem:[%s682_s0 + $0x18] sm:$0xf] }
   0xa   :  { %263 = vmatpush.bf16.msra.mxu0 %v496_v6  ;;  %528 = vmatpush.bf16.msra.mxu3 %v496_v6  ;;  %v367_v24 = vld [vmem:[%s682_s0] sm:$0xf]  ;;  %v486_v25 = vld [vmem:[%s682_s0 + $0x8] sm:$0xf0]  ;;  %v485_v26 = vld [vmem:[%s682_s0 + $0x4] sm:$0xf] }
   0xb   :  { %282 = vmatpush.bf16.msra.mxu1 %v504_v7  ;;  %v375_v28 = vld [vmem:[%s682_s0 + $0x8] sm:$0xf]  ;;  %v489_v31 = vld [vmem:[%s682_s0 + $0x20] sm:$0xf0]  ;;  %v368_v32 = vor.u32 %v486_v25, %v367_v24  ;;  %v372_v33 = vor.u32 %v485_v26, %v369_v27  ;;  %v488_v36 = vld [vmem:[%s682_s0 + $0x1c] sm:$0xf] }
   0xc   :  { %301 = vmatpush.bf16.msra.mxu2 %v512_v8  ;;  %v376_v34 = vor.u32 %v487_v29, %v375_v28  ;;  %v380_v35 = vor.u32 %v489_v31, %v379_v30  ;;  %v381_v37 = vld [vmem:[%s682_s0 + $0x24] sm:$0xf0]  ;;  %v387_v38 = vld [vmem:[%s682_s0 + $0x20] sm:$0xf]  ;;  %v490_v39 = vld [vmem:[%s682_s0 + $0x28] sm:$0xf0] }
   0xd   :  { %v384_v40 = vor.u32 %v488_v36, %v381_v37  ;;  %v388_v41 = vor.u32 %v490_v39, %v387_v38  ;;  %v534_v48 = vld [vmem:[%s683_s2] ss:$0 sm:$0xff] }
   0xe   :  { %264 = vmatpush.bf16.msra.mxu0 %v495_v9  ;;  %529 = vmatpush.bf16.msra.mxu3 %v495_v9  ;;  %v535_v51 = vld [vmem:[%s684_s3] ss:$0 sm:$0xff] }
   0xf   :  { %283 = vmatpush.bf16.msra.mxu1 %v503_v10 }
  0x10   :  { %302 = vmatpush.bf16.msra.mxu2 %v511_v11 }
  0x12   :  { %265 = vmatpush.bf16.msra.mxu0 %v494_v12  ;;  %530 = vmatpush.bf16.msra.mxu3 %v494_v12 }
  0x13   :  { %284 = vmatpush.bf16.msra.mxu1 %v502_v13 }
  0x14   :  { %303 = vmatpush.bf16.msra.mxu2 %v510_v14 }
  0x16   :  { %266 = vmatpush.bf16.msra.mxu0 %v493_v15  ;;  %531 = vmatpush.bf16.msra.mxu3 %v493_v15 }
  0x17   :  { %285 = vmatpush.bf16.msra.mxu1 %v501_v16 }
  0x18   :  { %304 = vmatpush.bf16.msra.mxu2 %v509_v17 }
  0x1a   :  { %267 = vmatpush.bf16.msra.mxu0 %v492_v18  ;;  %532 = vmatpush.bf16.msra.mxu3 %v492_v18 }
  0x1b   :  { %286 = vmatpush.bf16.msra.mxu1 %v500_v19 }
  0x1c   :  { %305 = vmatpush.bf16.msra.mxu2 %v508_v20 }
  0x1e   :  { %268 = vmatpush.bf16.msra.mxu0 %v491_v21  ;;  %533 = vmatpush.bf16.msra.mxu3 %v491_v21 }
  0x1f   :  { %287 = vmatpush.bf16.msra.mxu1 %v499_v22 }
  0x20   :  { %306 = vmatpush.bf16.msra.mxu2 %v507_v23 }
  0x21   :  { %269 = vmatmul.bf16.vlgmr.msra.gmra.mxu0 %v368_v32  ;;  %274 = vmatmul.bf16.vlgmr.msra.gmra.mxu3 %v380_v35 }
  0x22   :  { %288 = vmatmul.bf16.vlgmr.msra.gmra.mxu1 %v372_v33 }
  0x23   :  { %307 = vmatmul.bf16.vlgmr.msra.gmra.mxu2 %v376_v34 }
  0x32   :  { %293 = vmatmul.bf16.gmra.mxu1 %v384_v40 }
  0x33   :  { %312 = vmatmul.bf16.gmra.mxu2 %v388_v41 }
  0x9e   :  { %v270_v43 = vpop.f32.mrf.mxu0 }
  0x9f   :  { %v289_v42 = vpop.f32.mrf.mxu1 }
  0xa0   :  { %v290_v44 = vadd.f32 %v289_v42, %v270_v43 }
  0xa4   :  { %v275_v58 = vpop.f32.mrf.mxu3 }
  0xa6   :  { %v308_v45 = vpop.f32.mrf.mxu2  ;;  %v272_v49 = vpop.f32.mrf.mxu0 }
  0xa7   :  { %v291_v46 = vpop.f32.mrf.mxu1  ;;  %v309_v47 = vadd.f32 %v308_v45, %v290_v44 }
  0xa8   :  { %v292_v52 = vadd.f32 %v291_v46, %v272_v49 }
  0xa9   :  { %v337_v50 = vmul.f32 %v534_v48, %v309_v47 }
  0xab   :  { %v345_v56 = vadd.f32 %v535_v51, %v337_v50 }
  0xac   :  { %v277_v3 = vpop.f32.mrf.mxu3 }
  0xad   :  { %v349_v60 = vmax.f32 %v345_v56, 0.0 }
  0xae   :  { %v310_v53 = vpop.f32.mrf.mxu2 }
  0xaf   :  { %v311_v54 = vadd.f32 %v310_v53, %v292_v52  ;;  %v294_v55 = vpop.f32.mrf.mxu1 }
  0xb0   :  { %v295_v62 = vadd.f32 %v294_v55, %v275_v58 }
  0xb1   :  { %v338_v57 = vmul.f32 %v534_v48, %v311_v54 }
  0xb3   :  { %v346_v59 = vadd.f32 %v535_v51, %v338_v57 }
  0xb5   :  { %v350_v61 = vmax.f32 %v346_v59, 0.0 }
  0xb6   :  { %v313_v63 = vpop.f32.mrf.mxu2 }
  0xb7   :  { %v518_v0 = vpack.c.bf16 %v350_v61, %v349_v60  ;;  %v314_v1 = vadd.f32 %v313_v63, %v295_v62  ;;  %v296_v2 = vpop.f32.mrf.mxu1 }
  0xb8   :  { %v297_v5 = vadd.f32 %v296_v2, %v277_v3 }
  0xb9   :  { %519 = vst [vmem:[%s685_s4] sm:$0xff] %v518_v0   ;;  %v339_v4 = vmul.f32 %v534_v48, %v314_v1 }
  0xbb   :  { %v347_v8 = vadd.f32 %v535_v51, %v339_v4 }
  0xbd   :  { %v351_v11 = vmax.f32 %v347_v8, 0.0 }
  0xbe   :  { %v315_v6 = vpop.f32.mrf.mxu2 }
  0xbf   :  { %v316_v7 = vadd.f32 %v315_v6, %v297_v5 }
  0xc1   :  { %v340_v9 = vmul.f32 %v534_v48, %v316_v7 }
  0xc3   :  { %v348_v10 = vadd.f32 %v535_v51, %v340_v9 }
  0xc5   :  { %v352_v12 = vmax.f32 %v348_v10, 0.0 }
  0xc7   :  { %v523_v13 = vpack.c.bf16 %v352_v12, %v351_v11 }
  0xc9   :  { %525 = vst [vmem:[%s685_s4 + $0x8] sm:$0xff] %v523_v13  }

// kernel: resnet_forward.20
= control target key start
LH: loop header
LB: loop body
LE: loop exit
PB: predicated region body
PF: predicated region fallthrough
CT: control target
= control target key end

     0   :  { %s309_s1 = inlined_call_operand.vmem [shape: bf16[128,128], index: 1, kind: input, shape index: {}]   ;;  %s310_s2 = inlined_call_operand.vmem [shape: f32[1,128], index: 2, kind: input, shape index: {}]   ;;  %s311_s3 = inlined_call_operand.vmem [shape: f32[1,128], index: 3, kind: input, shape index: {}]   ;;  %s312_s0 = inlined_call_operand.vmem [shape: bf16[32,128], index: 0, kind: input, shape index: {}]   ;;  %s313_s4 = inlined_call_operand.vmem [shape: bf16[32,128], index: 4, kind: output, shape index: {}]  }
   0x1   :  { %v220_v0 = vld [vmem:[%s309_s1 + $0x38] sm:$0xff]  ;;  %v219_v1 = vld [vmem:[%s309_s1 + $0x30] sm:$0xff]  ;;  %v218_v2 = vld [vmem:[%s309_s1 + $0x28] sm:$0xff] }
   0x2   :  { %109 = vmatpush.bf16.msra.mxu0 %v220_v0  ;;  %232 = vmatpush.bf16.msra.mxu1 %v220_v0  ;;  %v217_v3 = vld [vmem:[%s309_s1 + $0x20] sm:$0xff]  ;;  %v216_v4 = vld [vmem:[%s309_s1 + $0x18] sm:$0xff]  ;;  %v215_v5 = vld [vmem:[%s309_s1 + $0x10] sm:$0xff] }
   0x3   :  { %v214_v6 = vld [vmem:[%s309_s1 + $0x8] sm:$0xff]  ;;  %v213_v7 = vld [vmem:[%s309_s1] sm:$0xff] }
   0x4   :  { %v211_v8 = vld [vmem:[%s312_s0] sm:$0xff]  ;;  %v212_v9 = vld [vmem:[%s312_s0 + $0x8] sm:$0xff] }
   0x5   :  { %v240_v12 = vld [vmem:[%s310_s2] ss:$0 sm:$0xff] }
   0x6   :  { %110 = vmatpush.bf16.msra.mxu0 %v219_v1  ;;  %233 = vmatpush.bf16.msra.mxu1 %v219_v1  ;;  %v241_v14 = vld [vmem:[%s311_s3] ss:$0 sm:$0xff] }
   0xa   :  { %111 = vmatpush.bf16.msra.mxu0 %v218_v2  ;;  %234 = vmatpush.bf16.msra.mxu1 %v218_v2 }
   0xe   :  { %112 = vmatpush.bf16.msra.mxu0 %v217_v3  ;;  %235 = vmatpush.bf16.msra.mxu1 %v217_v3 }
  0x12   :  { %113 = vmatpush.bf16.msra.mxu0 %v216_v4  ;;  %236 = vmatpush.bf16.msra.mxu1 %v216_v4 }
  0x16   :  { %114 = vmatpush.bf16.msra.mxu0 %v215_v5  ;;  %237 = vmatpush.bf16.msra.mxu1 %v215_v5 }
  0x1a   :  { %115 = vmatpush.bf16.msra.mxu0 %v214_v6  ;;  %238 = vmatpush.bf16.msra.mxu1 %v214_v6 }
  0x1e   :  { %116 = vmatpush.bf16.msra.mxu0 %v213_v7  ;;  %239 = vmatpush.bf16.msra.mxu1 %v213_v7 }
  0x21   :  { %117 = vmatmul.bf16.vlgmr.msra.gmra.mxu0 %v211_v8  ;;  %122 = vmatmul.bf16.vlgmr.msra.gmra.mxu1 %v212_v9 }
  0x9e   :  { %v118_v10 = vpop.f32.mrf.mxu0  ;;  %v123_v11 = vpop.f32.mrf.mxu1 }
  0x9f   :  { %v147_v13 = vmul.f32 %v240_v12, %v118_v10  ;;  %v149_v15 = vmul.f32 %v240_v12, %v123_v11 }
  0xa1   :  { %v155_v20 = vadd.f32 %v241_v14, %v147_v13  ;;  %v157_v21 = vadd.f32 %v241_v14, %v149_v15 }
  0xa6   :  { %v120_v16 = vpop.f32.mrf.mxu0  ;;  %v125_v17 = vpop.f32.mrf.mxu1 }
  0xa7   :  { %v148_v18 = vmul.f32 %v240_v12, %v120_v16  ;;  %v150_v19 = vmul.f32 %v240_v12, %v125_v17 }
  0xa9   :  { %v156_v22 = vadd.f32 %v241_v14, %v148_v18  ;;  %v158_v23 = vadd.f32 %v241_v14, %v150_v19 }
  0xab   :  { %v224_v24 = vpack.c.bf16 %v156_v22, %v155_v20  ;;  %v229_v25 = vpack.c.bf16 %v158_v23, %v157_v21 }
  0xad   :  { %225 = vst [vmem:[%s313_s4] sm:$0xff] %v224_v24  }
  0xae   :  { %231 = vst [vmem:[%s313_s4 + $0x8] sm:$0xff] %v229_v25  }

// kernel: resnet_forward.22
= control target key start
LH: loop header
LB: loop body
LE: loop exit
PB: predicated region body
PF: predicated region fallthrough
CT: control target
= control target key end

     0   :  { %s1218_s18 = smov 0   ;;  %s1220_s19 = smov 0   ;;  %s1343_s0 = inlined_call_operand.vmem [shape: bf16[32,768], index: 0, kind: input, shape index: {}]   ;;  %s1344_s1 = inlined_call_operand.vmem [shape: bf16[768,128], index: 1, kind: input, shape index: {}]   ;;  %s1345_s2 = inlined_call_operand.vmem [shape: f32[1,128], index: 2, kind: input, shape index: {}]   ;;  %s1346_s3 = inlined_call_operand.vmem [shape: f32[1,128], index: 3, kind: input, shape index: {}]   ;;  %s1347_s4 = inlined_call_operand.vmem [shape: bf16[32,128], index: 4, kind: input, shape index: {}]   ;;  %s1348_s5 = inlined_call_operand.vmem [shape: bf16[32,128], index: 5, kind: output, shape index: {}]  }
   0x1   :  { %s1222_s20 = smov 0   ;;  %s1224_s21 = smov 0  }
   0x2   :  { %s1226_s22 = smov 0  }
   0x3 LB: > { %s27_s23 = sadd.s32 1, %s1181_s21  ;;  %p50_p1 = scmp.ne.s32.totalorder %s1173_s19, %s1169_s18  ;;  %s1185_s22 = sphi %s1226_s22, %s15_s22   ;;  %s1181_s21 = sphi %s1224_s21, %s1352_s21   ;;  %s1177_s20 = sphi %s1222_s20, %s1351_s20   ;;  %s1173_s19 = sphi %s1220_s19, %s1350_s19   ;;  %s1169_s18 = sphi %s1218_s18, %s1349_s18  }
   0x4   : > { %p28_p0 = scmp.ge.s32.totalorder %s27_s23, 2  ;;  %p51_p2 = scmp.eq.s32.totalorder %s1185_s22, 0 }
   0x5   : > { %s43_s25 = sadd.s32 1, %s1173_s19  ;;  %p905_p5 = scmp.ge.s32.totalorder %s1185_s22, 2 }
   0x6   : > { %s1354_s23 = smov (%p28_p0, %s27_s23), 0  ;;  %p52_p3 = por %p51_p2, %p50_p1 }
   0x7   : > { %s39_s24 = ssub.s32 %s1181_s21, %s1354_s23  ;;  %236 = sbr.rel (%p905_p5) target bundleno = 25 (0x19), region = 28 }
   0x8   : > { %p41_p4 = scmp.eq.s32.totalorder %s39_s24, 0 }
   0xa   : > { %s1253_s26 = scalar_select %p41_p4, %s1173_s19, %s43_s25  }
   0xc   : > { %239 = sbr.rel (!%p52_p3) target bundleno = 25 (0x19), region = 32  ;;  %s241_s27 = sand.u32 (%p52_p3), 1, %s1173_s19  }
   0xd   : > { %s1043_s28 = smul.u32 (%p52_p3), 12, %s1181_s21 }
   0xe   : > { %s1102_s29 = smul.u32 (%p52_p3), 48, %s241_s27 }
   0xf   : > { %s249_s7 = scalar_lea.vmem (%p52_p3), %s1343_s0, %s1043_s28 }
  0x10   : > { %v264_v0 = vld [vmem:[%s249_s7] sm:$0xff] (%p52_p3)  ;;  %v266_v1 = vld [vmem:[%s249_s7 + $0x18] sm:$0xff] (%p52_p3)  ;;  %v268_v2 = vld [vmem:[%s249_s7 + $0x30] sm:$0xff] (%p52_p3)  ;;  %s243_s8 = scalar_lea.vmem (%p52_p3), [#allocation3], %s1102_s29 }
  0x11   : > { %265 = vst [vmem:[%s243_s8] sm:$0xff] %v264_v0  ;;  %v270_v3 = vld [vmem:[%s249_s7 + $0x48] sm:$0xff]  ;;  %v909_v5 = vld [vmem:[%s249_s7 + $0x20] sm:$0xf]  ;;  %v911_v6 = vld [vmem:[%s249_s7 + $0x38] sm:$0xf] }
  0x12   : > { %267 = vst [vmem:[%s243_s8 + $0xc] sm:$0xff] %v266_v1  ;;  %v907_v4 = vld [vmem:[%s249_s7 + $0x8] sm:$0xf]  ;;  %v913_v7 = vld [vmem:[%s249_s7 + $0x50] sm:$0xf] }
  0x13   : > { %269 = vst [vmem:[%s243_s8 + $0x18] sm:$0xff] %v268_v2 }
  0x14   : > { %271 = vst [vmem:[%s243_s8 + $0x24] sm:$0xff] %v270_v3 }
  0x15   : > { %908 = vst [vmem:[%s243_s8 + $0x8] sm:$0xf] %v907_v4 }
  0x16   : > { %910 = vst [vmem:[%s243_s8 + $0x14] sm:$0xf] %v909_v5 }
  0x17   : > { %912 = vst [vmem:[%s243_s8 + $0x20] sm:$0xf] %v911_v6 }
  0x18   : > { %914 = vst [vmem:[%s243_s8 + $0x2c] sm:$0xf] %v913_v7 }
  0x19 PF: > { %p915_p6 = scmp.ge.s32.totalorder %s1185_s22, 1  ;;  %p304_p7 = scmp.lt.s32.totalorder %s1185_s22, 3 }
  0x1b   : > { %p305_p8 = pnand %p915_p6, %p304_p7 }
  0x1c   : > { %s311_s9 = sand.u32 (!%p305_p8), 1, %s1169_s18   ;;  %s365_s10 = smul.u32 (!%p305_p8), 48, %s1177_s20 }
  0x1d   : > { %308 = sbr.rel (%p305_p8) target bundleno = 257 (0x101), region = 62  ;;  %p917_p10 = scmp.ne.s32.totalorder (!%p305_p8), %s1177_s20, 0 }
  0x1e   : > { %s1103_s11 = smul.u32 (!%p305_p8), 48, %s311_s9  ;;  %p366_p9 = scmp.lt.s32.totalorder (!%p305_p8), %s365_s10, 95 }
  0x20   : > { %s1270_s16 = scalar_lea.vmem (!%p305_p8), [#allocation3], %s1103_s11 }
  0x22   : > { %s1356_s10 = smov (!%p366_p9, %s365_s10), 95  ;;  %401 = sbr.rel (%p917_p10) target bundleno = 44 (0x2c), region = 70 }
  0x23   : > { %s916_s12 = sshll.u32 %s1356_s10, 2 }
  0x24   : > { %s1268_s15 = scalar_lea.vmem %s1344_s1, %s916_s12 }
  0x27   : > { %v1187_v8 = vmov 0.0  }
  0x28   : > { %402 = vst [vmem:[#allocation2 + $0x10] sm:$0xff] %v1187_v8 }
  0x29   : > { %403 = vst [vmem:[#allocation2] sm:$0xff] %v1187_v8 }
  0x2a   : > { %404 = vst [vmem:[#allocation2 + $0x18] sm:$0xff] %v1187_v8 }
  0x2b   : > { %405 = vst [vmem:[#allocation2 + $0x8] sm:$0xff] %v1187_v8 }
  0x2c PF: > { %v1057_v9 = vld [vmem:[%s1268_s15 + $0x38] sm:$0xff]  ;;  %v1056_v12 = vld [vmem:[%s1268_s15 + $0x30] sm:$0xff]  ;;  %v1055_v15 = vld [vmem:[%s1268_s15 + $0x28] sm:$0xff]  ;;  %p1038_p11 = scmp.ne.s32.totalorder %s1177_s20, 1 }
  0x2d   : > { %v1065_v10 = vld [vmem:[%s1268_s15 + $0x78] sm:$0xff]  ;;  %642 = vmatpush.bf16.msra.mxu0 %v1057_v9  ;;  %v1064_v13 = vld [vmem:[%s1268_s15 + $0x70] sm:$0xff]  ;;  %1094 = vmatpush.bf16.msra.mxu3 %v1057_v9  ;;  %v1063_v16 = vld [vmem:[%s1268_s15 + $0x68] sm:$0xff] }
  0x2e   : > { %v1073_v11 = vld [vmem:[%s1268_s15 + $0xb8] sm:$0xff]  ;;  %661 = vmatpush.bf16.msra.mxu1 %v1065_v10  ;;  %v1072_v14 = vld [vmem:[%s1268_s15 + $0xb0] sm:$0xff]  ;;  %v1071_v17 = vld [vmem:[%s1268_s15 + $0xa8] sm:$0xff] }
  0x2f   : > { %680 = vmatpush.bf16.msra.mxu2 %v1073_v11  ;;  %v1054_v18 = vld [vmem:[%s1268_s15 + $0x20] sm:$0xff]  ;;  %v1053_v21 = vld [vmem:[%s1268_s15 + $0x18] sm:$0xff]  ;;  %v1052_v24 = vld [vmem:[%s1268_s15 + $0x10] sm:$0xff] }
  0x30   : > { %v1062_v19 = vld [vmem:[%s1268_s15 + $0x60] sm:$0xff]  ;;  %v1061_v22 = vld [vmem:[%s1268_s15 + $0x58] sm:$0xff]  ;;  %v1060_v25 = vld [vmem:[%s1268_s15 + $0x50] sm:$0xff] }
  0x31   : > { %643 = vmatpush.bf16.msra.mxu0 %v1056_v12  ;;  %1095 = vmatpush.bf16.msra.mxu3 %v1056_v12  ;;  %v1070_v20 = vld [vmem:[%s1268_s15 + $0xa0] sm:$0xff]  ;;  %v1069_v23 = vld [vmem:[%s1268_s15 + $0x98] sm:$0xff]  ;;  %v1068_v26 = vld [vmem:[%s1268_s15 + $0x90] sm:$0xff] }
  0x32   : > { %662 = vmatpush.bf16.msra.mxu1 %v1064_v13  ;;  %v1051_v27 = vld [vmem:[%s1268_s15 + $0x8] sm:$0xff]  ;;  %v1050_v30 = vld [vmem:[%s1268_s15] sm:$0xff]  ;;  %v406_v54 = vld [vmem:[#allocation2 + $0x10] sm:$0xff] }
  0x33   : > { %681 = vmatpush.bf16.msra.mxu2 %v1072_v14  ;;  %v1059_v28 = vld [vmem:[%s1268_s15 + $0x48] sm:$0xff]  ;;  %v1058_v31 = vld [vmem:[%s1268_s15 + $0x40] sm:$0xff]  ;;  %v408_v4 = vld [vmem:[#allocation2 + $0x18] sm:$0xff] }
  0x34   : > { %v1067_v29 = vld [vmem:[%s1268_s15 + $0x88] sm:$0xff]  ;;  %v1066_v32 = vld [vmem:[%s1268_s15 + $0x80] sm:$0xff] }
  0x35   : > { %644 = vmatpush.bf16.msra.mxu0 %v1055_v15  ;;  %1096 = vmatpush.bf16.msra.mxu3 %v1055_v15  ;;  %v920_v33 = vld [vmem:[%s1270_s16] sm:$0xf]  ;;  %v1045_v34 = vld [vmem:[%s1270_s16 + $0x8] sm:$0xf0]  ;;  %v1044_v35 = vld [vmem:[%s1270_s16 + $0x4] sm:$0xf] }
  0x36   : > { %663 = vmatpush.bf16.msra.mxu1 %v1063_v16  ;;  %v922_v36 = vld [vmem:[%s1270_s16 + $0xc] sm:$0xf0]  ;;  %v928_v37 = vld [vmem:[%s1270_s16 + $0x8] sm:$0xf]  ;;  %v1046_v38 = vld [vmem:[%s1270_s16 + $0x10] sm:$0xf0]  ;;  %v921_v41 = vor.u32 %v1045_v34, %v920_v33 }
  0x37   : > { %682 = vmatpush.bf16.msra.mxu2 %v1071_v17  ;;  %v932_v39 = vld [vmem:[%s1270_s16 + $0x18] sm:$0xf]  ;;  %v1048_v40 = vld [vmem:[%s1270_s16 + $0x20] sm:$0xf0]  ;;  %v925_v42 = vor.u32 %v1044_v35, %v922_v36  ;;  %v929_v43 = vor.u32 %v1046_v38, %v928_v37  ;;  %v1047_v45 = vld [vmem:[%s1270_s16 + $0x1c] sm:$0xf] }
  0x38   : > { %v933_v44 = vor.u32 %v1048_v40, %v932_v39  ;;  %v934_v46 = vld [vmem:[%s1270_s16 + $0x24] sm:$0xf0]  ;;  %v940_v47 = vld [vmem:[%s1270_s16 + $0x20] sm:$0xf]  ;;  %v1049_v48 = vld [vmem:[%s1270_s16 + $0x28] sm:$0xf0] }
  0x39   : > { %645 = vmatpush.bf16.msra.mxu0 %v1054_v18  ;;  %1097 = vmatpush.bf16.msra.mxu3 %v1054_v18  ;;  %v937_v49 = vor.u32 %v1047_v45, %v934_v46  ;;  %v941_v50 = vor.u32 %v1049_v48, %v940_v47  ;;  %v407_v61 = vld [vmem:[#allocation2] sm:$0xff]  ;;  %v409_v11 = vld [vmem:[#allocation2 + $0x8] sm:$0xff] }
  0x3a   : > { %664 = vmatpush.bf16.msra.mxu1 %v1062_v19 }
  0x3b   : > { %683 = vmatpush.bf16.msra.mxu2 %v1070_v20 }
  0x3d   : > { %646 = vmatpush.bf16.msra.mxu0 %v1053_v21  ;;  %1098 = vmatpush.bf16.msra.mxu3 %v1053_v21 }
  0x3e   : > { %665 = vmatpush.bf16.msra.mxu1 %v1061_v22 }
  0x3f   : > { %684 = vmatpush.bf16.msra.mxu2 %v1069_v23 }
  0x41   : > { %647 = vmatpush.bf16.msra.mxu0 %v1052_v24  ;;  %1099 = vmatpush.bf16.msra.mxu3 %v1052_v24 }
  0x42   : > { %666 = vmatpush.bf16.msra.mxu1 %v1060_v25 }
  0x43   : > { %685 = vmatpush.bf16.msra.mxu2 %v1068_v26 }
  0x45   : > { %648 = vmatpush.bf16.msra.mxu0 %v1051_v27  ;;  %1100 = vmatpush.bf16.msra.mxu3 %v1051_v27 }
  0x46   : > { %667 = vmatpush.bf16.msra.mxu1 %v1059_v28 }
  0x47   : > { %686 = vmatpush.bf16.msra.mxu2 %v1067_v29 }
  0x49   : > { %649 = vmatpush.bf16.msra.mxu0 %v1050_v30  ;;  %1101 = vmatpush.bf16.msra.mxu3 %v1050_v30 }
  0x4a   : > { %668 = vmatpush.bf16.msra.mxu1 %v1058_v31 }
  0x4b   : > { %687 = vmatpush.bf16.msra.mxu2 %v1066_v32 }
  0x4c   : > { %650 = vmatmul.bf16.vlgmr.msra.gmra.mxu0 %v921_v41  ;;  %655 = vmatmul.bf16.vlgmr.msra.gmra.mxu3 %v933_v44 }
  0x4d   : > { %669 = vmatmul.bf16.vlgmr.msra.gmra.mxu1 %v925_v42 }
  0x4e   : > { %688 = vmatmul.bf16.vlgmr.msra.gmra.mxu2 %v929_v43 }
  0x5d   : > { %674 = vmatmul.bf16.gmra.mxu1 %v937_v49 }
  0x5e   : > { %693 = vmatmul.bf16.gmra.mxu2 %v941_v50 }
  0xc9   : > { %v651_v52 = vpop.f32.mrf.mxu0 }
  0xca   : > { %v670_v51 = vpop.f32.mrf.mxu1 }
  0xcb   : > { %v671_v53 = vadd.f32 %v670_v51, %v651_v52 }
  0xcf   : > { %v656_v2 = vpop.f32.mrf.mxu3 }
  0xd1   : > { %v689_v55 = vpop.f32.mrf.mxu2  ;;  %v653_v59 = vpop.f32.mrf.mxu0 }
  0xd2   : > { %v690_v56 = vadd.f32 %v689_v55, %v671_v53  ;;  %v672_v57 = vpop.f32.mrf.mxu1 }
  0xd3   : > { %v673_v60 = vadd.f32 %v672_v57, %v653_v59 }
  0xd4   : > { %v699_v58 = vadd.f32 %v690_v56, %v406_v54 }
  0xd6   : > { %703 = vst [vmem:[#allocation2 + $0x10] sm:$0xff] %v699_v58 }
  0xd7   : > { %v658_v9 = vpop.f32.mrf.mxu3 }
  0xd9   : > { %v691_v62 = vpop.f32.mrf.mxu2 }
  0xda   : > { %v692_v63 = vadd.f32 %v691_v62, %v673_v60  ;;  %v675_v0 = vpop.f32.mrf.mxu1 }
  0xdb   : > { %v676_v3 = vadd.f32 %v675_v0, %v656_v2 }
  0xdc   : > { %v700_v1 = vadd.f32 %v692_v63, %v407_v61 }
  0xde   : > { %704 = vst [vmem:[#allocation2] sm:$0xff] %v700_v1 }
  0xe1   : > { %v694_v5 = vpop.f32.mrf.mxu2 }
  0xe2   : > { %v695_v6 = vadd.f32 %v694_v5, %v676_v3  ;;  %v677_v8 = vpop.f32.mrf.mxu1 }
  0xe3   : > { %v678_v10 = vadd.f32 %v677_v8, %v658_v9 }
  0xe4   : > { %v701_v7 = vadd.f32 %v695_v6, %v408_v4 }
  0xe6   : > { %705 = vst [vmem:[#allocation2 + $0x18] sm:$0xff] %v701_v7 }
  0xe9   : > { %v696_v12 = vpop.f32.mrf.mxu2 }
  0xea   : > { %v697_v13 = vadd.f32 %v696_v12, %v678_v10  ;;  %710 = sbr.rel (%p1038_p11) target bundleno = 257 (0x101), region = 74 }
  0xec   : > { %v702_v14 = vadd.f32 %v697_v13, %v409_v11 }
  0xee   : > { %706 = vst [vmem:[#allocation2 + $0x8] sm:$0xff] %v702_v14 }
  0xef   : > { %v711_v15 = vld [vmem:[#allocation2 + $0x10] sm:$0xff]  ;;  %v712_v16 = vld [vmem:[#allocation2] sm:$0xff]  ;;  %v713_v20 = vld [vmem:[#allocation2 + $0x18] sm:$0xff] }
  0xf0   : > { %v1145_v17 = vld [vmem:[%s1345_s2] ss:$0 sm:$0xff]  ;;  %v1092_v26 = vld [vmem:[%s1347_s4 + $0x8] sm:$0xff]  }
  0xf1   : > { %v1146_v18 = vld [vmem:[%s1346_s3] ss:$0 sm:$0xff]  ;;  %v719_v22 = vmul.f32 %v1145_v17, %v711_v15  ;;  %v720_v23 = vmul.f32 %v1145_v17, %v712_v16  ;;  %v721_v27 = vmul.f32 %v1145_v17, %v713_v20  ;;  %v1080_v29 = vunpack.c.l.bf16 %v1092_v26 }
  0xf2   : > { %v1075_v19 = vld [vmem:[%s1347_s4] sm:$0xff]   ;;  %v1081_v30 = vunpack.c.h.bf16 %v1092_v26 }
  0xf3   : > { %v1076_v24 = vunpack.c.l.bf16 %v1075_v19  ;;  %v1077_v25 = vunpack.c.h.bf16 %v1075_v19  ;;  %v727_v31 = vadd.f32 %v1146_v18, %v719_v22  ;;  %v728_v32 = vadd.f32 %v1146_v18, %v720_v23 }
  0xf4   : > { %v729_v33 = vadd.f32 %v1146_v18, %v721_v27 }
  0xf5   : > { %v714_v21 = vld [vmem:[#allocation2 + $0x8] sm:$0xff]  ;;  %v739_v35 = vadd.f32 %v1076_v24, %v727_v31  ;;  %v740_v36 = vadd.f32 %v1077_v25, %v728_v32 }
  0xf6   : > { %v722_v28 = vmul.f32 %v1145_v17, %v714_v21  ;;  %v741_v37 = vadd.f32 %v1080_v29, %v729_v33 }
  0xf7   : > { %v743_v39 = vmax.f32 %v739_v35, 0.0  ;;  %v744_v40 = vmax.f32 %v740_v36, 0.0 }
  0xf8   : > { %v730_v34 = vadd.f32 %v1146_v18, %v722_v28  ;;  %v745_v41 = vmax.f32 %v741_v37, 0.0 }
  0xf9   : > { %v1085_v43 = vpack.c.bf16 %v744_v40, %v743_v39 }
  0xfa   : > { %v742_v38 = vadd.f32 %v1081_v30, %v730_v34 }
  0xfb   : > { %1086 = vst [vmem:[%s1348_s5] sm:$0xff] %v1085_v43  }
  0xfc   : > { %v746_v42 = vmax.f32 %v742_v38, 0.0 }
  0xfe   : > { %v1090_v44 = vpack.c.bf16 %v746_v42, %v745_v41 }
 0x100   : > { %1093 = vst [vmem:[%s1348_s5 + $0x8] sm:$0xff] %v1090_v44  }
 0x101 PF: > { %s15_s22 = sadd.s32 1, %s1185_s22   ;;  %s1349_s18 = smov %s1173_s19 }
 0x102   : > { %p12_p12 = scmp.ge.s32.totalorder %s15_s22, 4   ;;  %s1350_s19 = smov %s1253_s26 }
 0x103   : > { %s1351_s20 = smov %s1181_s21  ;;  %s1352_s21 = smov %s1354_s23 }
 0x104   :  { %14 = sbr.rel (!%p12_p12) target bundleno = 3 (0x3), region = 127 }

// kernel: resnet_forward.23
= control target key start
LH: loop header
LB: loop body
LE: loop exit
PB: predicated region body
PF: predicated region fallthrough
CT: control target
= control target key end

     0   :  { %v278_v2 = vmov 16.0   ;;  %vm44_vm0 = vcmask 523264   ;;  %s427_s0 = inlined_call_operand.vmem [shape: bf16[2,16,64], index: 0, kind: input, shape index: {}]   ;;  %s428_s1 = inlined_call_operand.vmem [shape: f32[64,32], index: 1, kind: input, shape index: {}]   ;;  %s429_s2 = inlined_call_operand.vmem [shape: f32[1,32], index: 2, kind: input, shape index: {}]   ;;  %s430_s3 = inlined_call_operand.vmem [shape: f32[32,32], index: 3, kind: input, shape index: {}]   ;;  %s431_s4 = inlined_call_operand.vmem [shape: f32[1,32], index: 4, kind: input, shape index: {}]   ;;  %s432_s5 = inlined_call_operand.vmem [shape: f32[32,32], index: 5, kind: input, shape index: {}]   ;;  %s433_s6 = inlined_call_operand.vmem [shape: f32[1,32], index: 6, kind: input, shape index: {}]   ;;  %s434_s7 = inlined_call_operand.vmem [shape: f32[1,32], index: 7, kind: input, shape index: {}]   ;;  %s435_s8 = inlined_call_operand.vmem [shape: f32[32,5], index: 8, kind: input, shape index: {}]   ;;  %s436_s9 = inlined_call_operand.vmem [shape: f32[1,5], index: 9, kind: input, shape index: {}]   ;;  %s437_s10 = inlined_call_operand.hbm [shape: f32[2,5], index: 10, kind: output, shape index: {}]  }
   0x1   :  { %v79_v0 = vld [vmem:[%s428_s1 + $0x38] sm:$0xff]  ;;  %v78_v1 = vld [vmem:[%s428_s1 + $0x30] sm:$0xff]  ;;  %250 = vrcp.f32 %v278_v2  ;;  %v77_v3 = vld [vmem:[%s428_s1 + $0x28] sm:$0xff] }
   0x2   :  { %98 = vmatpush.msra.mxu0 %v79_v0  ;;  %v235_v4 = vld [vmem:[%s427_s0] sm:$0xff]   ;;  %v242_v7 = vld [vmem:[%s427_s0 + $0x8] sm:$0xff]   ;;  %v114_v8 = vld [vmem:[%s430_s3 + $0x18] sm:$0xff] }
   0x3   :  { %v236_v5 = vunpack.c.l.bf16 %v235_v4  ;;  %v237_v6 = vunpack.c.h.bf16 %v235_v4  ;;  %v76_v9 = vld [vmem:[%s428_s1 + $0x20] sm:$0xff]  ;;  %v240_v10 = vunpack.c.l.bf16 %v242_v7  ;;  %v241_v11 = vunpack.c.h.bf16 %v242_v7  ;;  %135 = vmatpush.msra.mxu1 %v114_v8  ;;  %v75_v14 = vld [vmem:[%s428_s1 + $0x18] sm:$0xff] }
   0x4   :  { %99 = vmatpush.msra.mxu0 %v78_v1 }
   0x5   :  { %v45_v12 = vsel %vm44_vm0, %v236_v5, 0.0  ;;  %v46_v13 = vsel %vm44_vm0, %v237_v6, 0.0  ;;  %v54_v16 = vsel %vm44_vm0, %v240_v10, 0.0  ;;  %v55_v17 = vsel %vm44_vm0, %v241_v11, 0.0 }
   0x6   :  { %100 = vmatpush.msra.mxu0 %v77_v3  ;;  %v47_v15 = vadd.f32 %v46_v13, %v45_v12 }
   0x7   :  { %15 = vsyncpa [#allocation3], 0  ;;  %v251_v18 = vpop.eup %250  ;;  %v56_v19 = vadd.f32 %v55_v17, %v54_v16  ;;  %v74_v20 = vld [vmem:[%s428_s1 + $0x10] sm:$0xff]  ;;  %v73_v24 = vld [vmem:[%s428_s1 + $0x8] sm:$0xff]  ;;  %vm86_vm2 = vcmask 1041409   ;;  %vm119_vm3 = vcmask 261120  }
   0x8   :  { %101 = vmatpush.msra.mxu0 %v76_v9  ;;  %v48_v21 = vrot.slane %v47_v15, 4  ;;  %v64_v22 = vmul.f32 16.0, %v251_v18  ;;  %v72_v28 = vld [vmem:[%s428_s1] sm:$0xff]  ;;  %vm68_vm1 = vweird.f32 %v251_v18  ;;  %v113_v43 = vld [vmem:[%s430_s3 + $0x10] sm:$0xff]  ;;  %v112_v44 = vld [vmem:[%s430_s3 + $0x8] sm:$0xff]  ;;  %s279_s19 = smov [#allocation2]  }
   0x9   :  { %v57_v23 = vrot.slane %v56_v19, 4  ;;  %136 = vmatpush.msra.mxu1 %v113_v43  ;;  %v111_v45 = vld [vmem:[%s430_s3] sm:$0xff]  ;;  %v147_v46 = vld [vmem:[%s432_s5 + $0x18] sm:$0xff]  ;;  %v146_v51 = vld [vmem:[%s432_s5 + $0x10] sm:$0xff]  ;;  %s221_s22 = sshll.u32 %s437_s10, 4  ;;  %vm212_vm4 = vcmask 33792   ;;  %s222_s22 = int_to_ptr.hbm [resolvable:$true] %s221_s22 }
   0xa   :  { %102 = vmatpush.msra.mxu0 %v75_v14  ;;  %v49_v25 = vadd.f32 %v48_v21, %v47_v15  ;;  %v65_v26 = vsub.f32 1.0, %v64_v22  ;;  %163 = vmatpush.msra.mxu2 %v147_v46  ;;  %v245_v47 = vld [vmem:[%s429_s2] ss:$0 sm:$0xff]  ;;  %v145_v52 = vld [vmem:[%s432_s5 + $0x8] sm:$0xff]  ;;  %v184_v54 = vld [vmem:[%s435_s8 + $0x18] sm:$0xff] }
   0xb   :  { %v58_v27 = vadd.f32 %v57_v23, %v56_v19  ;;  %137 = vmatpush.msra.mxu1 %v112_v44  ;;  %v144_v53 = vld [vmem:[%s432_s5] sm:$0xff]  ;;  %204 = vmatpush.msra.mxu3 %v184_v54  ;;  %v183_v59 = vld [vmem:[%s435_s8 + $0x10] sm:$0xff]  ;;  %v182_v60 = vld [vmem:[%s435_s8 + $0x8] sm:$0xff] }
   0xc   :  { %103 = vmatpush.msra.mxu0 %v74_v20  ;;  %v50_v29 = vrot.slane %v49_v25, 2  ;;  %v66_v30 = vmul.f32 %v251_v18, %v65_v26  ;;  %164 = vmatpush.msra.mxu2 %v146_v51  ;;  %v246_v55 = vld [vmem:[%s431_s4] ss:$0 sm:$0xff] }
   0xd   :  { %v59_v31 = vrot.slane %v58_v27, 2  ;;  %138 = vmatpush.msra.mxu1 %v111_v45  ;;  %205 = vmatpush.msra.mxu3 %v183_v59  ;;  %v181_v61 = vld [vmem:[%s435_s8] sm:$0xff]  ;;  %s219_s8 = sshll.u32 %s279_s19, 4  ;;  %s220_s8 = int_to_ptr.vmem [resolvable:$true] %s219_s8 }
   0xe   :  { %104 = vmatpush.msra.mxu0 %v73_v24  ;;  %v51_v32 = vadd.f32 %v50_v29, %v49_v25  ;;  %v67_v33 = vadd.f32 %v251_v18, %v66_v30  ;;  %165 = vmatpush.msra.mxu2 %v145_v52  ;;  %v247_v62 = vld [vmem:[%s433_s6] ss:$0 sm:$0xff] }
   0xf   :  { %v60_v34 = vadd.f32 %v59_v31, %v58_v27  ;;  %206 = vmatpush.msra.mxu3 %v182_v60  ;;  %v248_v63 = vld [vmem:[%s434_s7] ss:$0 sm:$0xff] }
  0x10   :  { %105 = vmatpush.msra.mxu0 %v72_v28  ;;  %v52_v35 = vrot.slane %v51_v32, 1  ;;  %v69_v37 = vsel %vm68_vm1, %v251_v18, %v67_v33  ;;  %166 = vmatpush.msra.mxu2 %v144_v53  ;;  %v249_v3 = vld [vmem:[%s436_s9] ss:$0 sm:$0xff] }
  0x11   :  { %v61_v36 = vrot.slane %v60_v34, 1  ;;  %207 = vmatpush.msra.mxu3 %v181_v61 }
  0x12   :  { %v53_v38 = vadd.f32 %v52_v35, %v51_v32 }
  0x13   :  { %v62_v39 = vadd.f32 %v61_v36, %v60_v34 }
  0x14   :  { %v70_v40 = vmul.f32 %v69_v37, %v53_v38 }
  0x15   :  { %v71_v41 = vmul.f32 %v69_v37, %v62_v39 }
  0x17   :  { %v87_v42 = vsel %vm86_vm2, %v71_v41, %v70_v40 }
  0x18   :  { %230 = vmatmul.msk.f32.vlgmr.msra.gmra.mxu0 %vm44_vm0, %v87_v42 }
  0x95   :  { %v107_v48 = vpop.f32.mrf.mxu0 }
  0x96   :  { %v108_v49 = vadd.f32 %v245_v47, %v107_v48 }
  0x98   :  { %v110_v50 = vmax.f32 %v108_v49, 0.0 }
  0x9a   :  { %231 = vmatmul.msk.f32.vlgmr.msra.gmra.mxu1 %vm119_vm3, %v110_v50 }
 0x117   :  { %v140_v56 = vpop.f32.mrf.mxu1 }
 0x118   :  { %v141_v57 = vadd.f32 %v246_v55, %v140_v56 }
 0x11a   :  { %v143_v58 = vmax.f32 %v141_v57, 0.0 }
 0x11c   :  { %232 = vmatmul.msk.f32.vlgmr.msra.gmra.mxu2 %vm119_vm3, %v143_v58 }
 0x19f   :  { %v168_v0 = vpop.f32.mrf.mxu2 }
 0x1a0   :  { %v175_v1 = vmul.f32 %v247_v62, %v168_v0 }
 0x1a2   :  { %v180_v2 = vadd.f32 %v248_v63, %v175_v1 }
 0x1a4   :  { %233 = vmatmul.msk.f32.vlgmr.msra.gmra.mxu3 %vm119_vm3, %v180_v2 }
 0x227   :  { %v209_v4 = vpop.f32.mrf.mxu3 }
 0x228   :  { %v210_v5 = vadd.f32 %v249_v3, %v209_v4 }
 0x22a   :  { %213 = vst.msk [vmem:[#allocation2] sm:$0x3] %vm212_vm4, %v210_v5 }
 0x22b   :  { %224 = dma.vmem_to_hbm [thread:$0]  %s220_s8, 32, %s222_s22, [#allocation3]  }
 0x22c   :  { %276 = dma.done.wait [#allocation3], 32  }
 0x22d   :  { %277 = vsyncadd [#allocation3], 4294967264 }
 0x22e   :  { %229 = vsyncpa [#allocation3], 1 }

</bundles_post_ra>
